<compile_context>
chip_gen: v6e
topology: v6e:2x2x1
jax: 0.10.0
libtpu: 0.0.40
codegen_flags: <defaults>
</compile_context>

<pallas_src>
import jax
import jax.numpy as jnp
from jax.experimental import pallas as pl
from jax.experimental.pallas import tpu as pltpu


NEF = 256  # cfg.TRAIN.FLAG is False at inference -> self.nef = 256


def _heads_kernel(x6e_ref, wf_ref, pooled_ref, wc_ref, bc_ref, feat_ref, code_ref):
    """One grid step == one batch element b.

    x6e_ref:    [1, 768, HW]   Mixed_6e activations for batch b (f32)
    wf_ref:     [nef, 768]     conv1x1 weight (bf16, resident)
    pooled_ref: [1, 1, 2048]   pooled Mixed_7c activations for batch b (f32)
    wc_ref:     [2048, nef]    Linear weight, pre-transposed (bf16, resident)
    bc_ref:     [1, nef]       Linear bias (f32, resident)
    feat_ref:   [1, nef, HW]   conv1x1 output for batch b
    code_ref:   [1, 1, nef]    Linear output for batch b
    """
    # features head: W[nef,768] @ x[768,HW]  (bf16 MXU, f32 accumulation)
    x = x6e_ref[0].astype(jnp.bfloat16)                       # [768, HW]
    feat = jnp.dot(wf_ref[...], x, preferred_element_type=jnp.float32)
    feat_ref[0] = feat.astype(feat_ref.dtype)

    # cnn_code head: x[1,2048] @ W[2048,nef] + b  (bf16 MXU, f32 accumulation)
    p = pooled_ref[0].astype(jnp.bfloat16)                    # [1, 2048]
    code = jnp.dot(p, wc_ref[...], preferred_element_type=jnp.float32) + bc_ref[...]
    code_ref[0] = code.astype(code_ref.dtype)


@jax.jit
def cnn_encoder_heads_forward(features_6e, pooled_2048, w_feat_bf16, w_code_t_bf16,
                              b_code_2d):
    """Fused Pallas forward of CNN_ENCODER's two trainable heads.

    features_6e:   [B, 768, 17, 17]  Mixed_6e activations (f32)
    pooled_2048:   [B, 2048]         avg-pooled Mixed_7c activations (f32)
    w_feat_bf16:   [nef, 768]        conv1x1 weight (bias=False), bf16
    w_code_t_bf16: [2048, nef]       nn.Linear weight, pre-transposed, bf16
    b_code_2d:     [1, nef]          nn.Linear bias, f32
    returns (features [B, nef, 17, 17], cnn_code [B, nef])
    """
    B, C, H, W = features_6e.shape
    HW = H * W
    K_code = pooled_2048.shape[1]
    nef = w_code_t_bf16.shape[1]

    # Free layout glue: contiguous reshapes only, no transposes, no pads.
    x6e = features_6e.reshape(B, C, HW)          # [B, 768, HW]
    pooled3 = pooled_2048.reshape(B, 1, K_code)  # [B, 1, 2048]

    f32 = jnp.dtype(jnp.float32).itemsize
    bf16 = jnp.dtype(jnp.bfloat16).itemsize
    cost = pl.CostEstimate(
        flops=2 * B * (nef * C * HW + 1 * K_code * nef),
        transcendentals=0,
        bytes_accessed=(B * C * HW * f32            # x6e in
                        + nef * C * bf16            # w_feat
                        + B * K_code * f32          # pooled in
                        + K_code * nef * bf16       # w_code
                        + nef * f32                 # bias
                        + B * nef * HW * f32        # features out
                        + B * nef * f32),           # cnn_code out
    )

    feat_flat, code3 = pl.pallas_call(
        _heads_kernel,
        out_shape=(
            jax.ShapeDtypeStruct((B, nef, HW), jnp.float32),
            jax.ShapeDtypeStruct((B, 1, nef), jnp.float32),
        ),
        grid_spec=pltpu.PrefetchScalarGridSpec(
            num_scalar_prefetch=0,
            grid=(B,),
            in_specs=[
                pl.BlockSpec((1, C, HW), lambda b: (b, 0, 0)),       # x6e, per batch
                pl.BlockSpec((nef, C), lambda b: (0, 0)),            # w_feat, resident
                pl.BlockSpec((1, 1, K_code), lambda b: (b, 0, 0)),   # pooled, per batch
                pl.BlockSpec((K_code, nef), lambda b: (0, 0)),       # w_code, resident
                pl.BlockSpec((1, nef), lambda b: (0, 0)),            # bias, resident
            ],
            out_specs=[
                pl.BlockSpec((1, nef, HW), lambda b: (b, 0, 0)),     # features
                pl.BlockSpec((1, 1, nef), lambda b: (b, 0, 0)),      # cnn_code
            ],
        ),
        compiler_params=pltpu.CompilerParams(
            dimension_semantics=("parallel",),   # batch steps shard across TCs (v7x)
        ),
        cost_estimate=cost,
    )(x6e, w_feat_bf16, pooled3, w_code_t_bf16, b_code_2d)

    features = feat_flat.reshape(B, nef, H, W)   # free reshape
    cnn_code = code3.reshape(B, nef)             # free reshape
    return features, cnn_code


if __name__ == "__main__":
    nef = NEF
    B = 2
    H = W = 17        # Mixed_6e spatial size for 299x299 inputs
    C_FEAT = 768      # Mixed_6e channels
    C_CODE = 2048     # pooled Mixed_7c channels

    key = jax.random.PRNGKey(0)
    k1, k2, k3, k4, k5 = jax.random.split(key, 5)

    # Trainable head parameters (init_trainable_weights: uniform(-0.1, 0.1)).
    initrange = 0.1
    w_code = jax.random.uniform(k1, (nef, C_CODE), jnp.float32, -initrange, initrange)
    b_code = jax.random.uniform(k2, (nef,), jnp.float32, -initrange, initrange)
    w_feat = jax.random.uniform(k3, (nef, C_FEAT), jnp.float32, -initrange, initrange)

    # Synthetic backbone activations standing in for the Inception-v3 outputs.
    features_6e = jax.random.normal(k4, (B, C_FEAT, H, W), jnp.float32)
    pooled = jax.random.normal(k5, (B, C_CODE), jnp.float32)

    # One-time parameter layout/dtype prep, OUTSIDE the jitted hot path:
    #   Linear weight stored as [K, N] and cast to bf16; conv1x1 weight stays
    #   [nef, 768] (used as the matmul LHS, so no transpose at all) in bf16.
    w_code_t_bf16 = w_code.T.astype(jnp.bfloat16)    # [2048, nef]
    w_feat_bf16 = w_feat.astype(jnp.bfloat16)        # [nef, 768]
    b_code_2d = b_code.reshape(1, nef)               # [1, nef], f32

    features, cnn_code = cnn_encoder_heads_forward(
        features_6e, pooled, w_feat_bf16, w_code_t_bf16, b_code_2d
    )
    features, cnn_code = jax.block_until_ready((features, cnn_code))

    # Reference with the same bf16-rounded operands but f32 math (F.linear /
    # 1x1-conv semantics); remaining delta is only MXU accumulation order.
    wc_r = w_code_t_bf16.astype(jnp.float32)                     # [2048, nef]
    wf_r = w_feat_bf16.astype(jnp.float32)                       # [nef, 768]
    x_r = features_6e.astype(jnp.bfloat16).astype(jnp.float32)
    p_r = pooled.astype(jnp.bfloat16).astype(jnp.float32)
    ref_code = p_r @ wc_r + b_code
    ref_feat = jnp.einsum("oc,bchw->bohw", wf_r, x_r)

    assert cnn_code.shape == (B, nef)
    assert features.shape == (B, nef, H, W)
    assert jnp.allclose(cnn_code, ref_code, atol=1e-2, rtol=1e-2)
    assert jnp.allclose(features, ref_feat, atol=1e-2, rtol=1e-2)

    print("KERNEL_OK")
</pallas_src>

<mosaic_0001>
module attributes {stable_mosaic.version = 11 : i64} {
  func.func @_heads_kernel(%arg0: i32, %arg1: memref<1x768x289xf32, #tpu.memory_space<vmem>>, %arg2: memref<256x768xbf16, #tpu.memory_space<vmem>>, %arg3: memref<1x1x2048xf32, #tpu.memory_space<vmem>>, %arg4: memref<2048x256xbf16, #tpu.memory_space<vmem>>, %arg5: memref<1x256xf32, #tpu.memory_space<vmem>>, %arg6: memref<1x256x289xf32, #tpu.memory_space<vmem>>, %arg7: memref<1x1x256xf32, #tpu.memory_space<vmem>>) attributes {dimension_semantics = [#tpu.dimension_semantics<parallel>], iteration_bounds = array<i64: 2>, scalar_prefetch = 0 : i64, scratch_operands = 0 : i64, tpu.core_type = #tpu.core_type<tc>, window_params = [{transform_indices = @transform_0, window_bounds = array<i64: 1, 768, 289>}, {pipeline_mode = #tpu.pipeline_mode<synchronous>, transform_indices = @transform_1, window_bounds = array<i64: 256, 768>}, {transform_indices = @transform_2, window_bounds = array<i64: 1, 1, 2048>}, {pipeline_mode = #tpu.pipeline_mode<synchronous>, transform_indices = @transform_3, window_bounds = array<i64: 2048, 256>}, {pipeline_mode = #tpu.pipeline_mode<synchronous>, transform_indices = @transform_4, window_bounds = array<i64: 1, 256>}, {transform_indices = @transform_5, window_bounds = array<i64: 1, 256, 289>}, {transform_indices = @transform_6, window_bounds = array<i64: 1, 1, 256>}]} {
    %c0 = arith.constant 0 : index
    %c0_0 = arith.constant 0 : index
    %c0_1 = arith.constant 0 : index
    %0 = vector.load %arg1[%c0, %c0_0, %c0_1] : memref<1x768x289xf32, #tpu.memory_space<vmem>>, vector<1x768x289xf32>
    %1 = vector.shape_cast %0 : vector<1x768x289xf32> to vector<768x289xf32>
    %2 = arith.truncf %1 : vector<768x289xf32> to vector<768x289xbf16>
    %c0_2 = arith.constant 0 : index
    %c0_3 = arith.constant 0 : index
    %3 = vector.load %arg2[%c0_2, %c0_3] : memref<256x768xbf16, #tpu.memory_space<vmem>>, vector<256x768xbf16>
    %cst = arith.constant dense<0.000000e+00> : vector<256x289xf32>
    %4 = tpu.matmul %3, %2, %cst {dimension_numbers = #tpu.dot_dimension_numbers<[1], [0], [0], [1], [0, 0, 1, 1], [], []>} : vector<256x768xbf16>, vector<768x289xbf16>, vector<256x289xf32> -> vector<256x289xf32>
    %c0_4 = arith.constant 0 : index
    %c0_5 = arith.constant 0 : index
    %c0_6 = arith.constant 0 : index
    %5 = vector.load %arg6[%c0_4, %c0_5, %c0_6] : memref<1x256x289xf32, #tpu.memory_space<vmem>>, vector<1x256x289xf32>
    %6 = vector.shape_cast %5 : vector<1x256x289xf32> to vector<256x289xf32>
    %7 = vector.shape_cast %4 : vector<256x289xf32> to vector<1x256x289xf32>
    tpu.vector_store %arg6[%c0_4, %c0_5, %c0_6], %7 {strides = array<i32>} : memref<1x256x289xf32, #tpu.memory_space<vmem>>, vector<1x256x289xf32>,
    %c0_7 = arith.constant 0 : index
    %c0_8 = arith.constant 0 : index
    %c0_9 = arith.constant 0 : index
    %8 = vector.load %arg3[%c0_7, %c0_8, %c0_9] : memref<1x1x2048xf32, #tpu.memory_space<vmem>>, vector<1x1x2048xf32>
    %9 = vector.shape_cast %8 : vector<1x1x2048xf32> to vector<1x2048xf32>
    %10 = arith.truncf %9 : vector<1x2048xf32> to vector<1x2048xbf16>
    %c0_10 = arith.constant 0 : index
    %c0_11 = arith.constant 0 : index
    %11 = vector.load %arg4[%c0_10, %c0_11] : memref<2048x256xbf16, #tpu.memory_space<vmem>>, vector<2048x256xbf16>
    %cst_12 = arith.constant dense<0.000000e+00> : vector<1x256xf32>
    %12 = tpu.matmul %10, %11, %cst_12 {dimension_numbers = #tpu.dot_dimension_numbers<[1], [0], [0], [1], [0, 0, 1, 1], [], []>} : vector<1x2048xbf16>, vector<2048x256xbf16>, vector<1x256xf32> -> vector<1x256xf32>
    %c0_13 = arith.constant 0 : index
    %c0_14 = arith.constant 0 : index
    %13 = vector.load %arg5[%c0_13, %c0_14] : memref<1x256xf32, #tpu.memory_space<vmem>>, vector<1x256xf32>
    %14 = arith.addf %12, %13 : vector<1x256xf32>
    %c0_15 = arith.constant 0 : index
    %c0_16 = arith.constant 0 : index
    %c0_17 = arith.constant 0 : index
    %15 = vector.load %arg7[%c0_15, %c0_16, %c0_17] : memref<1x1x256xf32, #tpu.memory_space<vmem>>, vector<1x1x256xf32>
    %16 = vector.shape_cast %15 : vector<1x1x256xf32> to vector<1x256xf32>
    %17 = vector.shape_cast %14 : vector<1x256xf32> to vector<1x1x256xf32>
    tpu.vector_store %arg7[%c0_15, %c0_16, %c0_17], %17 {strides = array<i32>} : memref<1x1x256xf32, #tpu.memory_space<vmem>>, vector<1x1x256xf32>,
    return
  }
  func.func @transform_0(%arg0: i32) -> (i32, i32, i32) {
    %c0_i32 = arith.constant 0 : i32
    %c0_i32_0 = arith.constant 0 : i32
    %c0_i32_1 = arith.constant 0 : i32
    return %arg0, %c0_i32, %c0_i32_0 : i32, i32, i32
  }
  func.func @transform_1(%arg0: i32) -> (i32, i32) {
    %c0_i32 = arith.constant 0 : i32
    %c0_i32_0 = arith.constant 0 : i32
    %c0_i32_1 = arith.constant 0 : i32
    return %c0_i32, %c0_i32_0 : i32, i32
  }
  func.func @transform_2(%arg0: i32) -> (i32, i32, i32) {
    %c0_i32 = arith.constant 0 : i32
    %c0_i32_0 = arith.constant 0 : i32
    %c0_i32_1 = arith.constant 0 : i32
    return %arg0, %c0_i32, %c0_i32_0 : i32, i32, i32
  }
  func.func @transform_3(%arg0: i32) -> (i32, i32) {
    %c0_i32 = arith.constant 0 : i32
    %c0_i32_0 = arith.constant 0 : i32
    %c0_i32_1 = arith.constant 0 : i32
    return %c0_i32, %c0_i32_0 : i32, i32
  }
  func.func @transform_4(%arg0: i32) -> (i32, i32) {
    %c0_i32 = arith.constant 0 : i32
    %c0_i32_0 = arith.constant 0 : i32
    %c0_i32_1 = arith.constant 0 : i32
    return %c0_i32, %c0_i32_0 : i32, i32
  }
  func.func @transform_5(%arg0: i32) -> (i32, i32, i32) {
    %c0_i32 = arith.constant 0 : i32
    %c0_i32_0 = arith.constant 0 : i32
    %c0_i32_1 = arith.constant 0 : i32
    return %arg0, %c0_i32, %c0_i32_0 : i32, i32, i32
  }
  func.func @transform_6(%arg0: i32) -> (i32, i32, i32) {
    %c0_i32 = arith.constant 0 : i32
    %c0_i32_0 = arith.constant 0 : i32
    %c0_i32_1 = arith.constant 0 : i32
    return %arg0, %c0_i32, %c0_i32_0 : i32, i32, i32
  }
}

</mosaic_0001>

<bundles_post_ra>
// kernel: cnn_encoder_heads_forward.1
= control target key start
LH: loop header
LB: loop body
LE: loop exit
PB: predicated region body
PF: predicated region fallthrough
CT: control target
= control target key end

     0   :  { %s5883_s21 = smov 0   ;;  %s8087_s0 = inlined_call_operand.vmem [shape: f32[2,768,289], index: 0, kind: input, shape index: {}]   ;;  %s8088_s1 = inlined_call_operand.vmem [shape: bf16[256,768], index: 1, kind: input, shape index: {}]   ;;  %s8089_s2 = inlined_call_operand.vmem [shape: f32[2,1,2048], index: 2, kind: input, shape index: {}]   ;;  %s8090_s3 = inlined_call_operand.vmem [shape: bf16[2048,256], index: 3, kind: input, shape index: {}]   ;;  %s8091_s4 = inlined_call_operand.vmem [shape: f32[1,256], index: 4, kind: input, shape index: {}]   ;;  %s8092_s5 = inlined_call_operand.vmem [shape: f32[2,256,289], index: 5, kind: output, shape index: {0}]   ;;  %s8093_s6 = inlined_call_operand.vmem [shape: f32[2,1,256], index: 6, kind: output, shape index: {1}]  }
   0x1 LB: > { %s4545_s22 = sadd.s32 4294967295, %s5845_s21   ;;  %p4549_p0 = scmp.ge.s32.totalorder %s5845_s21, 1  ;;  %s5845_s21 = sphi %s5883_s21, %s17_s21  }
   0x2   : > { %p224_p1 = scmp.lt.s32.totalorder %s5845_s21, 3 }
   0x4   : > { %p225_p2 = pnand %p4549_p0, %p224_p1 }
   0x6   : > { %228 = sbr.rel (%p225_p2) target bundleno = 867 (0x363), region = 40 }
   0xb   : > { %p262_p3 = scmp.lt.s32.totalorder %s4545_s22, 1  ;;  %v5257_v0 = vld [vmem:[%s8088_s1 + $0x4] ss:$24 sps:$4 sm:$0xff]   ;;  %vm2353_vm0 = vcmask 269312  }
   0xc   : > { %v5260_v1 = vld [vmem:[%s8088_s1 + $0xc] ss:$24 sps:$4 sm:$0xff]   ;;  %1321 = vmatprep.mubr.bf16.mxu0 %v5257_v0 }
   0xd   : > { %s8152_s22 = smov (!%p262_p3, %s4545_s22), 1  ;;  %1514 = vmatprep.mubr.bf16.mxu1 %v5260_v1 }
   0xe   : > { %s5244_s27 = smul.u32 2304, %s8152_s22  ;;  %s4551_s24 = sshll.u32 %s8152_s22, 4 }
   0xf   : > { %s5245_s16 = smul.u32 768, %s8152_s22  ;;  %s7194_s29 = scalar_lea.vmem %s8089_s2, %s4551_s24 }
  0x10   : > { %s5903_s30 = scalar_lea.vmem %s8087_s0, %s5244_s27 }
  0x11   : > { %v324_v2 = vld [vmem:[%s5903_s30 + $0x158] sm:$0xff]  ;;  %v327_v3 = vld [vmem:[%s5903_s30 + $0x170] sm:$0xff]  ;;  %v326_v8 = vld [vmem:[%s5903_s30 + $0x168] sm:$0xff]  ;;  %s7074_s20 = scalar_lea.vmem %s8092_s5, %s5245_s16 }
  0x12   : > { %v420_v4 = vld [vmem:[%s5903_s30 + $0x458] sm:$0xff]  ;;  %v591_v5 = vpack.c.bf16 %v327_v3, %v324_v2  ;;  %v423_v6 = vld [vmem:[%s5903_s30 + $0x470] sm:$0xff]  ;;  %v422_v12 = vld [vmem:[%s5903_s30 + $0x468] sm:$0xff] }
  0x13   : > { %v323_v7 = vld [vmem:[%s5903_s30 + $0x150] sm:$0xff]  ;;  %v639_v9 = vpack.c.bf16 %v423_v6, %v420_v4  ;;  %v318_v13 = vld [vmem:[%s5903_s30 + $0x128] sm:$0xff]  ;;  %v321_v15 = vld [vmem:[%s5903_s30 + $0x140] sm:$0xff] }
  0x14   : > { %v590_v10 = vpack.c.bf16 %v326_v8, %v323_v7  ;;  %v419_v11 = vld [vmem:[%s5903_s30 + $0x450] sm:$0xff]  ;;  %1289 = vmatprep.subr.bf16.mxu0 %v591_v5  ;;  %v414_v16 = vld [vmem:[%s5903_s30 + $0x428] sm:$0xff]  ;;  %v417_v17 = vld [vmem:[%s5903_s30 + $0x440] sm:$0xff]  ;;  %v588_v18 = vpack.c.bf16 %v321_v15, %v318_v13 }
  0x15   : > { %v638_v14 = vpack.c.bf16 %v422_v12, %v419_v11  ;;  %1482 = vmatprep.subr.bf16.mxu1 %v639_v9  ;;  %v636_v19 = vpack.c.bf16 %v417_v17, %v414_v16  ;;  %v317_v20 = vld [vmem:[%s5903_s30 + $0x120] sm:$0xff]  ;;  %v320_v21 = vld [vmem:[%s5903_s30 + $0x138] sm:$0xff]  ;;  %v315_v26 = vld [vmem:[%s5903_s30 + $0x110] sm:$0xff] }
  0x16   : > { %1290 = vmatpush1.bf16.msra.mxu0 %v590_v10  ;;  %v413_v22 = vld [vmem:[%s5903_s30 + $0x420] sm:$0xff]  ;;  %v587_v23 = vpack.c.bf16 %v320_v21, %v317_v20  ;;  %v416_v24 = vld [vmem:[%s5903_s30 + $0x438] sm:$0xff]  ;;  %v411_v30 = vld [vmem:[%s5903_s30 + $0x410] sm:$0xff] }
  0x17   : > { %1483 = vmatpush1.bf16.msra.mxu1 %v638_v14  ;;  %v312_v25 = vld [vmem:[%s5903_s30 + $0xf8] sm:$0xff]  ;;  %1291 = vmatprep.subr.bf16.mxu0 %v588_v18  ;;  %v635_v27 = vpack.c.bf16 %v416_v24, %v413_v22  ;;  %v311_v31 = vld [vmem:[%s5903_s30 + $0xf0] sm:$0xff]  ;;  %v314_v33 = vld [vmem:[%s5903_s30 + $0x108] sm:$0xff] }
  0x18   : > { %1484 = vmatprep.subr.bf16.mxu1 %v636_v19  ;;  %v585_v28 = vpack.c.bf16 %v315_v26, %v312_v25  ;;  %v408_v29 = vld [vmem:[%s5903_s30 + $0x3f8] sm:$0xff]  ;;  %v407_v34 = vld [vmem:[%s5903_s30 + $0x3f0] sm:$0xff]  ;;  %v410_v35 = vld [vmem:[%s5903_s30 + $0x408] sm:$0xff]  ;;  %v584_v36 = vpack.c.bf16 %v314_v33, %v311_v31 }
  0x19   : > { %v633_v32 = vpack.c.bf16 %v411_v30, %v408_v29  ;;  %v306_v37 = vld [vmem:[%s5903_s30 + $0xc8] sm:$0xff]  ;;  %v309_v38 = vld [vmem:[%s5903_s30 + $0xe0] sm:$0xff]  ;;  %v632_v40 = vpack.c.bf16 %v410_v35, %v407_v34  ;;  %v308_v44 = vld [vmem:[%s5903_s30 + $0xd8] sm:$0xff] }
  0x1a   : > { %1292 = vmatpush1.bf16.msra.mxu0 %v587_v23  ;;  %v402_v39 = vld [vmem:[%s5903_s30 + $0x3c8] sm:$0xff]  ;;  %v582_v41 = vpack.c.bf16 %v309_v38, %v306_v37  ;;  %v405_v42 = vld [vmem:[%s5903_s30 + $0x3e0] sm:$0xff]  ;;  %v404_v47 = vld [vmem:[%s5903_s30 + $0x3d8] sm:$0xff] }
  0x1b   : > { %1485 = vmatpush1.bf16.msra.mxu1 %v635_v27  ;;  %1293 = vmatprep.subr.bf16.mxu0 %v585_v28  ;;  %v305_v43 = vld [vmem:[%s5903_s30 + $0xc0] sm:$0xff]  ;;  %v630_v45 = vpack.c.bf16 %v405_v42, %v402_v39  ;;  %v300_v48 = vld [vmem:[%s5903_s30 + $0x98] sm:$0xff]  ;;  %v303_v49 = vld [vmem:[%s5903_s30 + $0xb0] sm:$0xff] }
  0x1c   : > { %1486 = vmatprep.subr.bf16.mxu1 %v633_v32  ;;  %v401_v46 = vld [vmem:[%s5903_s30 + $0x3c0] sm:$0xff]  ;;  %v396_v50 = vld [vmem:[%s5903_s30 + $0x398] sm:$0xff]  ;;  %v399_v51 = vld [vmem:[%s5903_s30 + $0x3b0] sm:$0xff]  ;;  %v581_v52 = vpack.c.bf16 %v308_v44, %v305_v43  ;;  %v579_v54 = vpack.c.bf16 %v303_v49, %v300_v48 }
  0x1d   : > { %v629_v53 = vpack.c.bf16 %v404_v47, %v401_v46  ;;  %v299_v55 = vld [vmem:[%s5903_s30 + $0x90] sm:$0xff]  ;;  %v302_v56 = vld [vmem:[%s5903_s30 + $0xa8] sm:$0xff]  ;;  %v627_v58 = vpack.c.bf16 %v399_v51, %v396_v50  ;;  %v297_v61 = vld [vmem:[%s5903_s30 + $0x80] sm:$0xff] }
  0x1e   : > { %1294 = vmatpush1.bf16.msra.mxu0 %v584_v36  ;;  %v395_v57 = vld [vmem:[%s5903_s30 + $0x390] sm:$0xff]  ;;  %v398_v59 = vld [vmem:[%s5903_s30 + $0x3a8] sm:$0xff]  ;;  %v393_v63 = vld [vmem:[%s5903_s30 + $0x380] sm:$0xff]  ;;  %v578_v0 = vpack.c.bf16 %v302_v56, %v299_v55 }
  0x1f   : > { %1487 = vmatpush1.bf16.msra.mxu1 %v632_v40  ;;  %1295 = vmatprep.subr.bf16.mxu0 %v582_v41  ;;  %v294_v60 = vld [vmem:[%s5903_s30 + $0x68] sm:$0xff]  ;;  %v626_v1 = vpack.c.bf16 %v398_v59, %v395_v57  ;;  %v293_v3 = vld [vmem:[%s5903_s30 + $0x60] sm:$0xff]  ;;  %v296_v4 = vld [vmem:[%s5903_s30 + $0x78] sm:$0xff] }
  0x20   : > { %1488 = vmatprep.subr.bf16.mxu1 %v630_v45  ;;  %v390_v62 = vld [vmem:[%s5903_s30 + $0x368] sm:$0xff]  ;;  %v576_v2 = vpack.c.bf16 %v297_v61, %v294_v60  ;;  %v389_v5 = vld [vmem:[%s5903_s30 + $0x360] sm:$0xff]  ;;  %v392_v7 = vld [vmem:[%s5903_s30 + $0x378] sm:$0xff]  ;;  %v575_v12 = vpack.c.bf16 %v296_v4, %v293_v3 }
  0x21   : > { %v624_v6 = vpack.c.bf16 %v393_v63, %v390_v62  ;;  %v288_v8 = vld [vmem:[%s5903_s30 + $0x38] sm:$0xff]  ;;  %v291_v9 = vld [vmem:[%s5903_s30 + $0x50] sm:$0xff]  ;;  %v623_v13 = vpack.c.bf16 %v392_v7, %v389_v5  ;;  %v290_v16 = vld [vmem:[%s5903_s30 + $0x48] sm:$0xff] }
  0x22   : > { %1296 = vmatpush1.bf16.msra.mxu0 %v581_v52  ;;  %v384_v10 = vld [vmem:[%s5903_s30 + $0x338] sm:$0xff]  ;;  %v387_v11 = vld [vmem:[%s5903_s30 + $0x350] sm:$0xff]  ;;  %v573_v14 = vpack.c.bf16 %v291_v9, %v288_v8  ;;  %v386_v19 = vld [vmem:[%s5903_s30 + $0x348] sm:$0xff] }
  0x23   : > { %1489 = vmatpush1.bf16.msra.mxu1 %v629_v53  ;;  %1297 = vmatprep.subr.bf16.mxu0 %v579_v54  ;;  %v287_v15 = vld [vmem:[%s5903_s30 + $0x30] sm:$0xff]  ;;  %v621_v18 = vpack.c.bf16 %v387_v11, %v384_v10  ;;  %v282_v20 = vld [vmem:[%s5903_s30 + $0x8] sm:$0xff]  ;;  %v285_v21 = vld [vmem:[%s5903_s30 + $0x20] sm:$0xff] }
  0x24   : > { %1490 = vmatprep.subr.bf16.mxu1 %v627_v58  ;;  %v383_v17 = vld [vmem:[%s5903_s30 + $0x330] sm:$0xff]  ;;  %v378_v22 = vld [vmem:[%s5903_s30 + $0x308] sm:$0xff]  ;;  %v381_v23 = vld [vmem:[%s5903_s30 + $0x320] sm:$0xff]  ;;  %v572_v24 = vpack.c.bf16 %v290_v16, %v287_v15  ;;  %v570_v26 = vpack.c.bf16 %v285_v21, %v282_v20 }
  0x25   : > { %v620_v25 = vpack.c.bf16 %v386_v19, %v383_v17  ;;  %v281_v27 = vld [vmem:[%s5903_s30] sm:$0xff]  ;;  %v284_v28 = vld [vmem:[%s5903_s30 + $0x18] sm:$0xff]  ;;  %v618_v30 = vpack.c.bf16 %v381_v23, %v378_v22  ;;  %v375_v33 = vld [vmem:[%s5903_s30 + $0x2f0] sm:$0xff] }
  0x26   : > { %1298 = vmatpush1.bf16.msra.mxu0 %v578_v0  ;;  %v377_v29 = vld [vmem:[%s5903_s30 + $0x300] sm:$0xff]  ;;  %v380_v31 = vld [vmem:[%s5903_s30 + $0x318] sm:$0xff]  ;;  %v471_v35 = vld [vmem:[%s5903_s30 + $0x5f0] sm:$0xff]  ;;  %v569_v36 = vpack.c.bf16 %v284_v28, %v281_v27 }
  0x27   : > { %1491 = vmatpush1.bf16.msra.mxu1 %v626_v1  ;;  %1299 = vmatprep.subr.bf16.mxu0 %v576_v2  ;;  %v372_v32 = vld [vmem:[%s5903_s30 + $0x2d8] sm:$0xff]  ;;  %v617_v37 = vpack.c.bf16 %v380_v31, %v377_v29  ;;  %v371_v39 = vld [vmem:[%s5903_s30 + $0x2d0] sm:$0xff]  ;;  %v374_v40 = vld [vmem:[%s5903_s30 + $0x2e8] sm:$0xff] }
  0x28   : > { %1492 = vmatprep.subr.bf16.mxu1 %v624_v6  ;;  %v468_v34 = vld [vmem:[%s5903_s30 + $0x5d8] sm:$0xff]  ;;  %v615_v38 = vpack.c.bf16 %v375_v33, %v372_v32  ;;  %v467_v41 = vld [vmem:[%s5903_s30 + $0x5d0] sm:$0xff]  ;;  %v470_v43 = vld [vmem:[%s5903_s30 + $0x5e8] sm:$0xff]  ;;  %v614_v48 = vpack.c.bf16 %v374_v40, %v371_v39 }
  0x29   : > { %v663_v42 = vpack.c.bf16 %v471_v35, %v468_v34  ;;  %v366_v44 = vld [vmem:[%s5903_s30 + $0x2a8] sm:$0xff]  ;;  %v369_v45 = vld [vmem:[%s5903_s30 + $0x2c0] sm:$0xff]  ;;  %v662_v49 = vpack.c.bf16 %v470_v43, %v467_v41  ;;  %v368_v52 = vld [vmem:[%s5903_s30 + $0x2b8] sm:$0xff] }
  0x2a   : > { %1300 = vmatpush1.bf16.msra.mxu0 %v575_v12  ;;  %v462_v46 = vld [vmem:[%s5903_s30 + $0x5a8] sm:$0xff]  ;;  %v465_v47 = vld [vmem:[%s5903_s30 + $0x5c0] sm:$0xff]  ;;  %v612_v50 = vpack.c.bf16 %v369_v45, %v366_v44  ;;  %v464_v55 = vld [vmem:[%s5903_s30 + $0x5b8] sm:$0xff] }
  0x2b   : > { %1493 = vmatpush1.bf16.msra.mxu1 %v623_v13  ;;  %1301 = vmatprep.subr.bf16.mxu0 %v573_v14  ;;  %v365_v51 = vld [vmem:[%s5903_s30 + $0x2a0] sm:$0xff]  ;;  %v660_v54 = vpack.c.bf16 %v465_v47, %v462_v46  ;;  %v360_v56 = vld [vmem:[%s5903_s30 + $0x278] sm:$0xff]  ;;  %v363_v57 = vld [vmem:[%s5903_s30 + $0x290] sm:$0xff] }
  0x2c   : > { %1494 = vmatprep.subr.bf16.mxu1 %v621_v18  ;;  %v461_v53 = vld [vmem:[%s5903_s30 + $0x5a0] sm:$0xff]  ;;  %v456_v58 = vld [vmem:[%s5903_s30 + $0x578] sm:$0xff]  ;;  %v459_v59 = vld [vmem:[%s5903_s30 + $0x590] sm:$0xff]  ;;  %v611_v60 = vpack.c.bf16 %v368_v52, %v365_v51  ;;  %v609_v62 = vpack.c.bf16 %v363_v57, %v360_v56 }
  0x2d   : > { %v659_v61 = vpack.c.bf16 %v464_v55, %v461_v53  ;;  %v359_v63 = vld [vmem:[%s5903_s30 + $0x270] sm:$0xff]  ;;  %v362_v0 = vld [vmem:[%s5903_s30 + $0x288] sm:$0xff]  ;;  %v657_v2 = vpack.c.bf16 %v459_v59, %v456_v58  ;;  %v357_v5 = vld [vmem:[%s5903_s30 + $0x260] sm:$0xff] }
  0x2e   : > { %1302 = vmatpush1.bf16.msra.mxu0 %v572_v24  ;;  %v455_v1 = vld [vmem:[%s5903_s30 + $0x570] sm:$0xff]  ;;  %v458_v3 = vld [vmem:[%s5903_s30 + $0x588] sm:$0xff]  ;;  %v453_v7 = vld [vmem:[%s5903_s30 + $0x560] sm:$0xff]  ;;  %v608_v8 = vpack.c.bf16 %v362_v0, %v359_v63 }
  0x2f   : > { %1495 = vmatpush1.bf16.msra.mxu1 %v620_v25  ;;  %1303 = vmatprep.subr.bf16.mxu0 %v570_v26  ;;  %v354_v4 = vld [vmem:[%s5903_s30 + $0x248] sm:$0xff]  ;;  %v656_v9 = vpack.c.bf16 %v458_v3, %v455_v1  ;;  %v353_v11 = vld [vmem:[%s5903_s30 + $0x240] sm:$0xff]  ;;  %v356_v12 = vld [vmem:[%s5903_s30 + $0x258] sm:$0xff] }
  0x30   : > { %1496 = vmatprep.subr.bf16.mxu1 %v618_v30  ;;  %v450_v6 = vld [vmem:[%s5903_s30 + $0x548] sm:$0xff]  ;;  %v606_v10 = vpack.c.bf16 %v357_v5, %v354_v4  ;;  %v449_v13 = vld [vmem:[%s5903_s30 + $0x540] sm:$0xff]  ;;  %v452_v15 = vld [vmem:[%s5903_s30 + $0x558] sm:$0xff]  ;;  %v605_v20 = vpack.c.bf16 %v356_v12, %v353_v11 }
  0x31   : > { %v654_v14 = vpack.c.bf16 %v453_v7, %v450_v6  ;;  %v348_v16 = vld [vmem:[%s5903_s30 + $0x218] sm:$0xff]  ;;  %v351_v17 = vld [vmem:[%s5903_s30 + $0x230] sm:$0xff]  ;;  %v653_v21 = vpack.c.bf16 %v452_v15, %v449_v13  ;;  %v350_v24 = vld [vmem:[%s5903_s30 + $0x228] sm:$0xff] }
  0x32   : > { %1304 = vmatpush1.bf16.msra.mxu0 %v569_v36  ;;  %v444_v18 = vld [vmem:[%s5903_s30 + $0x518] sm:$0xff]  ;;  %v447_v19 = vld [vmem:[%s5903_s30 + $0x530] sm:$0xff]  ;;  %v603_v22 = vpack.c.bf16 %v351_v17, %v348_v16  ;;  %v446_v27 = vld [vmem:[%s5903_s30 + $0x528] sm:$0xff] }
  0x33   : > { %1497 = vmatpush1.bf16.msra.mxu1 %v617_v37  ;;  %1305 = vmatprep.subr.bf16.mxu0 %v615_v38  ;;  %v347_v23 = vld [vmem:[%s5903_s30 + $0x210] sm:$0xff]  ;;  %v651_v26 = vpack.c.bf16 %v447_v19, %v444_v18  ;;  %v342_v28 = vld [vmem:[%s5903_s30 + $0x1e8] sm:$0xff]  ;;  %v345_v29 = vld [vmem:[%s5903_s30 + $0x200] sm:$0xff] }
  0x34   : > { %1498 = vmatprep.subr.bf16.mxu1 %v663_v42  ;;  %v443_v25 = vld [vmem:[%s5903_s30 + $0x510] sm:$0xff]  ;;  %v438_v30 = vld [vmem:[%s5903_s30 + $0x4e8] sm:$0xff]  ;;  %v441_v31 = vld [vmem:[%s5903_s30 + $0x500] sm:$0xff]  ;;  %v602_v32 = vpack.c.bf16 %v350_v24, %v347_v23  ;;  %v600_v37 = vpack.c.bf16 %v345_v29, %v342_v28 }
  0x35   : > { %v341_v33 = vld [vmem:[%s5903_s30 + $0x1e0] sm:$0xff]  ;;  %v344_v34 = vld [vmem:[%s5903_s30 + $0x1f8] sm:$0xff]  ;;  %v650_v36 = vpack.c.bf16 %v446_v27, %v443_v25  ;;  %v339_v40 = vld [vmem:[%s5903_s30 + $0x1d0] sm:$0xff]  ;;  %v648_v41 = vpack.c.bf16 %v441_v31, %v438_v30 }
  0x36   : > { %1306 = vmatpush2.bf16.msra.mxu0 %v614_v48  ;;  %v437_v35 = vld [vmem:[%s5903_s30 + $0x4e0] sm:$0xff]  ;;  %v440_v38 = vld [vmem:[%s5903_s30 + $0x4f8] sm:$0xff]  ;;  %v435_v43 = vld [vmem:[%s5903_s30 + $0x4d0] sm:$0xff]  ;;  %v599_v44 = vpack.c.bf16 %v344_v34, %v341_v33 }
  0x37   : > { %1499 = vmatpush2.bf16.msra.mxu1 %v662_v49  ;;  %1307 = vmatprep.subr.bf16.mxu0 %v612_v50  ;;  %v336_v39 = vld [vmem:[%s5903_s30 + $0x1b8] sm:$0xff]  ;;  %v335_v45 = vld [vmem:[%s5903_s30 + $0x1b0] sm:$0xff]  ;;  %v338_v46 = vld [vmem:[%s5903_s30 + $0x1c8] sm:$0xff]  ;;  %v647_v48 = vpack.c.bf16 %v440_v38, %v437_v35 }
  0x38   : > { %1500 = vmatprep.subr.bf16.mxu1 %v660_v54  ;;  %v432_v42 = vld [vmem:[%s5903_s30 + $0x4b8] sm:$0xff]  ;;  %v431_v47 = vld [vmem:[%s5903_s30 + $0x4b0] sm:$0xff]  ;;  %v597_v49 = vpack.c.bf16 %v339_v40, %v336_v39  ;;  %v434_v50 = vld [vmem:[%s5903_s30 + $0x4c8] sm:$0xff]  ;;  %v596_v56 = vpack.c.bf16 %v338_v46, %v335_v45 }
  0x39   : > { %v330_v51 = vld [vmem:[%s5903_s30 + $0x188] sm:$0xff]  ;;  %v333_v52 = vld [vmem:[%s5903_s30 + $0x1a0] sm:$0xff]  ;;  %v645_v53 = vpack.c.bf16 %v435_v43, %v432_v42  ;;  %v644_v57 = vpack.c.bf16 %v434_v50, %v431_v47  ;;  %v428_v63 = vld [vmem:[%s5903_s30 + $0x498] sm:$0xff] }
  0x3a   : > { %1308 = vmatpush2.bf16.msra.mxu0 %v611_v60  ;;  %v426_v54 = vld [vmem:[%s5903_s30 + $0x488] sm:$0xff]  ;;  %v429_v55 = vld [vmem:[%s5903_s30 + $0x4a0] sm:$0xff]  ;;  %v594_v58 = vpack.c.bf16 %v333_v52, %v330_v51  ;;  %v332_v60 = vld [vmem:[%s5903_s30 + $0x198] sm:$0xff] }
  0x3b   : > { %1501 = vmatpush2.bf16.msra.mxu1 %v659_v61  ;;  %1309 = vmatprep.subr.bf16.mxu0 %v609_v62  ;;  %v329_v59 = vld [vmem:[%s5903_s30 + $0x180] sm:$0xff]  ;;  %v642_v62 = vpack.c.bf16 %v429_v55, %v426_v54  ;;  %v516_v0 = vld [vmem:[%s5903_s30 + $0x758] sm:$0xff]  ;;  %v519_v1 = vld [vmem:[%s5903_s30 + $0x770] sm:$0xff] }
  0x3c   : > { %1502 = vmatprep.subr.bf16.mxu1 %v657_v2  ;;  %v425_v61 = vld [vmem:[%s5903_s30 + $0x480] sm:$0xff]  ;;  %v376_v3 = vld [vmem:[%s5903_s30 + $0x2f8] sm:$0xff]  ;;  %v593_v4 = vpack.c.bf16 %v332_v60, %v329_v59  ;;  %v515_v5 = vld [vmem:[%s5903_s30 + $0x750] sm:$0xff] }
  0x3d   : > { %v373_v2 = vld [vmem:[%s5903_s30 + $0x2e0] sm:$0xff]  ;;  %v641_v6 = vpack.c.bf16 %v428_v63, %v425_v61  ;;  %v328_v13 = vld [vmem:[%s5903_s30 + $0x178] sm:$0xff]  ;;  %v5261_v16 = vld [vmem:[%s8088_s1 + $0x34] ss:$24 sps:$4 sm:$0xff]  }
  0x3e   : > { %1310 = vmatpush2.bf16.msra.mxu0 %v608_v8  ;;  %v5255_v7 = vld [vmem:[%s8088_s1] ss:$24 sps:$4 sm:$0xff]   ;;  %v687_v8 = vpack.c.bf16 %v519_v1, %v516_v0  ;;  %v616_v12 = vpack.c.bf16 %v376_v3, %v373_v2  ;;  %v367_v18 = vld [vmem:[%s5903_s30 + $0x2b0] sm:$0xff]  ;;  %v322_v28 = vld [vmem:[%s5903_s30 + $0x148] sm:$0xff] }
  0x3f   : > { %1503 = vmatpush2.bf16.msra.mxu1 %v656_v9  ;;  %1311 = vmatprep.subr.bf16.mxu0 %v606_v10  ;;  %v518_v9 = vld [vmem:[%s5903_s30 + $0x768] sm:$0xff]  ;;  %v325_v10 = vld [vmem:[%s5903_s30 + $0x160] sm:$0xff]  ;;  %v512_v23 = vld [vmem:[%s5903_s30 + $0x738] sm:$0xff] }
  0x40   : > { %1504 = vmatprep.subr.bf16.mxu1 %v654_v14  ;;  %v5258_v11 = vld [vmem:[%s8088_s1 + $0x8] ss:$24 sps:$4 sm:$0xff]   ;;  %v686_v19 = vpack.c.bf16 %v518_v9, %v515_v5  ;;  %v504_v24 = vld [vmem:[%s5903_s30 + $0x6f8] sm:$0xff]  ;;  %v319_v27 = vld [vmem:[%s5903_s30 + $0x130] sm:$0xff] }
  0x41   : > { %v510_v14 = vld [vmem:[%s5903_s30 + $0x728] sm:$0xff]  ;;  %v513_v15 = vld [vmem:[%s5903_s30 + $0x740] sm:$0xff]  ;;  %v364_v31 = vld [vmem:[%s5903_s30 + $0x298] sm:$0xff] }
  0x42   : > { %1312 = vmatpush2.bf16.msra.mxu0 %v605_v20  ;;  %v509_v17 = vld [vmem:[%s5903_s30 + $0x720] sm:$0xff]  ;;  %v5263_v20 = vld [vmem:[%s8088_s1 + $0x3c] ss:$24 sps:$4 sm:$0xff]   ;;  %v684_v25 = vpack.c.bf16 %v513_v15, %v510_v14  ;;  %v5265_v34 = vld [vmem:[%s8088_s1 + $0x30] ss:$24 sps:$4 sm:$0xff]  }
  0x43   : > { %1505 = vmatpush2.bf16.msra.mxu1 %v653_v21  ;;  %1313 = vmatprep.subr.bf16.mxu0 %v603_v22  ;;  %v370_v21 = vld [vmem:[%s5903_s30 + $0x2c8] sm:$0xff]  ;;  %v592_v22 = vpack.c.bf16 %v328_v13, %v325_v10  ;;  %v361_v30 = vld [vmem:[%s5903_s30 + $0x280] sm:$0xff]  ;;  %v503_v33 = vld [vmem:[%s5903_s30 + $0x6f0] sm:$0xff] }
  0x44   : > { %1506 = vmatprep.subr.bf16.mxu1 %v651_v26  ;;  %v507_v26 = vld [vmem:[%s5903_s30 + $0x710] sm:$0xff]  ;;  %v613_v29 = vpack.c.bf16 %v370_v21, %v367_v18  ;;  %v5267_v39 = vld [vmem:[%s8088_s1 + $0x64] ss:$24 sps:$4 sm:$0xff]   ;;  %v498_v40 = vld [vmem:[%s5903_s30 + $0x6c8] sm:$0xff] }
  0x45   : > { %v681_v35 = vpack.c.bf16 %v507_v26, %v504_v24  ;;  %v5266_v38 = vld [vmem:[%s8088_s1 + $0x38] ss:$24 sps:$4 sm:$0xff]   ;;  %v5269_v42 = vld [vmem:[%s8088_s1 + $0x6c] ss:$24 sps:$4 sm:$0xff]   ;;  %v5275_v9 = vld [vmem:[%s8088_s1 + $0x9c] ss:$24 sps:$4 sm:$0xff]  }
  0x46   : > { %1314 = vmatpush2.bf16.msra.mxu0 %v602_v32  ;;  %v683_v32 = vpack.c.bf16 %v512_v23, %v509_v17  ;;  %v501_v43 = vld [vmem:[%s5903_s30 + $0x6e0] sm:$0xff]  ;;  %v316_v45 = vld [vmem:[%s5903_s30 + $0x118] sm:$0xff]  ;;  %v355_v47 = vld [vmem:[%s5903_s30 + $0x250] sm:$0xff] }
  0x47   : > { %1507 = vmatpush2.bf16.msra.mxu1 %v650_v36  ;;  %1315 = vmatprep.subr.bf16.mxu0 %v600_v37  ;;  %v506_v36 = vld [vmem:[%s5903_s30 + $0x708] sm:$0xff]  ;;  %v589_v37 = vpack.c.bf16 %v322_v28, %v319_v27  ;;  %v497_v46 = vld [vmem:[%s5903_s30 + $0x6c0] sm:$0xff]  ;;  %v500_v50 = vld [vmem:[%s5903_s30 + $0x6d8] sm:$0xff]  ;;  %v678_v51 = vpack.c.bf16 %v501_v43, %v498_v40 }
  0x48   : > { %1508 = vmatprep.subr.bf16.mxu1 %v648_v41  ;;  %v610_v41 = vpack.c.bf16 %v364_v31, %v361_v30  ;;  %v492_v52 = vld [vmem:[%s5903_s30 + $0x698] sm:$0xff]  ;;  %v495_v54 = vld [vmem:[%s5903_s30 + $0x6b0] sm:$0xff]  ;;  %v494_v59 = vld [vmem:[%s5903_s30 + $0x6a8] sm:$0xff]  ;;  %v677_v61 = vpack.c.bf16 %v500_v50, %v497_v46 }
  0x49   : > { %v5271_v60 = vld [vmem:[%s8088_s1 + $0x60] ss:$24 sps:$4 sm:$0xff]   ;;  %v675_v2 = vpack.c.bf16 %v495_v54, %v492_v52  ;;  %v5277_v17 = vld [vmem:[%s8088_s1 + $0x90] ss:$24 sps:$4 sm:$0xff]   ;;  %v5279_v30 = vld [vmem:[%s8088_s1 + $0xc4] ss:$24 sps:$4 sm:$0xff]  }
  0x4a   : > { %1316 = vmatpush2.bf16.msra.mxu0 %v599_v44  ;;  %v313_v44 = vld [vmem:[%s5903_s30 + $0x100] sm:$0xff]  ;;  %v352_v1 = vld [vmem:[%s5903_s30 + $0x238] sm:$0xff]  ;;  %v474_v21 = vld [vmem:[%s5903_s30 + $0x608] sm:$0xff] }
  0x4b   : > { %1509 = vmatpush2.bf16.msra.mxu1 %v647_v48  ;;  %1317 = vmatprep.subr.bf16.mxu0 %v597_v49  ;;  %v358_v48 = vld [vmem:[%s5903_s30 + $0x268] sm:$0xff]  ;;  %v680_v49 = vpack.c.bf16 %v506_v36, %v503_v33  ;;  %v489_v63 = vld [vmem:[%s5903_s30 + $0x680] sm:$0xff]  ;;  %v480_v14 = vld [vmem:[%s5903_s30 + $0x638] sm:$0xff] }
  0x4c   : > { %1510 = vmatprep.subr.bf16.mxu1 %v645_v53  ;;  %v586_v53 = vpack.c.bf16 %v316_v45, %v313_v44  ;;  %v607_v55 = vpack.c.bf16 %v358_v48, %v355_v47  ;;  %v349_v0 = vld [vmem:[%s5903_s30 + $0x220] sm:$0xff]  ;;  %v346_v26 = vld [vmem:[%s5903_s30 + $0x208] sm:$0xff]  ;;  %v295_v28 = vld [vmem:[%s5903_s30 + $0x70] sm:$0xff] }
  0x4d   : > { %v604_v5 = vpack.c.bf16 %v352_v1, %v349_v0  ;;  %v477_v24 = vld [vmem:[%s5903_s30 + $0x620] sm:$0xff]  ;;  %v476_v36 = vld [vmem:[%s5903_s30 + $0x618] sm:$0xff]  ;;  %v563_v44 = vld [vmem:[%s5903_s30 + $0x8d0] sm:$0xff] }
  0x4e   : > { %1318 = vmatpush2.bf16.msra.mxu0 %v596_v56  ;;  %v307_v56 = vld [vmem:[%s5903_s30 + $0xd0] sm:$0xff]  ;;  %v566_v45 = vld [vmem:[%s5903_s30 + $0x8e8] sm:$0xff]  ;;  %v561_v48 = vld [vmem:[%s5903_s30 + $0x8c0] sm:$0xff] }
  0x4f   : > { %1511 = vmatpush2.bf16.msra.mxu1 %v644_v57  ;;  %1319 = vmatprep.subr.bf16.mxu0 %v594_v58  ;;  %v310_v57 = vld [vmem:[%s5903_s30 + $0xe8] sm:$0xff]  ;;  %v491_v58 = vld [vmem:[%s5903_s30 + $0x690] sm:$0xff]  ;;  %v340_v50 = vld [vmem:[%s5903_s30 + $0x1d8] sm:$0xff] }
  0x50   : > { %1512 = vmatprep.subr.bf16.mxu1 %v642_v62  ;;  %v486_v62 = vld [vmem:[%s5903_s30 + $0x668] sm:$0xff]  ;;  %v583_v3 = vpack.c.bf16 %v310_v57, %v307_v56  ;;  %v674_v10 = vpack.c.bf16 %v494_v59, %v491_v58  ;;  %v5287_v46 = vld [vmem:[%s8088_s1 + $0xfc] ss:$24 sps:$4 sm:$0xff]   ;;  %v557_v54 = vld [vmem:[%s5903_s30 + $0x8a0] sm:$0xff] }
  0x51   : > { %v672_v13 = vpack.c.bf16 %v489_v63, %v486_v62  ;;  %v558_v47 = vld [vmem:[%s5903_s30 + $0x8a8] sm:$0xff]  ;;  %v292_v52 = vld [vmem:[%s5903_s30 + $0x58] sm:$0xff]  ;;  %v551_v63 = vld [vmem:[%s5903_s30 + $0x870] sm:$0xff] }
  0x52   : > { %1320 = vmatpush2.bf16.msra.mxu0 %v593_v4  ;;  %v301_v4 = vld [vmem:[%s5903_s30 + $0xa0] sm:$0xff]  ;;  %v708_v56 = vpack.c.bf16 %v561_v48, %v558_v47  ;;  %v560_v57 = vld [vmem:[%s5903_s30 + $0x8b8] sm:$0xff] }
  0x53   : > { %1513 = vmatpush2.bf16.msra.mxu1 %v641_v6  ;;  %1675 = vmatprep.subr.bf16.mxu0 %v687_v8  ;;  %v304_v6 = vld [vmem:[%s5903_s30 + $0xb8] sm:$0xff]  ;;  %v5273_v8 = vld [vmem:[%s8088_s1 + $0x94] ss:$24 sps:$4 sm:$0xff]   ;;  %v707_v62 = vpack.c.bf16 %v560_v57, %v557_v54  ;;  %v5308_v57 = vld [vmem:[%s8088_s1 + $0x188] ss:$24 sps:$4 sm:$0xff]  }
  0x54   : > { %4908 = vmatprep.subr.bf16.mxu1 %v616_v12  ;;  %v488_v12 = vld [vmem:[%s5903_s30 + $0x678] sm:$0xff]  ;;  %v580_v15 = vpack.c.bf16 %v304_v6, %v301_v4  ;;  %v546_v4 = vld [vmem:[%s5903_s30 + $0x848] sm:$0xff] }
  0x55   : > { %1322 = vmatmul.mubr.bf16.vlgmr.msra.gmra.mxu0 %v5255_v7  ;;  %v5272_v7 = vld [vmem:[%s8088_s1 + $0x68] ss:$24 sps:$4 sm:$0xff]   ;;  %v552_v59 = vld [vmem:[%s5903_s30 + $0x878] sm:$0xff]  ;;  %v5293_v6 = vld [vmem:[%s8088_s1 + $0x12c] ss:$24 sps:$4 sm:$0xff]  }
  0x56   : > { %1515 = vmatmul.mubr.bf16.vlgmr.msra.gmra.mxu1 %v5258_v11  ;;  %1676 = vmatpush1.bf16.msra.mxu0 %v686_v19  ;;  %v485_v11 = vld [vmem:[%s5903_s30 + $0x660] sm:$0xff]  ;;  %v479_v19 = vld [vmem:[%s5903_s30 + $0x630] sm:$0xff] }
  0x57   : > { %4909 = vmatpush3.bf16.msra.mxu1 %v592_v22  ;;  %1331 = vmatprep.mubr.bf16.mxu0 %v5261_v16  ;;  %v483_v16 = vld [vmem:[%s5903_s30 + $0x650] sm:$0xff]  ;;  %v671_v18 = vpack.c.bf16 %v488_v12, %v485_v11  ;;  %v334_v12 = vld [vmem:[%s5903_s30 + $0x1a8] sm:$0xff] }
  0x58   : > { %1524 = vmatprep.mubr.bf16.mxu1 %v5263_v20  ;;  %1677 = vmatprep.subr.bf16.mxu0 %v684_v25  ;;  %v482_v20 = vld [vmem:[%s5903_s30 + $0x648] sm:$0xff]  ;;  %v5278_v22 = vld [vmem:[%s8088_s1 + $0x98] ss:$24 sps:$4 sm:$0xff]   ;;  %v669_v23 = vpack.c.bf16 %v483_v16, %v480_v14 }
  0x59   : > { %4910 = vmatprep.subr.bf16.mxu1 %v613_v29  ;;  %v343_v25 = vld [vmem:[%s5903_s30 + $0x1f0] sm:$0xff]  ;;  %v298_v29 = vld [vmem:[%s5903_s30 + $0x88] sm:$0xff]  ;;  %v668_v33 = vpack.c.bf16 %v482_v20, %v479_v19 }
  0x5a   : > { %1678 = vmatpush1.bf16.msra.mxu0 %v683_v32  ;;  %v601_v27 = vpack.c.bf16 %v346_v26, %v343_v25  ;;  %v577_v31 = vpack.c.bf16 %v298_v29, %v295_v28  ;;  %v5281_v32 = vld [vmem:[%s8088_s1 + $0xcc] ss:$24 sps:$4 sm:$0xff]   ;;  %v5290_v0 = vld [vmem:[%s8088_s1 + $0xf8] ss:$24 sps:$4 sm:$0xff]   ;;  %v5296_v26 = vld [vmem:[%s8088_s1 + $0x128] ss:$24 sps:$4 sm:$0xff]  }
  0x5b   : > { %1679 = vmatprep.subr.bf16.mxu0 %v681_v35  ;;  %4911 = vmatpush3.bf16.msra.mxu1 %v589_v37  ;;  %v473_v35 = vld [vmem:[%s5903_s30 + $0x600] sm:$0xff]  ;;  %v564_v37 = vld [vmem:[%s5903_s30 + $0x8d8] sm:$0xff]  ;;  %v331_v11 = vld [vmem:[%s5903_s30 + $0x190] sm:$0xff] }
  0x5c   : > { %4912 = vmatprep.subr.bf16.mxu1 %v610_v41  ;;  %v665_v40 = vpack.c.bf16 %v476_v36, %v473_v35  ;;  %v5284_v41 = vld [vmem:[%s8088_s1 + $0xc8] ss:$24 sps:$4 sm:$0xff]   ;;  %v539_v20 = vld [vmem:[%s5903_s30 + $0x810] sm:$0xff]  ;;  %v528_v36 = vld [vmem:[%s5903_s30 + $0x7b8] sm:$0xff] }
  0x5d   : > { %1332 = vmatmul.mubr.bf16.gmra.mxu0 %v5265_v34  ;;  %v666_v34 = vpack.c.bf16 %v477_v24, %v474_v21  ;;  %v286_v16 = vld [vmem:[%s5903_s30 + $0x28] sm:$0xff]  ;;  %v537_v25 = vld [vmem:[%s5903_s30 + $0x800] sm:$0xff]  ;;  %v5299_v28 = vld [vmem:[%s8088_s1 + $0x15c] ss:$24 sps:$4 sm:$0xff]  }
  0x5e   : > { %1525 = vmatmul.mubr.bf16.gmra.mxu1 %v5266_v38  ;;  %1341 = vmatprep.mubr.bf16.mxu0 %v5267_v39  ;;  %v567_v38 = vld [vmem:[%s5903_s30 + $0x8f0] sm:$0xff]  ;;  %v5283_v39 = vld [vmem:[%s8088_s1 + $0xc0] ss:$24 sps:$4 sm:$0xff]   ;;  %v534_v24 = vld [vmem:[%s5903_s30 + $0x7e8] sm:$0xff] }
  0x5f   : > { %1534 = vmatprep.mubr.bf16.mxu1 %v5269_v42  ;;  %1680 = vmatpush1.bf16.msra.mxu0 %v680_v49  ;;  %v5285_v42 = vld [vmem:[%s8088_s1 + $0xf4] ss:$24 sps:$4 sm:$0xff]   ;;  %v711_v43 = vpack.c.bf16 %v567_v38, %v564_v37  ;;  %v337_v49 = vld [vmem:[%s5903_s30 + $0x1c0] sm:$0xff] }
  0x60   : > { %1681 = vmatprep.subr.bf16.mxu0 %v678_v51  ;;  %4913 = vmatpush3.bf16.msra.mxu1 %v586_v53  ;;  %v289_v51 = vld [vmem:[%s5903_s30 + $0x40] sm:$0xff]  ;;  %v710_v53 = vpack.c.bf16 %v566_v45, %v563_v44  ;;  %v531_v37 = vld [vmem:[%s5903_s30 + $0x7d0] sm:$0xff] }
  0x61   : > { %4914 = vmatprep.subr.bf16.mxu1 %v607_v55  ;;  %v598_v55 = vpack.c.bf16 %v340_v50, %v337_v49  ;;  %v574_v58 = vpack.c.bf16 %v292_v52, %v289_v51  ;;  %v525_v44 = vld [vmem:[%s5903_s30 + $0x7a0] sm:$0xff]  ;;  %v5302_v45 = vld [vmem:[%s8088_s1 + $0x158] ss:$24 sps:$4 sm:$0xff]  }
  0x62   : > { %v5305_v47 = vld [vmem:[%s8088_s1 + $0x18c] ss:$24 sps:$4 sm:$0xff]   ;;  %v524_v51 = vld [vmem:[%s5903_s30 + $0x798] sm:$0xff] }
  0x63   : > { %1682 = vmatpush1.bf16.msra.mxu0 %v677_v61  ;;  %v5289_v61 = vld [vmem:[%s8088_s1 + $0xf0] ss:$24 sps:$4 sm:$0xff]   ;;  %v521_v50 = vld [vmem:[%s5903_s30 + $0x780] sm:$0xff] }
  0x64   : > { %1683 = vmatprep.subr.bf16.mxu0 %v675_v2  ;;  %4915 = vmatpush3.bf16.msra.mxu1 %v583_v3  ;;  %v554_v2 = vld [vmem:[%s5903_s30 + $0x888] sm:$0xff]  ;;  %v5291_v3 = vld [vmem:[%s8088_s1 + $0x124] ss:$24 sps:$4 sm:$0xff]   ;;  %v689_v54 = vpack.c.bf16 %v524_v51, %v521_v50  ;;  %v6391_v50 = vld [vmem:[%s8088_s1 + $0x40] ss:$24 sps:$4 sm:$0xff]  }
  0x65   : > { %1342 = vmatmul.mubr.bf16.gmra.mxu0 %v5271_v60  ;;  %4916 = vmatprep.subr.bf16.mxu1 %v604_v5  ;;  %v555_v60 = vld [vmem:[%s5903_s30 + $0x890] sm:$0xff]  ;;  %v549_v5 = vld [vmem:[%s5903_s30 + $0x860] sm:$0xff] }
  0x66   : > { %1535 = vmatmul.mubr.bf16.gmra.mxu1 %v5272_v7  ;;  %1351 = vmatprep.mubr.bf16.mxu0 %v5273_v8  ;;  %v705_v1 = vpack.c.bf16 %v555_v60, %v552_v59  ;;  %v545_v7 = vld [vmem:[%s5903_s30 + $0x840] sm:$0xff]  ;;  %v548_v8 = vld [vmem:[%s5903_s30 + $0x858] sm:$0xff]  ;;  %v702_v14 = vpack.c.bf16 %v549_v5, %v546_v4  ;;  %v5313_v60 = vld [vmem:[%s8088_s1 + $0x1b0] ss:$24 sps:$4 sm:$0xff]  }
  0x67   : > { %1544 = vmatprep.mubr.bf16.mxu1 %v5275_v9  ;;  %1684 = vmatpush1.bf16.msra.mxu0 %v674_v10  ;;  %v704_v9 = vpack.c.bf16 %v554_v2, %v551_v63  ;;  %v540_v10 = vld [vmem:[%s5903_s30 + $0x818] sm:$0xff]  ;;  %v701_v19 = vpack.c.bf16 %v548_v8, %v545_v7  ;;  %v469_v52 = vld [vmem:[%s5903_s30 + $0x5e0] sm:$0xff]  ;;  %v5321_v2 = vld [vmem:[%s8088_s1 + $0x214] ss:$24 sps:$4 sm:$0xff]  }
  0x68   : > { %1685 = vmatprep.subr.bf16.mxu0 %v672_v13  ;;  %4917 = vmatpush3.bf16.msra.mxu1 %v580_v15  ;;  %v283_v13 = vld [vmem:[%s5903_s30 + $0x10] sm:$0xff]  ;;  %v595_v15 = vpack.c.bf16 %v334_v12, %v331_v11  ;;  %v5317_v63 = vld [vmem:[%s8088_s1 + $0x1ec] ss:$24 sps:$4 sm:$0xff]   ;;  %v6286_v8 = vld [vmem:[%s8088_s1 + $0x240] ss:$24 sps:$4 sm:$0xff]  }
  0x69   : > { %4918 = vmatprep.subr.bf16.mxu1 %v601_v27  ;;  %v5297_v27 = vld [vmem:[%s8088_s1 + $0x154] ss:$24 sps:$4 sm:$0xff]   ;;  %v6268_v4 = vld [vmem:[%s8088_s1 + $0x210] ss:$24 sps:$4 sm:$0xff]  }
  0x6a   : > { %v5311_v59 = vld [vmem:[%s8088_s1 + $0x1bc] ss:$24 sps:$4 sm:$0xff]   ;;  %v5326_v5 = vld [vmem:[%s8088_s1 + $0x218] ss:$24 sps:$4 sm:$0xff]   ;;  %v5329_v7 = vld [vmem:[%s8088_s1 + $0x24c] ss:$24 sps:$4 sm:$0xff]  }
  0x6b   : > { %1686 = vmatpush1.bf16.msra.mxu0 %v671_v18  ;;  %v571_v18 = vpack.c.bf16 %v286_v16, %v283_v13  ;;  %v5335_v11 = vld [vmem:[%s8088_s1 + $0x27c] ss:$24 sps:$4 sm:$0xff]   ;;  %v6304_v12 = vld [vmem:[%s8088_s1 + $0x270] ss:$24 sps:$4 sm:$0xff]   ;;  %v6322_v16 = vld [vmem:[%s8088_s1 + $0x2a0] ss:$24 sps:$4 sm:$0xff]  }
  0x6c   : > { %1687 = vmatprep.subr.bf16.mxu0 %v669_v23  ;;  %4919 = vmatpush3.bf16.msra.mxu1 %v577_v31  ;;  %v5295_v23 = vld [vmem:[%s8088_s1 + $0x120] ss:$24 sps:$4 sm:$0xff]  }
  0x6d   : > { %1352 = vmatmul.mubr.bf16.gmra.mxu0 %v5277_v17  ;;  %4920 = vmatprep.subr.bf16.mxu1 %v598_v55  ;;  %v543_v17 = vld [vmem:[%s5903_s30 + $0x830] sm:$0xff]  ;;  %v565_v31 = vld [vmem:[%s5903_s30 + $0x8e0] sm:$0xff] }
  0x6e   : > { %1545 = vmatmul.mubr.bf16.gmra.mxu1 %v5278_v22  ;;  %1361 = vmatprep.mubr.bf16.mxu0 %v5279_v30  ;;  %v699_v21 = vpack.c.bf16 %v543_v17, %v540_v10  ;;  %v542_v22 = vld [vmem:[%s5903_s30 + $0x828] sm:$0xff]  ;;  %v533_v30 = vld [vmem:[%s5903_s30 + $0x7e0] sm:$0xff]  ;;  %v5338_v13 = vld [vmem:[%s8088_s1 + $0x278] ss:$24 sps:$4 sm:$0xff]  }
  0x6f   : > { %1554 = vmatprep.mubr.bf16.mxu1 %v5281_v32  ;;  %1688 = vmatpush1.bf16.msra.mxu0 %v668_v33  ;;  %v698_v29 = vpack.c.bf16 %v542_v22, %v539_v20  ;;  %v568_v32 = vld [vmem:[%s5903_s30 + $0x8f8] sm:$0xff]  ;;  %v696_v33 = vpack.c.bf16 %v537_v25, %v534_v24  ;;  %v6294_v10 = vld [vmem:[%s8088_s1 + $0x274] ss:$24 sps:$4 sm:$0xff]   ;;  %v5344_v17 = vld [vmem:[%s8088_s1 + $0x2a8] ss:$24 sps:$4 sm:$0xff]  }
  0x70   : > { %1689 = vmatprep.subr.bf16.mxu0 %v666_v34  ;;  %4921 = vmatpush3.bf16.msra.mxu1 %v574_v58  ;;  %v536_v34 = vld [vmem:[%s5903_s30 + $0x7f8] sm:$0xff]  ;;  %v712_v35 = vpack.c.bf16 %v568_v32, %v565_v31  ;;  %v5309_v58 = vld [vmem:[%s8088_s1 + $0x1b4] ss:$24 sps:$4 sm:$0xff]   ;;  %v6340_v20 = vld [vmem:[%s8088_s1 + $0x2d0] ss:$24 sps:$4 sm:$0xff]  }
  0x71   : > { %4922 = vmatprep.subr.bf16.mxu1 %v595_v15  ;;  %v695_v38 = vpack.c.bf16 %v536_v34, %v533_v30  ;;  %v5341_v15 = vld [vmem:[%s8088_s1 + $0x2ac] ss:$24 sps:$4 sm:$0xff]   ;;  %v424_v24 = vld [vmem:[%s5903_s30 + $0x478] sm:$0xff]  ;;  %v559_v31 = vld [vmem:[%s5903_s30 + $0x8b0] sm:$0xff] }
  0x72   : > { %v6348_v22 = vld [vmem:[%s8088_s1 + $0x14] ss:$24 sps:$4 sm:$0xff]   ;;  %v517_v25 = vld [vmem:[%s5903_s30 + $0x760] sm:$0xff] }
  0x73   : > { %1690 = vmatpush1.bf16.msra.mxu0 %v665_v40  ;;  %v693_v40 = vpack.c.bf16 %v531_v37, %v528_v36  ;;  %v466_v30 = vld [vmem:[%s5903_s30 + $0x5c8] sm:$0xff]  ;;  %v415_v34 = vld [vmem:[%s5903_s30 + $0x430] sm:$0xff] }
  0x74   : > { %1691 = vmatprep.subr.bf16.mxu0 %v711_v43  ;;  %4923 = vmatpush3.bf16.msra.mxu1 %v571_v18  ;;  %v522_v43 = vld [vmem:[%s5903_s30 + $0x788] sm:$0xff]  ;;  %v511_v37 = vld [vmem:[%s5903_s30 + $0x730] sm:$0xff] }
  0x75   : > { %1362 = vmatmul.mubr.bf16.gmra.mxu0 %v5283_v39  ;;  %v5301_v39 = vld [vmem:[%s8088_s1 + $0x150] ss:$24 sps:$4 sm:$0xff]   ;;  %5132 = vmatprep.subr.bf16.mxu1 %v712_v35  ;;  %v690_v49 = vpack.c.bf16 %v525_v44, %v522_v43  ;;  %v6330_v18 = vld [vmem:[%s8088_s1 + $0x2d4] ss:$24 sps:$4 sm:$0xff]   ;;  %v556_v43 = vld [vmem:[%s5903_s30 + $0x898] sm:$0xff] }
  0x76   : > { %1555 = vmatmul.mubr.bf16.gmra.mxu1 %v5284_v41  ;;  %1371 = vmatprep.mubr.bf16.mxu0 %v5285_v42  ;;  %v527_v41 = vld [vmem:[%s5903_s30 + $0x7b0] sm:$0xff]  ;;  %v530_v42 = vld [vmem:[%s5903_s30 + $0x7c8] sm:$0xff] }
  0x77   : > { %1564 = vmatprep.mubr.bf16.mxu1 %v5287_v46  ;;  %1692 = vmatpush2.bf16.msra.mxu0 %v710_v53  ;;  %v5303_v46 = vld [vmem:[%s8088_s1 + $0x184] ss:$24 sps:$4 sm:$0xff]   ;;  %v692_v48 = vpack.c.bf16 %v530_v42, %v527_v41  ;;  %v562_v32 = vld [vmem:[%s5903_s30 + $0x8c8] sm:$0xff] }
  0x78   : > { %1693 = vmatprep.subr.bf16.mxu0 %v708_v56  ;;  %v472_v53 = vld [vmem:[%s5903_s30 + $0x5f8] sm:$0xff]  ;;  %v418_v35 = vld [vmem:[%s5903_s30 + $0x448] sm:$0xff]  ;;  %v553_v42 = vld [vmem:[%s5903_s30 + $0x880] sm:$0xff] }
  0x79   : > { %v664_v55 = vpack.c.bf16 %v472_v53, %v469_v52  ;;  %v5307_v56 = vld [vmem:[%s8088_s1 + $0x180] ss:$24 sps:$4 sm:$0xff]  }
  0x7a   : > { %v505_v53 = vld [vmem:[%s5903_s30 + $0x700] sm:$0xff] }
  0x7b   : > { %1694 = vmatpush2.bf16.msra.mxu0 %v707_v62  ;;  %v5315_v62 = vld [vmem:[%s8088_s1 + $0x1e4] ss:$24 sps:$4 sm:$0xff]  }
  0x7c   : > { %1695 = vmatprep.subr.bf16.mxu0 %v705_v1  ;;  %v5320_v1 = vld [vmem:[%s8088_s1 + $0x1e8] ss:$24 sps:$4 sm:$0xff]  }
  0x7d   : > { %1372 = vmatmul.mubr.bf16.gmra.mxu0 %v5289_v61  ;;  %v5314_v61 = vld [vmem:[%s8088_s1 + $0x1b8] ss:$24 sps:$4 sm:$0xff]  }
  0x7e   : > { %1565 = vmatmul.mubr.bf16.gmra.mxu1 %v5290_v0  ;;  %1381 = vmatprep.mubr.bf16.mxu0 %v5291_v3  ;;  %v5319_v0 = vld [vmem:[%s8088_s1 + $0x1e0] ss:$24 sps:$4 sm:$0xff]   ;;  %v5323_v3 = vld [vmem:[%s8088_s1 + $0x21c] ss:$24 sps:$4 sm:$0xff]  }
  0x7f   : > { %1574 = vmatprep.mubr.bf16.mxu1 %v5293_v6  ;;  %1696 = vmatpush2.bf16.msra.mxu0 %v704_v9  ;;  %v6276_v6 = vld [vmem:[%s8088_s1 + $0x244] ss:$24 sps:$4 sm:$0xff]   ;;  %v5332_v9 = vld [vmem:[%s8088_s1 + $0x248] ss:$24 sps:$4 sm:$0xff]  }
  0x80   : > { %1697 = vmatprep.subr.bf16.mxu0 %v702_v14  ;;  %v6312_v14 = vld [vmem:[%s8088_s1 + $0x2a4] ss:$24 sps:$4 sm:$0xff]  }
  0x83   : > { %1698 = vmatpush2.bf16.msra.mxu0 %v701_v19  ;;  %v5347_v19 = vld [vmem:[%s8088_s1 + $0x2dc] ss:$24 sps:$4 sm:$0xff]  }
  0x84   : > { %1699 = vmatprep.subr.bf16.mxu0 %v699_v21  ;;  %v5350_v21 = vld [vmem:[%s8088_s1 + $0x2d8] ss:$24 sps:$4 sm:$0xff]  }
  0x85   : > { %1382 = vmatmul.mubr.bf16.gmra.mxu0 %v5295_v23  ;;  %v421_v23 = vld [vmem:[%s5903_s30 + $0x460] sm:$0xff] }
  0x86   : > { %1575 = vmatmul.mubr.bf16.gmra.mxu1 %v5296_v26  ;;  %1391 = vmatprep.mubr.bf16.mxu0 %v5297_v27  ;;  %v520_v26 = vld [vmem:[%s5903_s30 + $0x778] sm:$0xff]  ;;  %v6359_v27 = vld [vmem:[%s8088_s1 + $0x10] ss:$24 sps:$4 sm:$0xff]   ;;  %v640_v36 = vpack.c.bf16 %v424_v24, %v421_v23 }
  0x87   : > { %1584 = vmatprep.mubr.bf16.mxu1 %v5299_v28  ;;  %1700 = vmatpush2.bf16.msra.mxu0 %v698_v29  ;;  %v5783_v28 = vld [vmem:[%s8088_s1 + $0x4] ss:$24 sps:$4 sm:$0xff]   ;;  %v463_v29 = vld [vmem:[%s5903_s30 + $0x5b0] sm:$0xff]  ;;  %v688_v41 = vpack.c.bf16 %v520_v26, %v517_v25 }
  0x88   : > { %1701 = vmatprep.subr.bf16.mxu0 %v696_v33  ;;  %v6371_v33 = vld [vmem:[%s8088_s1 + $0x44] ss:$24 sps:$4 sm:$0xff]   ;;  %v661_v44 = vpack.c.bf16 %v466_v30, %v463_v29  ;;  %v6428_v24 = vld [vmem:[%s8088_s1 + $0x70] ss:$24 sps:$4 sm:$0xff]  }
  0x89   : > { %v5787_v23 = vld [vmem:[%s8088_s1 + $0x64] ss:$24 sps:$4 sm:$0xff]   ;;  %v439_v29 = vld [vmem:[%s5903_s30 + $0x4f0] sm:$0xff]  ;;  %v442_v30 = vld [vmem:[%s5903_s30 + $0x508] sm:$0xff] }
  0x8a   : > { %v493_v26 = vld [vmem:[%s5903_s30 + $0x6a0] sm:$0xff] }
  0x8b   : > { %1702 = vmatpush2.bf16.msra.mxu0 %v695_v38  ;;  %v514_v38 = vld [vmem:[%s5903_s30 + $0x748] sm:$0xff] }
  0x8c   : > { %1703 = vmatprep.subr.bf16.mxu0 %v693_v40  ;;  %v460_v40 = vld [vmem:[%s5903_s30 + $0x598] sm:$0xff]  ;;  %v685_v51 = vpack.c.bf16 %v514_v38, %v511_v37  ;;  %v538_v37 = vld [vmem:[%s5903_s30 + $0x808] sm:$0xff]  ;;  %v391_v38 = vld [vmem:[%s5903_s30 + $0x370] sm:$0xff] }
  0x8d   : > { %1392 = vmatmul.mubr.bf16.gmra.mxu0 %v5301_v39  ;;  %v457_v39 = vld [vmem:[%s5903_s30 + $0x580] sm:$0xff] }
  0x8e   : > { %1585 = vmatmul.mubr.bf16.gmra.mxu1 %v5302_v45  ;;  %1401 = vmatprep.mubr.bf16.mxu0 %v5303_v46  ;;  %v709_v45 = vpack.c.bf16 %v562_v32, %v559_v31  ;;  %v5784_v46 = vld [vmem:[%s8088_s1] ss:$24 sps:$4 sm:$0xff]   ;;  %v658_v52 = vpack.c.bf16 %v460_v40, %v457_v39  ;;  %v6437_v31 = vld [vmem:[%s8088_s1 + $0xa4] ss:$24 sps:$4 sm:$0xff]   ;;  %v394_v39 = vld [vmem:[%s5903_s30 + $0x388] sm:$0xff] }
  0x8f   : > { %1594 = vmatprep.mubr.bf16.mxu1 %v5305_v47  ;;  %1704 = vmatpush2.bf16.msra.mxu0 %v692_v48  ;;  %v637_v47 = vpack.c.bf16 %v418_v35, %v415_v34  ;;  %v409_v48 = vld [vmem:[%s5903_s30 + $0x400] sm:$0xff] }
  0x90   : > { %1705 = vmatprep.subr.bf16.mxu0 %v690_v49  ;;  %v412_v49 = vld [vmem:[%s5903_s30 + $0x418] sm:$0xff] }
  0x93   : > { %1706 = vmatpush2.bf16.msra.mxu0 %v689_v54  ;;  %v508_v54 = vld [vmem:[%s5903_s30 + $0x718] sm:$0xff] }
  0x94   : > { %5020 = vmatprep.subr.bf16.mxu0 %v664_v55  ;;  %v451_v55 = vld [vmem:[%s5903_s30 + $0x550] sm:$0xff] }
  0x95   : > { %1402 = vmatmul.mubr.bf16.gmra.mxu0 %v5307_v56  ;;  %v454_v56 = vld [vmem:[%s5903_s30 + $0x568] sm:$0xff] }
  0x96   : > { %1595 = vmatmul.mubr.bf16.gmra.mxu1 %v5308_v57  ;;  %1411 = vmatprep.mubr.bf16.mxu0 %v5309_v58  ;;  %v5785_v57 = vld [vmem:[%s8088_s1 + $0x34] ss:$24 sps:$4 sm:$0xff]  }
  0x97   : > { %1604 = vmatprep.mubr.bf16.mxu1 %v5311_v59  ;;  %v6403_v58 = vld [vmem:[%s8088_s1 + $0x74] ss:$24 sps:$4 sm:$0xff]   ;;  %v706_v59 = vpack.c.bf16 %v556_v43, %v553_v42  ;;  %v433_v43 = vld [vmem:[%s5903_s30 + $0x4c0] sm:$0xff] }
  0x98   : > { %v490_v42 = vld [vmem:[%s5903_s30 + $0x688] sm:$0xff] }
  0x9d   : > { %1412 = vmatmul.mubr.bf16.gmra.mxu0 %v5313_v60  ;;  %v547_v60 = vld [vmem:[%s5903_s30 + $0x850] sm:$0xff] }
  0x9e   : > { %1605 = vmatmul.mubr.bf16.gmra.mxu1 %v5314_v61  ;;  %1421 = vmatprep.mubr.bf16.mxu0 %v5315_v62  ;;  %v550_v61 = vld [vmem:[%s5903_s30 + $0x868] sm:$0xff]  ;;  %v403_v62 = vld [vmem:[%s5903_s30 + $0x3d0] sm:$0xff] }
  0x9f   : > { %1614 = vmatprep.mubr.bf16.mxu1 %v5317_v63  ;;  %v406_v63 = vld [vmem:[%s5903_s30 + $0x3e8] sm:$0xff] }
  0xa0   : > { %v631_v25 = vpack.c.bf16 %v406_v63, %v403_v62  ;;  %v6471_v62 = vld [vmem:[%s8088_s1 + $0xd4] ss:$24 sps:$4 sm:$0xff]  }
  0xa5   : > { %1422 = vmatmul.mubr.bf16.gmra.mxu0 %v5319_v0  ;;  %v634_v0 = vpack.c.bf16 %v412_v49, %v409_v48  ;;  %v532_v48 = vld [vmem:[%s5903_s30 + $0x7d8] sm:$0xff] }
  0xa6   : > { %1615 = vmatmul.mubr.bf16.gmra.mxu1 %v5320_v1  ;;  %1431 = vmatprep.mubr.bf16.mxu0 %v5321_v2  ;;  %v499_v1 = vld [vmem:[%s5903_s30 + $0x6d0] sm:$0xff]  ;;  %v502_v2 = vld [vmem:[%s5903_s30 + $0x6e8] sm:$0xff] }
  0xa7   : > { %1624 = vmatprep.mubr.bf16.mxu1 %v5323_v3  ;;  %v445_v3 = vld [vmem:[%s5903_s30 + $0x520] sm:$0xff]  ;;  %v679_v32 = vpack.c.bf16 %v502_v2, %v499_v1  ;;  %v523_v2 = vld [vmem:[%s5903_s30 + $0x790] sm:$0xff] }
  0xad   : > { %1432 = vmatmul.mubr.bf16.gmra.mxu0 %v6268_v4 }
  0xae   : > { %1625 = vmatmul.mubr.bf16.gmra.mxu1 %v5326_v5  ;;  %1441 = vmatprep.mubr.bf16.mxu0 %v6276_v6  ;;  %v448_v5 = vld [vmem:[%s5903_s30 + $0x538] sm:$0xff] }
  0xaf   : > { %1634 = vmatprep.mubr.bf16.mxu1 %v5329_v7  ;;  %v682_v7 = vpack.c.bf16 %v508_v54, %v505_v53  ;;  %v652_v34 = vpack.c.bf16 %v448_v5, %v445_v3  ;;  %v388_v53 = vld [vmem:[%s5903_s30 + $0x358] sm:$0xff]  ;;  %v5789_v54 = vld [vmem:[%s8088_s1 + $0x94] ss:$24 sps:$4 sm:$0xff]  }
  0xb0   : > { %v526_v3 = vld [vmem:[%s5903_s30 + $0x7a8] sm:$0xff]  ;;  %v379_v5 = vld [vmem:[%s5903_s30 + $0x310] sm:$0xff] }
  0xb5   : > { %1442 = vmatmul.mubr.bf16.gmra.mxu0 %v6286_v8 }
  0xb6   : > { %1635 = vmatmul.mubr.bf16.gmra.mxu1 %v5332_v9  ;;  %1451 = vmatprep.mubr.bf16.mxu0 %v6294_v10  ;;  %v655_v9 = vpack.c.bf16 %v454_v56, %v451_v55  ;;  %v6462_v55 = vld [vmem:[%s8088_s1 + $0xa0] ss:$24 sps:$4 sm:$0xff]   ;;  %v625_v56 = vpack.c.bf16 %v394_v39, %v391_v38  ;;  %v5794_v38 = vld [vmem:[%s8088_s1 + $0xf0] ss:$24 sps:$4 sm:$0xff]   ;;  %v5795_v39 = vld [vmem:[%s8088_s1 + $0x124] ss:$24 sps:$4 sm:$0xff]  }
  0xb7   : > { %1644 = vmatprep.mubr.bf16.mxu1 %v5335_v11  ;;  %v541_v11 = vld [vmem:[%s5903_s30 + $0x820] sm:$0xff] }
  0xbd   : > { %1452 = vmatmul.mubr.bf16.gmra.mxu0 %v6304_v12 }
  0xbe   : > { %1645 = vmatmul.mubr.bf16.gmra.mxu1 %v5338_v13  ;;  %1461 = vmatprep.mubr.bf16.mxu0 %v6312_v14  ;;  %v544_v13 = vld [vmem:[%s5903_s30 + $0x838] sm:$0xff] }
  0xbf   : > { %1654 = vmatprep.mubr.bf16.mxu1 %v5341_v15  ;;  %v703_v15 = vpack.c.bf16 %v550_v61, %v547_v60  ;;  %v700_v35 = vpack.c.bf16 %v544_v13, %v541_v11  ;;  %v427_v60 = vld [vmem:[%s5903_s30 + $0x490] sm:$0xff]  ;;  %v430_v61 = vld [vmem:[%s5903_s30 + $0x4a8] sm:$0xff] }
  0xc0   : > { %v475_v11 = vld [vmem:[%s5903_s30 + $0x610] sm:$0xff]  ;;  %v478_v13 = vld [vmem:[%s5903_s30 + $0x628] sm:$0xff] }
  0xc5   : > { %1462 = vmatmul.mubr.bf16.gmra.mxu0 %v6322_v16 }
  0xc6   : > { %1655 = vmatmul.mubr.bf16.gmra.mxu1 %v5344_v17  ;;  %1471 = vmatprep.mubr.bf16.mxu0 %v6330_v18  ;;  %v5786_v17 = vld [vmem:[%s8088_s1 + $0x30] ss:$24 sps:$4 sm:$0xff]  }
  0xc7   : > { %1664 = vmatprep.mubr.bf16.mxu1 %v5347_v19  ;;  %v397_v19 = vld [vmem:[%s5903_s30 + $0x3a0] sm:$0xff] }
  0xcd   : > { %1472 = vmatmul.mubr.bf16.gmra.mxu0 %v6340_v20 }
  0xce   : > { %1665 = vmatmul.mubr.bf16.gmra.mxu1 %v5350_v21  ;;  %1707 = vmatprep.mubr.bf16.mxu0 %v6348_v22  ;;  %v400_v21 = vld [vmem:[%s5903_s30 + $0x3b8] sm:$0xff] }
  0xcf   : > { %1900 = vmatprep.mubr.bf16.mxu1 %v5783_v28  ;;  %v496_v28 = vld [vmem:[%s5903_s30 + $0x6b8] sm:$0xff]  ;;  %v628_v40 = vpack.c.bf16 %v400_v21, %v397_v19  ;;  %v691_v19 = vpack.c.bf16 %v526_v3, %v523_v2  ;;  %v5790_v21 = vld [vmem:[%s8088_s1 + $0x90] ss:$24 sps:$4 sm:$0xff]  }
  0xd5   : > { %1708 = vmatmul.mubr.bf16.vlgmr.msra.gmra.mxu0 %v6359_v27 }
  0xd6   : > { %1901 = vmatmul.mubr.bf16.vlgmr.msra.gmra.mxu1 %v5784_v46  ;;  %5021 = vmatpush3.bf16.msra.mxu0 %v640_v36  ;;  %v535_v36 = vld [vmem:[%s5903_s30 + $0x7f0] sm:$0xff]  ;;  %v649_v46 = vpack.c.bf16 %v442_v30, %v439_v29  ;;  %v667_v29 = vpack.c.bf16 %v478_v13, %v475_v11  ;;  %v6498_v30 = vld [vmem:[%s8088_s1 + $0x104] ss:$24 sps:$4 sm:$0xff]  }
  0xd7   : > { %5133 = vmatpush3.bf16.msra.mxu1 %v688_v41  ;;  %1717 = vmatprep.mubr.bf16.mxu0 %v6371_v33  ;;  %v487_v41 = vld [vmem:[%s5903_s30 + $0x670] sm:$0xff]  ;;  %v697_v49 = vpack.c.bf16 %v538_v37, %v535_v36  ;;  %v6514_v36 = vld [vmem:[%s8088_s1 + $0x100] ss:$24 sps:$4 sm:$0xff]  }
  0xd8   : > { %1908 = vmatprep.mubr.bf16.mxu1 %v5785_v57  ;;  %5022 = vmatprep.subr.bf16.mxu0 %v661_v44  ;;  %v436_v44 = vld [vmem:[%s5903_s30 + $0x4d8] sm:$0xff]  ;;  %v481_v57 = vld [vmem:[%s5903_s30 + $0x640] sm:$0xff]  ;;  %v673_v63 = vpack.c.bf16 %v490_v42, %v487_v41  ;;  %v6519_v37 = vld [vmem:[%s8088_s1 + $0x134] ss:$24 sps:$4 sm:$0xff]  }
  0xd9   : > { %5134 = vmatprep.subr.bf16.mxu1 %v709_v45  ;;  %v676_v45 = vpack.c.bf16 %v496_v28, %v493_v26  ;;  %v5401_v28 = vld [vmem:[%s8090_s3 + $0x74] ss:$8 sps:$4 sm:$0xff]   ;;  %v5796_v42 = vld [vmem:[%s8088_s1 + $0x120] ss:$24 sps:$4 sm:$0xff]   ;;  %v5802_v13 = vld [vmem:[%s8088_s1 + $0x1b0] ss:$24 sps:$4 sm:$0xff]  }
  0xda   : > { %5023 = vmatpush3.bf16.msra.mxu0 %v637_v47  ;;  %v529_v47 = vld [vmem:[%s5903_s30 + $0x7c0] sm:$0xff] }
  0xdb   : > { %5135 = vmatpush3.bf16.msra.mxu1 %v685_v51  ;;  %5024 = vmatprep.subr.bf16.mxu0 %v658_v52  ;;  %v5788_v51 = vld [vmem:[%s8088_s1 + $0x60] ss:$24 sps:$4 sm:$0xff]   ;;  %v694_v1 = vpack.c.bf16 %v532_v48, %v529_v47  ;;  %v6537_v41 = vld [vmem:[%s8088_s1 + $0x164] ss:$24 sps:$4 sm:$0xff]   ;;  %v6568_v48 = vld [vmem:[%s8088_s1 + $0x190] ss:$24 sps:$4 sm:$0xff]  }
  0xdc   : > { %5136 = vmatprep.subr.bf16.mxu1 %v706_v59  ;;  %v385_v52 = vld [vmem:[%s5903_s30 + $0x340] sm:$0xff]  ;;  %v484_v59 = vld [vmem:[%s5903_s30 + $0x658] sm:$0xff] }
  0xdd   : > { %1718 = vmatmul.mubr.bf16.gmra.mxu0 %v6391_v50  ;;  %v5799_v47 = vld [vmem:[%s8088_s1 + $0x184] ss:$24 sps:$4 sm:$0xff]  }
  0xde   : > { %1909 = vmatmul.mubr.bf16.gmra.mxu1 %v5786_v17  ;;  %1727 = vmatprep.mubr.bf16.mxu0 %v6403_v58  ;;  %v643_v17 = vpack.c.bf16 %v430_v61, %v427_v60 }
  0xdf   : > { %1916 = vmatprep.mubr.bf16.mxu1 %v5787_v23  ;;  %5025 = vmatpush3.bf16.msra.mxu0 %v634_v0  ;;  %v646_v0 = vpack.c.bf16 %v436_v44, %v433_v43  ;;  %v5791_v23 = vld [vmem:[%s8088_s1 + $0xc4] ss:$24 sps:$4 sm:$0xff]   ;;  %v5797_v43 = vld [vmem:[%s8088_s1 + $0x154] ss:$24 sps:$4 sm:$0xff]   ;;  %v6550_v44 = vld [vmem:[%s8088_s1 + $0x160] ss:$24 sps:$4 sm:$0xff]  }
  0xe0   : > { %5137 = vmatpush3.bf16.msra.mxu1 %v682_v7  ;;  %5026 = vmatprep.subr.bf16.mxu0 %v655_v9  ;;  %v382_v7 = vld [vmem:[%s5903_s30 + $0x328] sm:$0xff]  ;;  %v622_v9 = vpack.c.bf16 %v388_v53, %v385_v52  ;;  %v5800_v53 = vld [vmem:[%s8088_s1 + $0x180] ss:$24 sps:$4 sm:$0xff]  }
  0xe1   : > { %5138 = vmatprep.subr.bf16.mxu1 %v703_v15  ;;  %v670_v15 = vpack.c.bf16 %v484_v59, %v481_v57  ;;  %v619_v26 = vpack.c.bf16 %v382_v7, %v379_v5  ;;  %v5801_v57 = vld [vmem:[%s8088_s1 + $0x1b4] ss:$24 sps:$4 sm:$0xff]  }
  0xe3   : > { %5027 = vmatpush3.bf16.msra.mxu0 %v631_v25  ;;  %v6490_v25 = vld [vmem:[%s8088_s1 + $0xd0] ss:$24 sps:$4 sm:$0xff]  }
  0xe4   : > { %5139 = vmatpush3.bf16.msra.mxu1 %v679_v32  ;;  %5028 = vmatprep.subr.bf16.mxu0 %v652_v34  ;;  %v5404_v32 = vld [vmem:[%s8090_s3 + $0x174] ss:$8 sps:$4 sm:$0xff]   ;;  %v5792_v34 = vld [vmem:[%s8088_s1 + $0xc0] ss:$24 sps:$4 sm:$0xff]  }
  0xe5   : > { %1728 = vmatmul.mubr.bf16.gmra.mxu0 %v6428_v24  ;;  %5140 = vmatprep.subr.bf16.mxu1 %v700_v35  ;;  %v5793_v35 = vld [vmem:[%s8088_s1 + $0xf4] ss:$24 sps:$4 sm:$0xff]  }
  0xe6   : > { %1917 = vmatmul.mubr.bf16.gmra.mxu1 %v5788_v51  ;;  %1737 = vmatprep.mubr.bf16.mxu0 %v6437_v31 }
  0xe7   : > { %1924 = vmatprep.mubr.bf16.mxu1 %v5789_v54  ;;  %5029 = vmatpush3.bf16.msra.mxu0 %v628_v40  ;;  %v6532_v40 = vld [vmem:[%s8088_s1 + $0x130] ss:$24 sps:$4 sm:$0xff]  }
  0xe8   : > { %5141 = vmatpush3.bf16.msra.mxu1 %v676_v45  ;;  %5030 = vmatprep.subr.bf16.mxu0 %v649_v46  ;;  %v6555_v45 = vld [vmem:[%s8088_s1 + $0x194] ss:$24 sps:$4 sm:$0xff]   ;;  %v5798_v46 = vld [vmem:[%s8088_s1 + $0x150] ss:$24 sps:$4 sm:$0xff]  }
  0xe9   : > { %5142 = vmatprep.subr.bf16.mxu1 %v697_v49  ;;  %v6573_v49 = vld [vmem:[%s8088_s1 + $0x1c4] ss:$24 sps:$4 sm:$0xff]  }
  0xeb   : > { %5031 = vmatpush3.bf16.msra.mxu0 %v625_v56 }
  0xec   : > { %5143 = vmatpush3.bf16.msra.mxu1 %v673_v63  ;;  %5032 = vmatprep.subr.bf16.mxu0 %v646_v0  ;;  %v6590_v63 = vld [vmem:[%s8088_s1 + $0x1c0] ss:$24 sps:$4 sm:$0xff]  }
  0xed   : > { %1738 = vmatmul.mubr.bf16.gmra.mxu0 %v6462_v55  ;;  %5144 = vmatprep.subr.bf16.mxu1 %v694_v1  ;;  %v6595_v1 = vld [vmem:[%s8088_s1 + $0x1f4] ss:$24 sps:$4 sm:$0xff]  }
  0xee   : > { %1925 = vmatmul.mubr.bf16.gmra.mxu1 %v5790_v21  ;;  %1747 = vmatprep.mubr.bf16.mxu0 %v6471_v62 }
  0xef   : > { %1932 = vmatprep.mubr.bf16.mxu1 %v5791_v23  ;;  %5033 = vmatpush3.bf16.msra.mxu0 %v622_v9 }
  0xf0   : > { %5145 = vmatpush3.bf16.msra.mxu1 %v670_v15  ;;  %5034 = vmatprep.subr.bf16.mxu0 %v643_v17 }
  0xf1   : > { %5146 = vmatprep.subr.bf16.mxu1 %v691_v19  ;;  %v5803_v19 = vld [vmem:[%s8088_s1 + $0x1e4] ss:$24 sps:$4 sm:$0xff]  }
  0xf3   : > { %5035 = vmatpush3.bf16.msra.mxu0 %v619_v26 }
  0xf4   : > { %5147 = vmatpush3.bf16.msra.mxu1 %v667_v29  ;;  %4096 = vmatprep.subr.bf16.mxu0 %v5401_v28  ;;  %v6616_v28 = vld [vmem:[%s8088_s1 + $0x1f0] ss:$24 sps:$4 sm:$0xff]  }
  0xf5   : > { %1748 = vmatmul.mubr.bf16.gmra.mxu0 %v6490_v25  ;;  %4137 = vmatprep.subr.bf16.mxu1 %v5404_v32  ;;  %v6621_v32 = vld [vmem:[%s8088_s1 + $0x224] ss:$24 sps:$4 sm:$0xff]  }
  0xf6   : > { %1933 = vmatmul.mubr.bf16.gmra.mxu1 %v5792_v34  ;;  %1757 = vmatprep.mubr.bf16.mxu0 %v6498_v30 }
  0xf7   : > { %1940 = vmatprep.mubr.bf16.mxu1 %v5793_v35 }
  0xfd   : > { %1758 = vmatmul.mubr.bf16.gmra.mxu0 %v6514_v36 }
  0xfe   : > { %1941 = vmatmul.mubr.bf16.gmra.mxu1 %v5794_v38  ;;  %1767 = vmatprep.mubr.bf16.mxu0 %v6519_v37 }
  0xff   : > { %1948 = vmatprep.mubr.bf16.mxu1 %v5795_v39 }
 0x105   : > { %1768 = vmatmul.mubr.bf16.gmra.mxu0 %v6532_v40 }
 0x106   : > { %1949 = vmatmul.mubr.bf16.gmra.mxu1 %v5796_v42  ;;  %1777 = vmatprep.mubr.bf16.mxu0 %v6537_v41 }
 0x107   : > { %1956 = vmatprep.mubr.bf16.mxu1 %v5797_v43 }
 0x10d   : > { %1778 = vmatmul.mubr.bf16.gmra.mxu0 %v6550_v44 }
 0x10e   : > { %1957 = vmatmul.mubr.bf16.gmra.mxu1 %v5798_v46  ;;  %1787 = vmatprep.mubr.bf16.mxu0 %v6555_v45  ;;  %v5804_v46 = vld [vmem:[%s8088_s1 + $0x1e0] ss:$24 sps:$4 sm:$0xff]  }
 0x10f   : > { %1964 = vmatprep.mubr.bf16.mxu1 %v5799_v47 }
 0x115   : > { %v1323_v51 = vpop.f32.mrf.mxu0  ;;  %1788 = vmatmul.mubr.bf16.gmra.mxu0 %v6568_v48 }
 0x116   : > { %v1516_v52 = vpop.f32.mrf.mxu1  ;;  %1965 = vmatmul.mubr.bf16.gmra.mxu1 %v5800_v53  ;;  %1797 = vmatprep.mubr.bf16.mxu0 %v6573_v49 }
 0x117   : > { %v6580_v54 = vadd.f32 %v1516_v52, %v1323_v51  ;;  %v1325_v56 = vpop.f32.mrf.mxu0  ;;  %1972 = vmatprep.mubr.bf16.mxu1 %v5801_v57  ;;  %v5805_v52 = vld [vmem:[%s8088_s1 + $0x214] ss:$24 sps:$4 sm:$0xff]  }
 0x118   : > { %v1518_v59 = vpop.f32.mrf.mxu1 }
 0x119   : > { %v6585_v60 = vadd.f32 %v1518_v59, %v1325_v56  ;;  %v1327_v61 = vpop.f32.mrf.mxu0  ;;  %v6642_v59 = vld [vmem:[%s8088_s1 + $0x220] ss:$24 sps:$4 sm:$0xff]  }
 0x11a   : > { %v1520_v0 = vpop.f32.mrf.mxu1 }
 0x11b   : > { %v6597_v2 = vadd.f32 %v1520_v0, %v1327_v61  ;;  %v1329_v3 = vpop.f32.mrf.mxu0  ;;  %v6647_v0 = vld [vmem:[%s8088_s1 + $0x254] ss:$24 sps:$4 sm:$0xff]  }
 0x11c   : > { %v1522_v5 = vpop.f32.mrf.mxu1 }
 0x11d   : > { %v6599_v7 = vadd.f32 %v1522_v5, %v1329_v3  ;;  %v1333_v9 = vpop.f32.mrf.mxu0  ;;  %1798 = vmatmul.mubr.bf16.gmra.mxu0 %v6590_v63 }
 0x11e   : > { %v1526_v11 = vpop.f32.mrf.mxu1  ;;  %1973 = vmatmul.mubr.bf16.gmra.mxu1 %v5802_v13  ;;  %1807 = vmatprep.mubr.bf16.mxu0 %v6595_v1 }
 0x11f   : > { %v6606_v15 = vadd.f32 %v1526_v11, %v1333_v9  ;;  %v1335_v17 = vpop.f32.mrf.mxu0  ;;  %1980 = vmatprep.mubr.bf16.mxu1 %v5803_v19 }
 0x120   : > { %v1528_v21 = vpop.f32.mrf.mxu1 }
 0x121   : > { %v6611_v23 = vadd.f32 %v1528_v21, %v1335_v17  ;;  %v1337_v26 = vpop.f32.mrf.mxu0 }
 0x122   : > { %v1530_v29 = vpop.f32.mrf.mxu1 }
 0x123   : > { %v6623_v34 = vadd.f32 %v1530_v29, %v1337_v26  ;;  %v1339_v35 = vpop.f32.mrf.mxu0 }
 0x124   : > { %v1532_v38 = vpop.f32.mrf.mxu1 }
 0x125   : > { %v6625_v39 = vadd.f32 %v1532_v38, %v1339_v35  ;;  %v1343_v42 = vpop.f32.mrf.mxu0  ;;  %1808 = vmatmul.mubr.bf16.gmra.mxu0 %v6616_v28  ;;  %v6664_v38 = vld [vmem:[%s8088_s1 + $0x250] ss:$24 sps:$4 sm:$0xff]  }
 0x126   : > { %v1536_v43 = vpop.f32.mrf.mxu1  ;;  %1981 = vmatmul.mubr.bf16.gmra.mxu1 %v5804_v46  ;;  %1817 = vmatprep.mubr.bf16.mxu0 %v6621_v32 }
 0x127   : > { %v6632_v47 = vadd.f32 %v1536_v43, %v1343_v42  ;;  %v1345_v51 = vpop.f32.mrf.mxu0  ;;  %1988 = vmatprep.mubr.bf16.mxu1 %v5805_v52 }
 0x128   : > { %v1538_v53 = vpop.f32.mrf.mxu1 }
 0x129   : > { %v6637_v56 = vadd.f32 %v1538_v53, %v1345_v51  ;;  %v1347_v57 = vpop.f32.mrf.mxu0 }
 0x12a   : > { %v1540_v61 = vpop.f32.mrf.mxu1 }
 0x12b   : > { %v6649_v3 = vadd.f32 %v1540_v61, %v1347_v57  ;;  %v1349_v5 = vpop.f32.mrf.mxu0 }
 0x12c   : > { %v1542_v9 = vpop.f32.mrf.mxu1 }
 0x12d   : > { %v6651_v11 = vadd.f32 %v1542_v9, %v1349_v5  ;;  %v1353_v13 = vpop.f32.mrf.mxu0  ;;  %1818 = vmatmul.mubr.bf16.gmra.mxu0 %v6642_v59 }
 0x12e   : > { %v1546_v17 = vpop.f32.mrf.mxu1  ;;  %1989 = vmatmul.mubr.bf16.gmra.mxu1 %v6268_v4  ;;  %1827 = vmatprep.mubr.bf16.mxu0 %v6647_v0  ;;  %v6669_v4 = vld [vmem:[%s8088_s1 + $0x284] ss:$24 sps:$4 sm:$0xff]  }
 0x12f   : > { %v6656_v19 = vadd.f32 %v1546_v17, %v1353_v13  ;;  %v1355_v21 = vpop.f32.mrf.mxu0  ;;  %1996 = vmatprep.mubr.bf16.mxu1 %v6276_v6  ;;  %v6686_v17 = vld [vmem:[%s8088_s1 + $0x280] ss:$24 sps:$4 sm:$0xff]  }
 0x130   : > { %v1548_v26 = vpop.f32.mrf.mxu1  ;;  %8099 = vst [vmem:[#allocation2_spill] sm:$0xff] %v6686_v17 }
 0x131   : > { %v6659_v29 = vadd.f32 %v1548_v26, %v1355_v21  ;;  %v1357_v35 = vpop.f32.mrf.mxu0 }
 0x132   : > { %v1550_v42 = vpop.f32.mrf.mxu1 }
 0x133   : > { %v6671_v43 = vadd.f32 %v1550_v42, %v1357_v35  ;;  %v1359_v46 = vpop.f32.mrf.mxu0 }
 0x134   : > { %v1552_v51 = vpop.f32.mrf.mxu1 }
 0x135   : > { %v6673_v6 = vadd.f32 %v1552_v51, %v1359_v46  ;;  %v1363_v52 = vpop.f32.mrf.mxu0  ;;  %1828 = vmatmul.mubr.bf16.gmra.mxu0 %v6664_v38 }
 0x136   : > { %v1556_v53 = vpop.f32.mrf.mxu1  ;;  %1997 = vmatmul.mubr.bf16.gmra.mxu1 %v6286_v8  ;;  %1837 = vmatprep.mubr.bf16.mxu0 %v6669_v4  ;;  %v6691_v8 = vld [vmem:[%s8088_s1 + $0x2b4] ss:$24 sps:$4 sm:$0xff]  }
 0x137   : > { %v6678_v57 = vadd.f32 %v1556_v53, %v1363_v52  ;;  %v1365_v61 = vpop.f32.mrf.mxu0  ;;  %2004 = vmatprep.mubr.bf16.mxu1 %v6294_v10  ;;  %8100 = vst [vmem:[#allocation3_spill] sm:$0xff] %v6691_v8 }
 0x138   : > { %v1558_v5 = vpop.f32.mrf.mxu1 }
 0x139   : > { %v6681_v9 = vadd.f32 %v1558_v5, %v1365_v61  ;;  %v1367_v13 = vpop.f32.mrf.mxu0 }
 0x13a   : > { %v1560_v21 = vpop.f32.mrf.mxu1 }
 0x13b   : > { %v6693_v26 = vadd.f32 %v1560_v21, %v1367_v13  ;;  %v1369_v35 = vpop.f32.mrf.mxu0  ;;  %v6708_v21 = vld [vmem:[%s8088_s1 + $0x2b0] ss:$24 sps:$4 sm:$0xff]  }
 0x13c   : > { %v1562_v42 = vpop.f32.mrf.mxu1  ;;  %8102 = vst [vmem:[#allocation5_spill] sm:$0xff] %v6708_v21 }
 0x13d   : > { %v6695_v10 = vadd.f32 %v1562_v42, %v1369_v35  ;;  %v1373_v46 = vpop.f32.mrf.mxu0  ;;  %1838 = vmatmul.mubr.bf16.gmra.mxu0 %v6686_v17 }
 0x13e   : > { %v1566_v51 = vpop.f32.mrf.mxu1  ;;  %2005 = vmatmul.mubr.bf16.gmra.mxu1 %v6304_v12  ;;  %1847 = vmatprep.mubr.bf16.mxu0 %v6691_v8  ;;  %v6713_v12 = vld [vmem:[%s8088_s1 + $0x2e4] ss:$24 sps:$4 sm:$0xff]  }
 0x13f   : > { %v6700_v52 = vadd.f32 %v1566_v51, %v1373_v46  ;;  %v1375_v53 = vpop.f32.mrf.mxu0  ;;  %2012 = vmatprep.mubr.bf16.mxu1 %v6312_v14  ;;  %8103 = vst [vmem:[#allocation6_spill] sm:$0xff] %v6713_v12 }
 0x140   : > { %v1568_v61 = vpop.f32.mrf.mxu1 }
 0x141   : > { %v6703_v5 = vadd.f32 %v1568_v61, %v1375_v53  ;;  %v1377_v13 = vpop.f32.mrf.mxu0 }
 0x142   : > { %v1570_v35 = vpop.f32.mrf.mxu1 }
 0x143   : > { %8101 = vst [vmem:[#allocation4_spill] sm:$0xff] %v6703_v5  ;;  %v6715_v42 = vadd.f32 %v1570_v35, %v1377_v13  ;;  %v1379_v46 = vpop.f32.mrf.mxu0 }
 0x144   : > { %v1572_v51 = vpop.f32.mrf.mxu1 }
 0x145   : > { %v6717_v14 = vadd.f32 %v1572_v51, %v1379_v46  ;;  %v1383_v53 = vpop.f32.mrf.mxu0  ;;  %1848 = vmatmul.mubr.bf16.gmra.mxu0 %v6708_v21  ;;  %v6730_v46 = vld [vmem:[%s8088_s1 + $0x2e0] ss:$24 sps:$4 sm:$0xff]  }
 0x146   : > { %v1576_v61 = vpop.f32.mrf.mxu1  ;;  %2013 = vmatmul.mubr.bf16.gmra.mxu1 %v6322_v16  ;;  %1857 = vmatprep.mubr.bf16.mxu0 %v6713_v12  ;;  %8105 = vst [vmem:[#allocation8_spill] sm:$0xff] %v6730_v46 }
 0x147   : > { %8104 = vst [vmem:[#allocation7_spill] sm:$0xff] %v6717_v14  ;;  %v6722_v5 = vadd.f32 %v1576_v61, %v1383_v53  ;;  %v1385_v8 = vpop.f32.mrf.mxu0  ;;  %2020 = vmatprep.mubr.bf16.mxu1 %v6330_v18 }
 0x148   : > { %v1578_v17 = vpop.f32.mrf.mxu1 }
 0x149   : > { %v6725_v13 = vadd.f32 %v1578_v17, %v1385_v8  ;;  %v1387_v35 = vpop.f32.mrf.mxu0  ;;  %v5806_v17 = vld [vmem:[%s8088_s1 + $0xc] ss:$24 sps:$4 sm:$0xff]  }
 0x14a   : > { %v1580_v51 = vpop.f32.mrf.mxu1 }
 0x14b   : > { %v6732_v21 = vadd.f32 %v1580_v51, %v1387_v35  ;;  %v1389_v16 = vpop.f32.mrf.mxu0 }
 0x14c   : > { %v1582_v14 = vpop.f32.mrf.mxu1 }
 0x14d   : > { %v6734_v12 = vadd.f32 %v1582_v14, %v1389_v16  ;;  %v1393_v53 = vpop.f32.mrf.mxu0  ;;  %1858 = vmatmul.mubr.bf16.gmra.mxu0 %v6730_v46  ;;  %v5399_v46 = vld [vmem:[%s8090_s3 + $0x70] ss:$8 sps:$4 sm:$0xff]  }
 0x14e   : > { %v1586_v18 = vpop.f32.mrf.mxu1  ;;  %2021 = vmatmul.mubr.bf16.gmra.mxu1 %v6340_v20  ;;  %2061 = vmatprep.mubr.bf16.mxu0 %v5806_v17 }
 0x14f   : > { %8106 = vst [vmem:[#allocation9_spill] sm:$0xff] %v6734_v12  ;;  %v6741_v8 = vadd.f32 %v1586_v18, %v1393_v53  ;;  %v1395_v61 = vpop.f32.mrf.mxu0  ;;  %2222 = vmatprep.mubr.bf16.mxu1 %v6348_v22  ;;  %v5402_v53 = vld [vmem:[%s8090_s3 + $0x170] ss:$8 sps:$4 sm:$0xff]   ;;  %v5407_v22 = vld [vmem:[%s8090_s3 + $0x64] ss:$8 sps:$4 sm:$0xff]  }
 0x150   : > { %v1588_v35 = vpop.f32.mrf.mxu1 }
 0x151   : > { %8107 = vst [vmem:[#allocation10_spill] sm:$0xff] %v6741_v8  ;;  %v6744_v51 = vadd.f32 %v1588_v35, %v1395_v61  ;;  %v1397_v14 = vpop.f32.mrf.mxu0  ;;  %v5807_v35 = vld [vmem:[%s8088_s1 + $0x8] ss:$24 sps:$4 sm:$0xff]   ;;  %v5411_v8 = vld [vmem:[%s8090_s3 + $0x50] ss:$8 sps:$4 sm:$0xff]  }
 0x152   : > { %v1590_v16 = vpop.f32.mrf.mxu1 }
 0x153   : > { %8108 = vst [vmem:[#allocation11_spill] sm:$0xff] %v6744_v51  ;;  %v6749_v20 = vadd.f32 %v1590_v16, %v1397_v14  ;;  %v1399_v12 = vpop.f32.mrf.mxu0  ;;  %v5410_v14 = vld [vmem:[%s8090_s3 + $0x164] ss:$8 sps:$4 sm:$0xff]  }
 0x154   : > { %v1592_v18 = vpop.f32.mrf.mxu1 }
 0x155   : > { %8109 = vst [vmem:[#allocation12_spill] sm:$0xff] %v6749_v20  ;;  %v6757_v17 = vadd.f32 %v1592_v18, %v1399_v12  ;;  %v1403_v61 = vpop.f32.mrf.mxu0  ;;  %2062 = vmatmul.mubr.bf16.vlgmr.msra.gmra.mxu0 %v5807_v35  ;;  %v5405_v20 = vld [vmem:[%s8090_s3 + $0x60] ss:$8 sps:$4 sm:$0xff]   ;;  %v5808_v35 = vld [vmem:[%s8088_s1 + $0x3c] ss:$24 sps:$4 sm:$0xff]  }
 0x156   : > { %v1596_v16 = vpop.f32.mrf.mxu1  ;;  %2223 = vmatmul.mubr.bf16.vlgmr.msra.gmra.mxu1 %v6359_v27  ;;  %4097 = vmatpush1.bf16.msra.mxu0 %v5399_v46  ;;  %v5413_v27 = vld [vmem:[%s8090_s3 + $0x54] ss:$8 sps:$4 sm:$0xff]  }
 0x157   : > { %8110 = vst [vmem:[#allocation13_spill] sm:$0xff] %v6757_v17  ;;  %v6769_v12 = vadd.f32 %v1596_v16, %v1403_v61  ;;  %v1405_v18 = vpop.f32.mrf.mxu0  ;;  %4138 = vmatpush1.bf16.msra.mxu1 %v5402_v53  ;;  %2069 = vmatprep.mubr.bf16.mxu0 %v5808_v35  ;;  %v5408_v17 = vld [vmem:[%s8090_s3 + $0x160] ss:$8 sps:$4 sm:$0xff]   ;;  %v5416_v53 = vld [vmem:[%s8090_s3 + $0x154] ss:$8 sps:$4 sm:$0xff]  }
 0x158   : > { %v1598_v46 = vpop.f32.mrf.mxu1  ;;  %2230 = vmatprep.mubr.bf16.mxu1 %v6371_v33  ;;  %4098 = vmatprep.subr.bf16.mxu0 %v5407_v22  ;;  %v5414_v22 = vld [vmem:[%s8090_s3 + $0x150] ss:$8 sps:$4 sm:$0xff]  }
 0x159   : > { %8111 = vst [vmem:[#allocation14_spill] sm:$0xff] %v6769_v12  ;;  %v6784_v61 = vadd.f32 %v1598_v46, %v1405_v18  ;;  %v1407_v16 = vpop.f32.mrf.mxu0  ;;  %4139 = vmatprep.subr.bf16.mxu1 %v5410_v14  ;;  %v5419_v14 = vld [vmem:[%s8090_s3 + $0x44] ss:$8 sps:$4 sm:$0xff]  }
 0x15a   : > { %v1600_v35 = vpop.f32.mrf.mxu1  ;;  %4099 = vmatpush1.bf16.msra.mxu0 %v5405_v20 }
 0x15b   : > { %v6786_v12 = vadd.f32 %v1600_v35, %v1407_v16  ;;  %v1409_v51 = vpop.f32.mrf.mxu0  ;;  %4140 = vmatpush1.bf16.msra.mxu1 %v5408_v17  ;;  %4100 = vmatprep.subr.bf16.mxu0 %v5413_v27  ;;  %v5809_v17 = vld [vmem:[%s8088_s1 + $0x38] ss:$24 sps:$4 sm:$0xff]   ;;  %v5422_v27 = vld [vmem:[%s8090_s3 + $0x144] ss:$8 sps:$4 sm:$0xff]   ;;  %v5417_v35 = vld [vmem:[%s8090_s3 + $0x40] ss:$8 sps:$4 sm:$0xff]  }
 0x15c   : > { %v1602_v33 = vpop.f32.mrf.mxu1  ;;  %4141 = vmatprep.subr.bf16.mxu1 %v5416_v53  ;;  %v5810_v53 = vld [vmem:[%s8088_s1 + $0x6c] ss:$24 sps:$4 sm:$0xff]  }
 0x15d   : > { %v6797_v20 = vadd.f32 %v1602_v33, %v1409_v51  ;;  %v1413_v18 = vpop.f32.mrf.mxu0  ;;  %2070 = vmatmul.mubr.bf16.gmra.mxu0 %v5809_v17 }
 0x15e   : > { %v1606_v46 = vpop.f32.mrf.mxu1  ;;  %2231 = vmatmul.mubr.bf16.gmra.mxu1 %v6391_v50  ;;  %2077 = vmatprep.mubr.bf16.mxu0 %v5810_v53  ;;  %v5420_v50 = vld [vmem:[%s8090_s3 + $0x140] ss:$8 sps:$4 sm:$0xff]  }
 0x15f   : > { %v6809_v51 = vadd.f32 %v1606_v46, %v1413_v18  ;;  %v1415_v16 = vpop.f32.mrf.mxu0  ;;  %2238 = vmatprep.mubr.bf16.mxu1 %v6403_v58  ;;  %4101 = vmatpush1.bf16.msra.mxu0 %v5411_v8  ;;  %v5425_v18 = vld [vmem:[%s8090_s3 + $0x34] ss:$8 sps:$4 sm:$0xff]  }
 0x160   : > { %v1608_v33 = vpop.f32.mrf.mxu1  ;;  %4142 = vmatpush1.bf16.msra.mxu1 %v5414_v22  ;;  %4102 = vmatprep.subr.bf16.mxu0 %v5419_v14  ;;  %v5428_v58 = vld [vmem:[%s8090_s3 + $0x134] ss:$8 sps:$4 sm:$0xff]   ;;  %v5423_v14 = vld [vmem:[%s8090_s3 + $0x30] ss:$8 sps:$4 sm:$0xff]  }
 0x161   : > { %8112 = vst [vmem:[#allocation15_spill] sm:$0xff] %v6809_v51  ;;  %v6821_v17 = vadd.f32 %v1608_v33, %v1415_v16  ;;  %v1417_v46 = vpop.f32.mrf.mxu0  ;;  %4143 = vmatprep.subr.bf16.mxu1 %v5422_v27  ;;  %v5426_v27 = vld [vmem:[%s8090_s3 + $0x130] ss:$8 sps:$4 sm:$0xff]   ;;  %v5431_v16 = vld [vmem:[%s8090_s3 + $0x24] ss:$8 sps:$4 sm:$0xff]  }
 0x162   : > { %v1610_v8 = vpop.f32.mrf.mxu1 }
 0x163   : > { %v6826_v53 = vadd.f32 %v1610_v8, %v1417_v46  ;;  %v1419_v22 = vpop.f32.mrf.mxu0  ;;  %4103 = vmatpush1.bf16.msra.mxu0 %v5417_v35  ;;  %v5811_v35 = vld [vmem:[%s8088_s1 + $0x68] ss:$24 sps:$4 sm:$0xff]   ;;  %v5812_v8 = vld [vmem:[%s8088_s1 + $0x9c] ss:$24 sps:$4 sm:$0xff]  }
 0x164   : > { %v1612_v51 = vpop.f32.mrf.mxu1  ;;  %4144 = vmatpush1.bf16.msra.mxu1 %v5420_v50  ;;  %4104 = vmatprep.subr.bf16.mxu0 %v5425_v18  ;;  %v5434_v50 = vld [vmem:[%s8090_s3 + $0x124] ss:$8 sps:$4 sm:$0xff]  }
 0x165   : > { %v6837_v33 = vadd.f32 %v1612_v51, %v1419_v22  ;;  %v1423_v46 = vpop.f32.mrf.mxu0  ;;  %2078 = vmatmul.mubr.bf16.gmra.mxu0 %v5811_v35  ;;  %4145 = vmatprep.subr.bf16.mxu1 %v5428_v58  ;;  %v5429_v58 = vld [vmem:[%s8090_s3 + $0x20] ss:$8 sps:$4 sm:$0xff]  }
 0x166   : > { %v1616_v18 = vpop.f32.mrf.mxu1  ;;  %2239 = vmatmul.mubr.bf16.gmra.mxu1 %v6428_v24  ;;  %2085 = vmatprep.mubr.bf16.mxu0 %v5812_v8  ;;  %v5432_v24 = vld [vmem:[%s8090_s3 + $0x120] ss:$8 sps:$4 sm:$0xff]  }
 0x167   : > { %8113 = vst [vmem:[#allocation16_spill] sm:$0xff] %v6837_v33  ;;  %v6849_v51 = vadd.f32 %v1616_v18, %v1423_v46  ;;  %v1425_v22 = vpop.f32.mrf.mxu0  ;;  %2246 = vmatprep.mubr.bf16.mxu1 %v6437_v31  ;;  %4105 = vmatpush1.bf16.msra.mxu0 %v5423_v14  ;;  %v5437_v46 = vld [vmem:[%s8090_s3 + $0x14] ss:$8 sps:$4 sm:$0xff]  }
 0x168   : > { %v1618_v35 = vpop.f32.mrf.mxu1  ;;  %4146 = vmatpush1.bf16.msra.mxu1 %v5426_v27  ;;  %4106 = vmatprep.subr.bf16.mxu0 %v5431_v16  ;;  %v5440_v31 = vld [vmem:[%s8090_s3 + $0x114] ss:$8 sps:$4 sm:$0xff]   ;;  %v5435_v16 = vld [vmem:[%s8090_s3 + $0x10] ss:$8 sps:$4 sm:$0xff]  }
 0x169   : > { %8114 = vst [vmem:[#allocation17_spill] sm:$0xff] %v6849_v51  ;;  %v6861_v18 = vadd.f32 %v1618_v35, %v1425_v22  ;;  %v1427_v8 = vpop.f32.mrf.mxu0  ;;  %4147 = vmatprep.subr.bf16.mxu1 %v5434_v50  ;;  %v5438_v50 = vld [vmem:[%s8090_s3 + $0x110] ss:$8 sps:$4 sm:$0xff]   ;;  %v5443_v22 = vld [vmem:[%s8090_s3 + $0x4] ss:$8 sps:$4 sm:$0xff]  }
 0x16a   : > { %v1620_v14 = vpop.f32.mrf.mxu1 }
 0x16b   : > { %v6866_v51 = vadd.f32 %v1620_v14, %v1427_v8  ;;  %v1429_v27 = vpop.f32.mrf.mxu0  ;;  %4107 = vmatpush1.bf16.msra.mxu0 %v5429_v58  ;;  %v5813_v58 = vld [vmem:[%s8088_s1 + $0x98] ss:$24 sps:$4 sm:$0xff]   ;;  %v5814_v14 = vld [vmem:[%s8088_s1 + $0xcc] ss:$24 sps:$4 sm:$0xff]  }
 0x16c   : > { %v1622_v33 = vpop.f32.mrf.mxu1  ;;  %4148 = vmatpush1.bf16.msra.mxu1 %v5432_v24  ;;  %4108 = vmatprep.subr.bf16.mxu0 %v5437_v46  ;;  %v5446_v24 = vld [vmem:[%s8090_s3 + $0x104] ss:$8 sps:$4 sm:$0xff]  }
 0x16d   : > { %v6877_v35 = vadd.f32 %v1622_v33, %v1429_v27  ;;  %v1433_v8 = vpop.f32.mrf.mxu0  ;;  %2086 = vmatmul.mubr.bf16.gmra.mxu0 %v5813_v58  ;;  %4149 = vmatprep.subr.bf16.mxu1 %v5440_v31  ;;  %v5441_v31 = vld [vmem:[%s8090_s3] ss:$8 sps:$4 sm:$0xff]  }
 0x16e   : > { %v1626_v46 = vpop.f32.mrf.mxu1  ;;  %2247 = vmatmul.mubr.bf16.gmra.mxu1 %v6462_v55  ;;  %2093 = vmatprep.mubr.bf16.mxu0 %v5814_v14  ;;  %v5444_v55 = vld [vmem:[%s8090_s3 + $0x100] ss:$8 sps:$4 sm:$0xff]  }
 0x16f   : > { %8115 = vst [vmem:[#allocation18_spill] sm:$0xff] %v6877_v35  ;;  %v6889_v33 = vadd.f32 %v1626_v46, %v1433_v8  ;;  %v1435_v27 = vpop.f32.mrf.mxu0  ;;  %2254 = vmatprep.mubr.bf16.mxu1 %v6471_v62  ;;  %4109 = vmatpush1.bf16.msra.mxu0 %v5435_v16  ;;  %v5449_v8 = vld [vmem:[%s8090_s3 + $0xf4] ss:$8 sps:$4 sm:$0xff]  }
 0x170   : > { %v1628_v58 = vpop.f32.mrf.mxu1  ;;  %4150 = vmatpush1.bf16.msra.mxu1 %v5438_v50  ;;  %4110 = vmatprep.subr.bf16.mxu0 %v5443_v22  ;;  %v5452_v62 = vld [vmem:[%s8090_s3 + $0x1f4] ss:$8 sps:$4 sm:$0xff]   ;;  %v5447_v22 = vld [vmem:[%s8090_s3 + $0xf0] ss:$8 sps:$4 sm:$0xff]  }
 0x171   : > { %8116 = vst [vmem:[#allocation19_spill] sm:$0xff] %v6889_v33  ;;  %v6901_v46 = vadd.f32 %v1628_v58, %v1435_v27  ;;  %v1437_v14 = vpop.f32.mrf.mxu0  ;;  %4151 = vmatprep.subr.bf16.mxu1 %v5446_v24  ;;  %v5450_v24 = vld [vmem:[%s8090_s3 + $0x1f0] ss:$8 sps:$4 sm:$0xff]   ;;  %v5455_v27 = vld [vmem:[%s8090_s3 + $0xe4] ss:$8 sps:$4 sm:$0xff]  }
 0x172   : > { %v1630_v16 = vpop.f32.mrf.mxu1 }
 0x173   : > { %v6906_v33 = vadd.f32 %v1630_v16, %v1437_v14  ;;  %v1439_v50 = vpop.f32.mrf.mxu0  ;;  %4111 = vmatpush1.bf16.msra.mxu0 %v5441_v31  ;;  %v5815_v31 = vld [vmem:[%s8088_s1 + $0xc8] ss:$24 sps:$4 sm:$0xff]   ;;  %v5816_v16 = vld [vmem:[%s8088_s1 + $0xfc] ss:$24 sps:$4 sm:$0xff]  }
 0x174   : > { %v1632_v35 = vpop.f32.mrf.mxu1  ;;  %4152 = vmatpush1.bf16.msra.mxu1 %v5444_v55  ;;  %4112 = vmatprep.subr.bf16.mxu0 %v5449_v8  ;;  %v5458_v55 = vld [vmem:[%s8090_s3 + $0x1e4] ss:$8 sps:$4 sm:$0xff]  }
 0x175   : > { %v6917_v58 = vadd.f32 %v1632_v35, %v1439_v50  ;;  %v1443_v14 = vpop.f32.mrf.mxu0  ;;  %2094 = vmatmul.mubr.bf16.gmra.mxu0 %v5815_v31  ;;  %4153 = vmatprep.subr.bf16.mxu1 %v5452_v62  ;;  %v5453_v62 = vld [vmem:[%s8090_s3 + $0xe0] ss:$8 sps:$4 sm:$0xff]  }
 0x176   : > { %v1636_v8 = vpop.f32.mrf.mxu1  ;;  %2255 = vmatmul.mubr.bf16.gmra.mxu1 %v6490_v25  ;;  %2101 = vmatprep.mubr.bf16.mxu0 %v5816_v16  ;;  %v5456_v25 = vld [vmem:[%s8090_s3 + $0x1e0] ss:$8 sps:$4 sm:$0xff]  }
 0x177   : > { %8117 = vst [vmem:[#allocation20_spill] sm:$0xff] %v6917_v58  ;;  %v6929_v35 = vadd.f32 %v1636_v8, %v1443_v14  ;;  %v1445_v50 = vpop.f32.mrf.mxu0  ;;  %2262 = vmatprep.mubr.bf16.mxu1 %v6498_v30  ;;  %4113 = vmatpush2.bf16.msra.mxu0 %v5447_v22  ;;  %v5461_v14 = vld [vmem:[%s8090_s3 + $0xd4] ss:$8 sps:$4 sm:$0xff]  }
 0x178   : > { %v1638_v31 = vpop.f32.mrf.mxu1  ;;  %4154 = vmatpush2.bf16.msra.mxu1 %v5450_v24  ;;  %4114 = vmatprep.subr.bf16.mxu0 %v5455_v27  ;;  %v5464_v30 = vld [vmem:[%s8090_s3 + $0x1d4] ss:$8 sps:$4 sm:$0xff]   ;;  %v5459_v27 = vld [vmem:[%s8090_s3 + $0xd0] ss:$8 sps:$4 sm:$0xff]  }
 0x179   : > { %8118 = vst [vmem:[#allocation21_spill] sm:$0xff] %v6929_v35  ;;  %v6941_v8 = vadd.f32 %v1638_v31, %v1445_v50  ;;  %v1447_v16 = vpop.f32.mrf.mxu0  ;;  %4155 = vmatprep.subr.bf16.mxu1 %v5458_v55  ;;  %v5462_v55 = vld [vmem:[%s8090_s3 + $0x1d0] ss:$8 sps:$4 sm:$0xff]   ;;  %v5467_v50 = vld [vmem:[%s8090_s3 + $0xc4] ss:$8 sps:$4 sm:$0xff]  }
 0x17a   : > { %v1640_v22 = vpop.f32.mrf.mxu1 }
 0x17b   : > { %v6946_v35 = vadd.f32 %v1640_v22, %v1447_v16  ;;  %v1449_v24 = vpop.f32.mrf.mxu0  ;;  %4115 = vmatpush2.bf16.msra.mxu0 %v5453_v62  ;;  %v5817_v62 = vld [vmem:[%s8088_s1 + $0xf8] ss:$24 sps:$4 sm:$0xff]   ;;  %v5818_v22 = vld [vmem:[%s8088_s1 + $0x12c] ss:$24 sps:$4 sm:$0xff]  }
 0x17c   : > { %v1642_v58 = vpop.f32.mrf.mxu1  ;;  %4156 = vmatpush2.bf16.msra.mxu1 %v5456_v25  ;;  %4116 = vmatprep.subr.bf16.mxu0 %v5461_v14  ;;  %v5470_v25 = vld [vmem:[%s8090_s3 + $0x1c4] ss:$8 sps:$4 sm:$0xff]  }
 0x17d   : > { %v6957_v31 = vadd.f32 %v1642_v58, %v1449_v24  ;;  %v1453_v16 = vpop.f32.mrf.mxu0  ;;  %2102 = vmatmul.mubr.bf16.gmra.mxu0 %v5817_v62  ;;  %4157 = vmatprep.subr.bf16.mxu1 %v5464_v30  ;;  %v5465_v30 = vld [vmem:[%s8090_s3 + $0xc0] ss:$8 sps:$4 sm:$0xff]  }
 0x17e   : > { %v1646_v14 = vpop.f32.mrf.mxu1  ;;  %2263 = vmatmul.mubr.bf16.gmra.mxu1 %v6514_v36  ;;  %2109 = vmatprep.mubr.bf16.mxu0 %v5818_v22  ;;  %v5468_v36 = vld [vmem:[%s8090_s3 + $0x1c0] ss:$8 sps:$4 sm:$0xff]  }
 0x17f   : > { %8119 = vst [vmem:[#allocation22_spill] sm:$0xff] %v6957_v31  ;;  %v6969_v58 = vadd.f32 %v1646_v14, %v1453_v16  ;;  %v1455_v24 = vpop.f32.mrf.mxu0  ;;  %2270 = vmatprep.mubr.bf16.mxu1 %v6519_v37  ;;  %4117 = vmatpush2.bf16.msra.mxu0 %v5459_v27  ;;  %v5473_v16 = vld [vmem:[%s8090_s3 + $0xb4] ss:$8 sps:$4 sm:$0xff]  }
 0x180   : > { %v1648_v62 = vpop.f32.mrf.mxu1  ;;  %4158 = vmatpush2.bf16.msra.mxu1 %v5462_v55  ;;  %4118 = vmatprep.subr.bf16.mxu0 %v5467_v50  ;;  %v5476_v37 = vld [vmem:[%s8090_s3 + $0x1b4] ss:$8 sps:$4 sm:$0xff]   ;;  %v5471_v50 = vld [vmem:[%s8090_s3 + $0xb0] ss:$8 sps:$4 sm:$0xff]  }
 0x181   : > { %8120 = vst [vmem:[#allocation23_spill] sm:$0xff] %v6969_v58  ;;  %v6981_v14 = vadd.f32 %v1648_v62, %v1455_v24  ;;  %v1457_v22 = vpop.f32.mrf.mxu0  ;;  %4159 = vmatprep.subr.bf16.mxu1 %v5470_v25  ;;  %v5474_v25 = vld [vmem:[%s8090_s3 + $0x1b0] ss:$8 sps:$4 sm:$0xff]   ;;  %v5479_v24 = vld [vmem:[%s8090_s3 + $0xa4] ss:$8 sps:$4 sm:$0xff]  }
 0x182   : > { %v1650_v27 = vpop.f32.mrf.mxu1 }
 0x183   : > { %v6986_v58 = vadd.f32 %v1650_v27, %v1457_v22  ;;  %v1459_v55 = vpop.f32.mrf.mxu0  ;;  %4119 = vmatpush2.bf16.msra.mxu0 %v5465_v30  ;;  %v5819_v30 = vld [vmem:[%s8088_s1 + $0x128] ss:$24 sps:$4 sm:$0xff]   ;;  %v5820_v27 = vld [vmem:[%s8088_s1 + $0x15c] ss:$24 sps:$4 sm:$0xff]  }
 0x184   : > { %v1652_v31 = vpop.f32.mrf.mxu1  ;;  %4160 = vmatpush2.bf16.msra.mxu1 %v5468_v36  ;;  %4120 = vmatprep.subr.bf16.mxu0 %v5473_v16  ;;  %v5482_v36 = vld [vmem:[%s8090_s3 + $0x1a4] ss:$8 sps:$4 sm:$0xff]  }
 0x185   : > { %v6997_v62 = vadd.f32 %v1652_v31, %v1459_v55  ;;  %v1463_v22 = vpop.f32.mrf.mxu0  ;;  %2110 = vmatmul.mubr.bf16.gmra.mxu0 %v5819_v30  ;;  %4161 = vmatprep.subr.bf16.mxu1 %v5476_v37  ;;  %v5477_v37 = vld [vmem:[%s8090_s3 + $0xa0] ss:$8 sps:$4 sm:$0xff]  }
 0x186   : > { %v1656_v16 = vpop.f32.mrf.mxu1  ;;  %2271 = vmatmul.mubr.bf16.gmra.mxu1 %v6532_v40  ;;  %2117 = vmatprep.mubr.bf16.mxu0 %v5820_v27  ;;  %v5480_v40 = vld [vmem:[%s8090_s3 + $0x1a0] ss:$8 sps:$4 sm:$0xff]  }
 0x187   : > { %8121 = vst [vmem:[#allocation24_spill] sm:$0xff] %v6997_v62  ;;  %v7009_v31 = vadd.f32 %v1656_v16, %v1463_v22  ;;  %v1465_v55 = vpop.f32.mrf.mxu0  ;;  %2278 = vmatprep.mubr.bf16.mxu1 %v6537_v41  ;;  %4121 = vmatpush2.bf16.msra.mxu0 %v5471_v50  ;;  %v5485_v22 = vld [vmem:[%s8090_s3 + $0x94] ss:$8 sps:$4 sm:$0xff]  }
 0x188   : > { %v1658_v30 = vpop.f32.mrf.mxu1  ;;  %4162 = vmatpush2.bf16.msra.mxu1 %v5474_v25  ;;  %4122 = vmatprep.subr.bf16.mxu0 %v5479_v24  ;;  %v5488_v41 = vld [vmem:[%s8090_s3 + $0x194] ss:$8 sps:$4 sm:$0xff]   ;;  %v5483_v24 = vld [vmem:[%s8090_s3 + $0x90] ss:$8 sps:$4 sm:$0xff]  }
 0x189   : > { %8122 = vst [vmem:[#allocation25_spill] sm:$0xff] %v7009_v31  ;;  %v7021_v16 = vadd.f32 %v1658_v30, %v1465_v55  ;;  %v1467_v27 = vpop.f32.mrf.mxu0  ;;  %4163 = vmatprep.subr.bf16.mxu1 %v5482_v36  ;;  %v5486_v36 = vld [vmem:[%s8090_s3 + $0x190] ss:$8 sps:$4 sm:$0xff]   ;;  %v5491_v55 = vld [vmem:[%s8090_s3 + $0x84] ss:$8 sps:$4 sm:$0xff]  }
 0x18a   : > { %v1660_v50 = vpop.f32.mrf.mxu1 }
 0x18b   : > { %v7026_v31 = vadd.f32 %v1660_v50, %v1467_v27  ;;  %v1469_v25 = vpop.f32.mrf.mxu0  ;;  %4123 = vmatpush2.bf16.msra.mxu0 %v5477_v37  ;;  %v5821_v37 = vld [vmem:[%s8088_s1 + $0x158] ss:$24 sps:$4 sm:$0xff]  }
 0x18c   : > { %v1662_v62 = vpop.f32.mrf.mxu1  ;;  %4164 = vmatpush2.bf16.msra.mxu1 %v5480_v40  ;;  %4124 = vmatprep.subr.bf16.mxu0 %v5485_v22  ;;  %v5494_v40 = vld [vmem:[%s8090_s3 + $0x184] ss:$8 sps:$4 sm:$0xff]  }
 0x18d   : > { %v7037_v30 = vadd.f32 %v1662_v62, %v1469_v25  ;;  %v1473_v27 = vpop.f32.mrf.mxu0  ;;  %2118 = vmatmul.mubr.bf16.gmra.mxu0 %v5821_v37  ;;  %4165 = vmatprep.subr.bf16.mxu1 %v5488_v41  ;;  %v5822_v62 = vld [vmem:[%s8088_s1 + $0x18c] ss:$24 sps:$4 sm:$0xff]   ;;  %v5489_v41 = vld [vmem:[%s8090_s3 + $0x80] ss:$8 sps:$4 sm:$0xff]  }
 0x18e   : > { %v1666_v22 = vpop.f32.mrf.mxu1  ;;  %2279 = vmatmul.mubr.bf16.gmra.mxu1 %v6550_v44  ;;  %2125 = vmatprep.mubr.bf16.mxu0 %v5822_v62  ;;  %v5492_v44 = vld [vmem:[%s8090_s3 + $0x180] ss:$8 sps:$4 sm:$0xff]  }
 0x18f   : > { %8123 = vst [vmem:[#allocation26_spill] sm:$0xff] %v7037_v30  ;;  %v7049_v50 = vadd.f32 %v1666_v22, %v1473_v27  ;;  %v1475_v25 = vpop.f32.mrf.mxu0  ;;  %2286 = vmatprep.mubr.bf16.mxu1 %v6555_v45  ;;  %4125 = vmatpush2.bf16.msra.mxu0 %v5483_v24  ;;  %v5497_v27 = vld [vmem:[%s8090_s3 + $0x274] ss:$8 sps:$4 sm:$0xff]  }
 0x190   : > { %v1668_v37 = vpop.f32.mrf.mxu1  ;;  %4166 = vmatpush2.bf16.msra.mxu1 %v5486_v36  ;;  %4126 = vmatprep.subr.bf16.mxu0 %v5491_v55  ;;  %v5500_v45 = vld [vmem:[%s8090_s3 + $0x374] ss:$8 sps:$4 sm:$0xff]  }
 0x191   : > { %8124 = vst [vmem:[#allocation27_spill] sm:$0xff] %v7049_v50  ;;  %v7061_v22 = vadd.f32 %v1668_v37, %v1475_v25  ;;  %v1477_v62 = vpop.f32.mrf.mxu0  ;;  %4167 = vmatprep.subr.bf16.mxu1 %v5494_v40  ;;  %v5823_v25 = vld [vmem:[%s8088_s1 + $0x188] ss:$24 sps:$4 sm:$0xff]  }
 0x192   : > { %v1670_v24 = vpop.f32.mrf.mxu1 }
 0x193   : > { %v7067_v36 = vadd.f32 %v1670_v24, %v1477_v62  ;;  %v1479_v55 = vpop.f32.mrf.mxu0  ;;  %4127 = vmatpush2.bf16.msra.mxu0 %v5489_v41 }
 0x194   : > { %v1672_v50 = vpop.f32.mrf.mxu1  ;;  %4168 = vmatpush2.bf16.msra.mxu1 %v5492_v44  ;;  %4178 = vmatprep.subr.bf16.mxu0 %v5497_v27 }
 0x195   : > { %v7069_v30 = vadd.f32 %v1672_v50, %v1479_v55  ;;  %v1709_v40 = vpop.f32.mrf.mxu0  ;;  %2126 = vmatmul.mubr.bf16.gmra.mxu0 %v5823_v25  ;;  %4219 = vmatprep.subr.bf16.mxu1 %v5500_v45  ;;  %v5824_v50 = vld [vmem:[%s8088_s1 + $0x1bc] ss:$24 sps:$4 sm:$0xff]  }
 0x196   : > { %v1710_v41 = vadd.f32 %v1709_v40, %v6580_v54  ;;  %v4924_v37 = vpop.f32.mrf.mxu1  ;;  %2287 = vmatmul.mubr.bf16.gmra.mxu1 %v6568_v48  ;;  %2133 = vmatprep.mubr.bf16.mxu0 %v5824_v50 }
 0x197   : > { %v1711_v44 = vpop.f32.mrf.mxu0  ;;  %2294 = vmatprep.mubr.bf16.mxu1 %v6573_v49 }
 0x198   : > { %2351 = vst [vmem:[%s7074_s20] sm:$0xff] %v1710_v41  ;;  %v1712_v27 = vadd.f32 %v1711_v44, %v6585_v60  ;;  %v4925_v62 = vpop.f32.mrf.mxu1  ;;  %v5825_v60 = vld [vmem:[%s8088_s1 + $0x1b8] ss:$24 sps:$4 sm:$0xff]  }
 0x199   : > { %v7087_v45 = vadd.f32 %v4925_v62, %v4924_v37  ;;  %v1713_v54 = vpop.f32.mrf.mxu0 }
 0x19a   : > { %2352 = vst [vmem:[%s7074_s20 + $0x8] sm:$0xff] %v1712_v27  ;;  %v1714_v24 = vadd.f32 %v1713_v54, %v6597_v2  ;;  %v4927_v48 = vpop.f32.mrf.mxu1 }
 0x19b   : > { %v1715_v55 = vpop.f32.mrf.mxu0 }
 0x19c   : > { %2355 = vst [vmem:[%s7074_s20 + $0x18] sm:$0xff] %v1714_v24  ;;  %v1716_v40 = vadd.f32 %v1715_v55, %v6599_v7  ;;  %v4928_v25 = vpop.f32.mrf.mxu1  ;;  %v5826_v7 = vld [vmem:[%s8088_s1 + $0x1ec] ss:$24 sps:$4 sm:$0xff]  }
 0x19d   : > { %v7093_v50 = vadd.f32 %v4928_v25, %v4927_v48  ;;  %v1719_v49 = vpop.f32.mrf.mxu0  ;;  %2134 = vmatmul.mubr.bf16.gmra.mxu0 %v5825_v60 }
 0x19e   : > { %2356 = vst [vmem:[%s7074_s20 + $0x20] sm:$0xff] %v1716_v40  ;;  %v1720_v41 = vadd.f32 %v1719_v49, %v6606_v15  ;;  %v4930_v2 = vpop.f32.mrf.mxu1  ;;  %2295 = vmatmul.mubr.bf16.gmra.mxu1 %v6590_v63  ;;  %2141 = vmatprep.mubr.bf16.mxu0 %v5826_v7 }
 0x19f   : > { %v1721_v37 = vpop.f32.mrf.mxu0  ;;  %2302 = vmatprep.mubr.bf16.mxu1 %v6595_v1 }
 0x1a0   : > { %2358 = vst [vmem:[%s7074_s20 + $0x30] sm:$0xff] %v1720_v41  ;;  %v1722_v44 = vadd.f32 %v1721_v37, %v6611_v23  ;;  %v4931_v27 = vpop.f32.mrf.mxu1  ;;  %v5827_v23 = vld [vmem:[%s8088_s1 + $0x1e8] ss:$24 sps:$4 sm:$0xff]  }
 0x1a1   : > { %v7107_v62 = vadd.f32 %v4931_v27, %v4930_v2  ;;  %v1723_v15 = vpop.f32.mrf.mxu0 }
 0x1a2   : > { %2359 = vst [vmem:[%s7074_s20 + $0x38] sm:$0xff] %v1722_v44  ;;  %v1724_v54 = vadd.f32 %v1723_v15, %v6623_v34  ;;  %v4933_v63 = vpop.f32.mrf.mxu1 }
 0x1a3   : > { %v1725_v24 = vpop.f32.mrf.mxu0 }
 0x1a4   : > { %2361 = vst [vmem:[%s7074_s20 + $0x48] sm:$0xff] %v1724_v54  ;;  %v1726_v48 = vadd.f32 %v1725_v24, %v6625_v39  ;;  %v4934_v55 = vpop.f32.mrf.mxu1  ;;  %v5828_v39 = vld [vmem:[%s8088_s1 + $0x21c] ss:$24 sps:$4 sm:$0xff]  }
 0x1a5   : > { %v7113_v40 = vadd.f32 %v4934_v55, %v4933_v63  ;;  %v1729_v1 = vpop.f32.mrf.mxu0  ;;  %2142 = vmatmul.mubr.bf16.gmra.mxu0 %v5827_v23 }
 0x1a6   : > { %2362 = vst [vmem:[%s7074_s20 + $0x50] sm:$0xff] %v1726_v48  ;;  %v1730_v25 = vadd.f32 %v1729_v1, %v6632_v47  ;;  %v4936_v34 = vpop.f32.mrf.mxu1  ;;  %2303 = vmatmul.mubr.bf16.gmra.mxu1 %v6616_v28  ;;  %2149 = vmatprep.mubr.bf16.mxu0 %v5828_v39 }
 0x1a7   : > { %v1731_v49 = vpop.f32.mrf.mxu0  ;;  %2310 = vmatprep.mubr.bf16.mxu1 %v6621_v32 }
 0x1a8   : > { %2364 = vst [vmem:[%s7074_s20 + $0x60] sm:$0xff] %v1730_v25  ;;  %v1732_v60 = vadd.f32 %v1731_v49, %v6637_v56  ;;  %v4937_v41 = vpop.f32.mrf.mxu1  ;;  %v5829_v56 = vld [vmem:[%s8088_s1 + $0x218] ss:$24 sps:$4 sm:$0xff]  }
 0x1a9   : > { %v7127_v2 = vadd.f32 %v4937_v41, %v4936_v34  ;;  %v1733_v47 = vpop.f32.mrf.mxu0 }
 0x1aa   : > { %2365 = vst [vmem:[%s7074_s20 + $0x68] sm:$0xff] %v1732_v60  ;;  %v1734_v7 = vadd.f32 %v1733_v47, %v6649_v3  ;;  %v4939_v28 = vpop.f32.mrf.mxu1 }
 0x1ab   : > { %v1735_v37 = vpop.f32.mrf.mxu0 }
 0x1ac   : > { %2367 = vst [vmem:[%s7074_s20 + $0x78] sm:$0xff] %v1734_v7  ;;  %v1736_v44 = vadd.f32 %v1735_v37, %v6651_v11  ;;  %v4940_v27 = vpop.f32.mrf.mxu1  ;;  %v5830_v11 = vld [vmem:[%s8088_s1 + $0x24c] ss:$24 sps:$4 sm:$0xff]   ;;  %v2452_v37 = vlaneseq }
 0x1ad   : > { %v7133_v15 = vadd.f32 %v4940_v27, %v4939_v28  ;;  %v1739_v32 = vpop.f32.mrf.mxu0  ;;  %2150 = vmatmul.mubr.bf16.gmra.mxu0 %v5829_v56  ;;  %v5833_v56 = vld [vmem:[%s8088_s1 + $0x278] ss:$24 sps:$4 sm:$0xff]  }
 0x1ae   : > { %2368 = vst [vmem:[%s7074_s20 + $0x80] sm:$0xff] %v1736_v44  ;;  %v1740_v54 = vadd.f32 %v1739_v32, %v6656_v19  ;;  %v4942_v3 = vpop.f32.mrf.mxu1  ;;  %2311 = vmatmul.mubr.bf16.gmra.mxu1 %v6642_v59  ;;  %2157 = vmatprep.mubr.bf16.mxu0 %v5830_v11  ;;  %v7186_v11 = vshrl.u32 %v2452_v37, 7  ;;  %vm4444_vm1 = vcmp.lt.s32.totalorder %v2452_v37, 256 }
 0x1af   : > { %v1741_v63 = vpop.f32.mrf.mxu0  ;;  %2318 = vmatprep.mubr.bf16.mxu1 %v6647_v0 }
 0x1b0   : > { %2370 = vst [vmem:[%s7074_s20 + $0x90] sm:$0xff] %v1740_v54  ;;  %v1742_v24 = vadd.f32 %v1741_v63, %v6659_v29  ;;  %v4943_v48 = vpop.f32.mrf.mxu1  ;;  %v5831_v29 = vld [vmem:[%s8088_s1 + $0x248] ss:$24 sps:$4 sm:$0xff]  }
 0x1b1   : > { %v7147_v55 = vadd.f32 %v4943_v48, %v4942_v3  ;;  %v1743_v19 = vpop.f32.mrf.mxu0  ;;  %v8125_v3 = vld [vmem:[#allocation2_spill] sm:$0xff]  ;;  %v8127_v48 = vld [vmem:[#allocation4_spill] sm:$0xff] }
 0x1b2   : > { %2371 = vst [vmem:[%s7074_s20 + $0x98] sm:$0xff] %v1742_v24  ;;  %v1744_v1 = vadd.f32 %v1743_v19, %v6671_v43  ;;  %v4945_v59 = vpop.f32.mrf.mxu1  ;;  %v8126_v24 = vld [vmem:[#allocation3_spill] sm:$0xff] }
 0x1b3   : > { %v1745_v23 = vpop.f32.mrf.mxu0 }
 0x1b4   : > { %2373 = vst [vmem:[%s7074_s20 + $0xa8] sm:$0xff] %v1744_v1  ;;  %v1746_v25 = vadd.f32 %v1745_v23, %v6673_v6  ;;  %v4946_v34 = vpop.f32.mrf.mxu1  ;;  %v5832_v6 = vld [vmem:[%s8088_s1 + $0x27c] ss:$24 sps:$4 sm:$0xff]  }
 0x1b5   : > { %v7153_v39 = vadd.f32 %v4946_v34, %v4945_v59  ;;  %v1749_v0 = vpop.f32.mrf.mxu0  ;;  %2158 = vmatmul.mubr.bf16.gmra.mxu0 %v5831_v29  ;;  %v7203_v34 = vsub.s32 1, %v7186_v11  ;;  %v7206_v29 = vld [vmem:[%s7194_s29] sm:$0xff] }
 0x1b6   : > { %2374 = vst [vmem:[%s7074_s20 + $0xb0] sm:$0xff] %v1746_v25  ;;  %v1750_v49 = vadd.f32 %v1749_v0, %v6678_v57  ;;  %v4948_v43 = vpop.f32.mrf.mxu1  ;;  %2319 = vmatmul.mubr.bf16.gmra.mxu1 %v6664_v38  ;;  %2165 = vmatprep.mubr.bf16.mxu0 %v5832_v6 }
 0x1b7   : > { %v1751_v60 = vpop.f32.mrf.mxu0  ;;  %2326 = vmatprep.mubr.bf16.mxu1 %v6669_v4 }
 0x1b8   : > { %2376 = vst [vmem:[%s7074_s20 + $0xc0] sm:$0xff] %v1750_v49  ;;  %v1752_v41 = vadd.f32 %v1751_v60, %v6681_v9  ;;  %v4949_v47 = vpop.f32.mrf.mxu1  ;;  %v2466_v49 = vsub.s32 3, %v7186_v11 }
 0x1b9   : > { %v7167_v7 = vadd.f32 %v4949_v47, %v4948_v43  ;;  %v1753_v57 = vpop.f32.mrf.mxu0  ;;  %v8128_v43 = vld [vmem:[#allocation7_spill] sm:$0xff] }
 0x1ba   : > { %2377 = vst [vmem:[%s7074_s20 + $0xc8] sm:$0xff] %v1752_v41  ;;  %v1754_v38 = vadd.f32 %v1753_v57, %v6693_v26  ;;  %v4951_v28 = vpop.f32.mrf.mxu1 }
 0x1bb   : > { %v1755_v44 = vpop.f32.mrf.mxu0 }
 0x1bc   : > { %2379 = vst [vmem:[%s7074_s20 + $0xd8] sm:$0xff] %v1754_v38  ;;  %v1756_v27 = vadd.f32 %v1755_v44, %v6695_v10  ;;  %v4952_v4 = vpop.f32.mrf.mxu1  ;;  %v5834_v10 = vld [vmem:[%s8088_s1 + $0x2ac] ss:$24 sps:$4 sm:$0xff]   ;;  %v8129_v38 = vld [vmem:[#allocation5_spill] sm:$0xff]  ;;  %v2459_v44 = vrot.slane %v7206_v29, %v7203_v34 }
 0x1bd   : > { %v7173_v32 = vadd.f32 %v4952_v4, %v4951_v28  ;;  %v1759_v9 = vpop.f32.mrf.mxu0  ;;  %2166 = vmatmul.mubr.bf16.gmra.mxu0 %v5833_v56  ;;  %v5836_v28 = vld [vmem:[%s8088_s1 + $0x2dc] ss:$24 sps:$4 sm:$0xff]   ;;  %v8130_v4 = vld [vmem:[#allocation6_spill] sm:$0xff] }
 0x1be   : > { %2380 = vst [vmem:[%s7074_s20 + $0xe0] sm:$0xff] %v1756_v27  ;;  %v1760_v26 = vadd.f32 %v1759_v9, %v6700_v52  ;;  %v4954_v54 = vpop.f32.mrf.mxu1  ;;  %2327 = vmatmul.mubr.bf16.gmra.mxu1 %v8125_v3  ;;  %2173 = vmatprep.mubr.bf16.mxu0 %v5834_v10  ;;  %v2467_v9 = vrot.slane %v7206_v29, %v2466_v49  ;;  %v7233_v3 = vsub.s32 0, %v7186_v11 }
 0x1bf   : > { %v1761_v63 = vpop.f32.mrf.mxu0  ;;  %2334 = vmatprep.mubr.bf16.mxu1 %v8126_v24  ;;  %v2533_v24 = vpack.c.bf16 %v2459_v44, %v2459_v44 }
 0x1c0   : > { %2382 = vst [vmem:[%s7074_s20 + $0xf0] sm:$0xff] %v1760_v26  ;;  %v1762_v19 = vadd.f32 %v1761_v63, %v8127_v48  ;;  %v4955_v1 = vpop.f32.mrf.mxu1  ;;  %v2462_v48 = vsub.s32 2, %v7186_v11 }
 0x1c1   : > { %v7196_v52 = vadd.f32 %v4955_v1, %v4954_v54  ;;  %v1763_v59 = vpop.f32.mrf.mxu0  ;;  %v2535_v1 = vpack.c.bf16 %v2467_v9, %v2467_v9 }
 0x1c2   : > { %2383 = vst [vmem:[%s7074_s20 + $0xf8] sm:$0xff] %v1762_v19  ;;  %v1764_v23 = vadd.f32 %v1763_v59, %v6715_v42  ;;  %v7200_v25 = vpop.f32.mrf.mxu1  ;;  %v5835_v42 = vld [vmem:[%s8088_s1 + $0x2a8] ss:$24 sps:$4 sm:$0xff]  }
 0x1c3   : > { %v1765_v0 = vpop.f32.mrf.mxu0 }
 0x1c4   : > { %2385 = vst [vmem:[%s7074_s20 + $0x108] sm:$0xff] %v1764_v23  ;;  %v1766_v6 = vadd.f32 %v1765_v0, %v8128_v43  ;;  %v7211_v60 = vpop.f32.mrf.mxu1  ;;  %v2474_v0 = vsub.s32 5, %v7186_v11 }
 0x1c5   : > { %v1769_v41 = vpop.f32.mrf.mxu0  ;;  %2174 = vmatmul.mubr.bf16.gmra.mxu0 %v5835_v42  ;;  %v8132_v42 = vld [vmem:[#allocation10_spill] sm:$0xff] }
 0x1c6   : > { %2386 = vst [vmem:[%s7074_s20 + $0x110] sm:$0xff] %v1766_v6  ;;  %v1770_v47 = vadd.f32 %v1769_v41, %v6722_v5  ;;  %v4960_v57 = vpop.f32.mrf.mxu1  ;;  %2335 = vmatmul.mubr.bf16.gmra.mxu1 %v8129_v38  ;;  %2181 = vmatprep.mubr.bf16.mxu0 %v5836_v28  ;;  %v2455_v6 = vrot.slane %v7206_v29, %v7233_v3  ;;  %v2482_v41 = vsub.s32 7, %v7186_v11  ;;  %v8133_v38 = vld [vmem:[#allocation8_spill] sm:$0xff] }
 0x1c7   : > { %v1771_v27 = vpop.f32.mrf.mxu0  ;;  %2342 = vmatprep.mubr.bf16.mxu1 %v8130_v4  ;;  %v2463_v28 = vrot.slane %v7206_v29, %v2462_v48 }
 0x1c8   : > { %2388 = vst [vmem:[%s7074_s20 + $0x120] sm:$0xff] %v1770_v47  ;;  %v1772_v5 = vadd.f32 %v1771_v27, %v6725_v13  ;;  %v4961_v56 = vpop.f32.mrf.mxu1  ;;  %v8131_v13 = vld [vmem:[#allocation9_spill] sm:$0xff]  ;;  %v8134_v27 = vld [vmem:[#allocation11_spill] sm:$0xff] }
 0x1c9   : > { %v7230_v26 = vadd.f32 %v4961_v56, %v4960_v57  ;;  %v1773_v54 = vpop.f32.mrf.mxu0 }
 0x1ca   : > { %2389 = vst [vmem:[%s7074_s20 + $0x128] sm:$0xff] %v1772_v5  ;;  %v1774_v10 = vadd.f32 %v1773_v54, %v6732_v21  ;;  %v7237_v63 = vpop.f32.mrf.mxu1  ;;  %v5837_v21 = vld [vmem:[%s8088_s1 + $0x2d8] ss:$24 sps:$4 sm:$0xff]   ;;  %v2475_v5 = vrot.slane %v7206_v29, %v2474_v0 }
 0x1cb   : > { %v1775_v19 = vpop.f32.mrf.mxu0 }
 0x1cc   : > { %2391 = vst [vmem:[%s7074_s20 + $0x138] sm:$0xff] %v1774_v10  ;;  %v1776_v59 = vadd.f32 %v1775_v19, %v8131_v13  ;;  %v7242_v23 = vpop.f32.mrf.mxu1  ;;  %v2532_v10 = vpack.c.bf16 %v2455_v6, %v2455_v6  ;;  %v8135_v19 = vld [vmem:[#allocation12_spill] sm:$0xff] }
 0x1cd   : > { %v1779_v43 = vpop.f32.mrf.mxu0  ;;  %2182 = vmatmul.mubr.bf16.gmra.mxu0 %v5837_v21  ;;  %v5498_v6 = vld [vmem:[%s8090_s3 + $0x370] ss:$8 sps:$4 sm:$0xff]  }
 0x1ce   : > { %2392 = vst [vmem:[%s7074_s20 + $0x140] sm:$0xff] %v1776_v59  ;;  %v1780_v47 = vadd.f32 %v1779_v43, %v8132_v42  ;;  %v4966_v57 = vpop.f32.mrf.mxu1  ;;  %2343 = vmatmul.mubr.bf16.gmra.mxu1 %v8133_v38  ;;  %4128 = vmatprep.mubr.bf16.mxu0 %v2533_v24  ;;  %v2483_v24 = vrot.slane %v7206_v29, %v2482_v41  ;;  %v5495_v59 = vld [vmem:[%s8090_s3 + $0x270] ss:$8 sps:$4 sm:$0xff]   ;;  %v5503_v42 = vld [vmem:[%s8090_s3 + $0x264] ss:$8 sps:$4 sm:$0xff]  }
 0x1cf   : > { %v1781_v44 = vpop.f32.mrf.mxu0  ;;  %4169 = vmatprep.mubr.bf16.mxu1 %v2535_v1  ;;  %v2534_v43 = vpack.c.bf16 %v2463_v28, %v2463_v28  ;;  %v2537_v28 = vpack.c.bf16 %v2475_v5, %v2475_v5  ;;  %v5504_v5 = vld [vmem:[%s8090_s3 + $0x360] ss:$8 sps:$4 sm:$0xff]  }
 0x1d0   : > { %2394 = vst [vmem:[%s7074_s20 + $0x150] sm:$0xff] %v1780_v47  ;;  %v1782_v4 = vadd.f32 %v1781_v44, %v8134_v27  ;;  %v4967_v9 = vpop.f32.mrf.mxu1  ;;  %v8136_v47 = vld [vmem:[#allocation13_spill] sm:$0xff]  ;;  %v5506_v44 = vld [vmem:[%s8090_s3 + $0x364] ss:$8 sps:$4 sm:$0xff]  }
 0x1d1   : > { %v7262_v56 = vadd.f32 %v4967_v9, %v4966_v57  ;;  %v1783_v54 = vpop.f32.mrf.mxu0  ;;  %v8137_v9 = vld [vmem:[#allocation14_spill] sm:$0xff] }
 0x1d2   : > { %2395 = vst [vmem:[%s7074_s20 + $0x158] sm:$0xff] %v1782_v4  ;;  %v1784_v1 = vadd.f32 %v1783_v54, %v8135_v19  ;;  %v7269_v13 = vpop.f32.mrf.mxu1  ;;  %v2539_v4 = vpack.c.bf16 %v2483_v24, %v2483_v24 }
 0x1d3   : > { %v1785_v21 = vpop.f32.mrf.mxu0 }
 0x1d4   : > { %2397 = vst [vmem:[%s7074_s20 + $0x168] sm:$0xff] %v1784_v1  ;;  %v1786_v57 = vadd.f32 %v1785_v21, %v8136_v47  ;;  %v7282_v38 = vpop.f32.mrf.mxu1  ;;  %v5501_v1 = vld [vmem:[%s8090_s3 + $0x260] ss:$8 sps:$4 sm:$0xff]  }
 0x1d5   : > { %v1789_v27 = vpop.f32.mrf.mxu0  ;;  %4129 = vmatmul.mubr.bf16.vlgmr.msra.gmra.mxu0 %v2532_v10  ;;  %v5509_v10 = vld [vmem:[%s8090_s3 + $0x254] ss:$8 sps:$4 sm:$0xff]  }
 0x1d6   : > { %2398 = vst [vmem:[%s7074_s20 + $0x170] sm:$0xff] %v1786_v57  ;;  %v1790_v54 = vadd.f32 %v1789_v27, %v8137_v9  ;;  %v4972_v19 = vpop.f32.mrf.mxu1  ;;  %4170 = vmatmul.mubr.bf16.vlgmr.msra.gmra.mxu1 %v2534_v43  ;;  %4179 = vmatpush1.bf16.msra.mxu0 %v5495_v59  ;;  %v5512_v43 = vld [vmem:[%s8090_s3 + $0x354] ss:$8 sps:$4 sm:$0xff]   ;;  %v5515_v27 = vld [vmem:[%s8090_s3 + $0x244] ss:$8 sps:$4 sm:$0xff]  }
 0x1d7   : > { %4220 = vmatpush1.bf16.msra.mxu1 %v5498_v6  ;;  %v1791_v21 = vpop.f32.mrf.mxu0  ;;  %4180 = vmatprep.subr.bf16.mxu0 %v5503_v42  ;;  %v5518_v9 = vld [vmem:[%s8090_s3 + $0x344] ss:$8 sps:$4 sm:$0xff]  }
 0x1d8   : > { %2400 = vst [vmem:[%s7074_s20 + $0x180] sm:$0xff] %v1790_v54  ;;  %v1792_v24 = vadd.f32 %v1791_v21, %v6784_v61  ;;  %v4973_v59 = vpop.f32.mrf.mxu1  ;;  %4221 = vmatprep.subr.bf16.mxu1 %v5506_v44  ;;  %4210 = vmatprep.mubr.bf16.mxu0 %v2537_v28  ;;  %v5507_v61 = vld [vmem:[%s8090_s3 + $0x250] ss:$8 sps:$4 sm:$0xff]  }
 0x1d9   : > { %v7303_v6 = vadd.f32 %v4973_v59, %v4972_v19  ;;  %v1793_v42 = vpop.f32.mrf.mxu0  ;;  %4251 = vmatprep.mubr.bf16.mxu1 %v2539_v4  ;;  %v5510_v28 = vld [vmem:[%s8090_s3 + $0x350] ss:$8 sps:$4 sm:$0xff]   ;;  %v5521_v59 = vld [vmem:[%s8090_s3 + $0x234] ss:$8 sps:$4 sm:$0xff]  }
 0x1da   : > { %2401 = vst [vmem:[%s7074_s20 + $0x188] sm:$0xff] %v1792_v24  ;;  %v1794_v47 = vadd.f32 %v1793_v42, %v6786_v12  ;;  %v4975_v57 = vpop.f32.mrf.mxu1  ;;  %4181 = vmatpush1.bf16.msra.mxu0 %v5501_v1  ;;  %v8138_v1 = vld [vmem:[#allocation15_spill] sm:$0xff] }
 0x1db   : > { %4222 = vmatpush1.bf16.msra.mxu1 %v5504_v5  ;;  %v1795_v44 = vpop.f32.mrf.mxu0  ;;  %4182 = vmatprep.subr.bf16.mxu0 %v5509_v10  ;;  %v5516_v24 = vld [vmem:[%s8090_s3 + $0x340] ss:$8 sps:$4 sm:$0xff]  }
 0x1dc   : > { %2403 = vst [vmem:[%s7074_s20 + $0x198] sm:$0xff] %v1794_v47  ;;  %v1796_v12 = vadd.f32 %v1795_v44, %v6797_v20  ;;  %v4976_v4 = vpop.f32.mrf.mxu1  ;;  %4223 = vmatprep.subr.bf16.mxu1 %v5512_v43  ;;  %v5513_v20 = vld [vmem:[%s8090_s3 + $0x240] ss:$8 sps:$4 sm:$0xff]   ;;  %v5524_v47 = vld [vmem:[%s8090_s3 + $0x334] ss:$8 sps:$4 sm:$0xff]  }
 0x1dd   : > { %v7321_v54 = vadd.f32 %v4976_v4, %v4975_v57  ;;  %v1799_v19 = vpop.f32.mrf.mxu0  ;;  %v5527_v4 = vld [vmem:[%s8090_s3 + $0x224] ss:$8 sps:$4 sm:$0xff]  }
 0x1de   : > { %2404 = vst [vmem:[%s7074_s20 + $0x1a0] sm:$0xff] %v1796_v12  ;;  %v1800_v21 = vadd.f32 %v1799_v19, %v8138_v1  ;;  %v4978_v5 = vpop.f32.mrf.mxu1  ;;  %4183 = vmatpush1.bf16.msra.mxu0 %v5507_v61  ;;  %v5522_v12 = vld [vmem:[%s8090_s3 + $0x330] ss:$8 sps:$4 sm:$0xff]   ;;  %v5530_v1 = vld [vmem:[%s8090_s3 + $0x324] ss:$8 sps:$4 sm:$0xff]  }
 0x1df   : > { %4224 = vmatpush1.bf16.msra.mxu1 %v5510_v28  ;;  %v1801_v10 = vpop.f32.mrf.mxu0  ;;  %4184 = vmatprep.subr.bf16.mxu0 %v5515_v27 }
 0x1e0   : > { %2406 = vst [vmem:[%s7074_s20 + $0x1b0] sm:$0xff] %v1800_v21  ;;  %v1802_v43 = vadd.f32 %v1801_v10, %v6821_v17  ;;  %v4979_v42 = vpop.f32.mrf.mxu1  ;;  %4225 = vmatprep.subr.bf16.mxu1 %v5518_v9  ;;  %v5519_v17 = vld [vmem:[%s8090_s3 + $0x230] ss:$8 sps:$4 sm:$0xff]  }
 0x1e1   : > { %v7339_v57 = vadd.f32 %v4979_v42, %v4978_v5  ;;  %v1803_v61 = vpop.f32.mrf.mxu0  ;;  %v5528_v42 = vld [vmem:[%s8090_s3 + $0x320] ss:$8 sps:$4 sm:$0xff]  }
 0x1e2   : > { %2407 = vst [vmem:[%s7074_s20 + $0x1b8] sm:$0xff] %v1802_v43  ;;  %v1804_v44 = vadd.f32 %v1803_v61, %v6826_v53  ;;  %v4981_v28 = vpop.f32.mrf.mxu1  ;;  %4185 = vmatpush1.bf16.msra.mxu0 %v5513_v20  ;;  %v8139_v53 = vld [vmem:[#allocation16_spill] sm:$0xff]  ;;  %v8140_v20 = vld [vmem:[#allocation17_spill] sm:$0xff] }
 0x1e3   : > { %4226 = vmatpush1.bf16.msra.mxu1 %v5516_v24  ;;  %v1805_v27 = vpop.f32.mrf.mxu0  ;;  %4186 = vmatprep.subr.bf16.mxu0 %v5521_v59  ;;  %v5525_v59 = vld [vmem:[%s8090_s3 + $0x220] ss:$8 sps:$4 sm:$0xff]  }
 0x1e4   : > { %2409 = vst [vmem:[%s7074_s20 + $0x1c8] sm:$0xff] %v1804_v44  ;;  %v1806_v9 = vadd.f32 %v1805_v27, %v8139_v53  ;;  %v4982_v19 = vpop.f32.mrf.mxu1  ;;  %4227 = vmatprep.subr.bf16.mxu1 %v5524_v47  ;;  %v5533_v47 = vld [vmem:[%s8090_s3 + $0x214] ss:$8 sps:$4 sm:$0xff]  }
 0x1e5   : > { %v7357_v21 = vadd.f32 %v4982_v19, %v4981_v28  ;;  %v1809_v5 = vpop.f32.mrf.mxu0  ;;  %v5536_v28 = vld [vmem:[%s8090_s3 + $0x314] ss:$8 sps:$4 sm:$0xff]   ;;  %v5539_v19 = vld [vmem:[%s8090_s3 + $0x204] ss:$8 sps:$4 sm:$0xff]  }
 0x1e6   : > { %2410 = vst [vmem:[%s7074_s20 + $0x1d0] sm:$0xff] %v1806_v9  ;;  %v1810_v10 = vadd.f32 %v1809_v5, %v8140_v20  ;;  %v4984_v24 = vpop.f32.mrf.mxu1  ;;  %4187 = vmatpush1.bf16.msra.mxu0 %v5519_v17  ;;  %v5534_v9 = vld [vmem:[%s8090_s3 + $0x310] ss:$8 sps:$4 sm:$0xff]   ;;  %v5542_v20 = vld [vmem:[%s8090_s3 + $0x304] ss:$8 sps:$4 sm:$0xff]  }
 0x1e7   : > { %4228 = vmatpush1.bf16.msra.mxu1 %v5522_v12  ;;  %v1811_v43 = vpop.f32.mrf.mxu0  ;;  %4188 = vmatprep.subr.bf16.mxu0 %v5527_v4 }
 0x1e8   : > { %2412 = vst [vmem:[%s7074_s20 + $0x1e0] sm:$0xff] %v1810_v10  ;;  %v1812_v61 = vadd.f32 %v1811_v43, %v6861_v18  ;;  %v4985_v44 = vpop.f32.mrf.mxu1  ;;  %4229 = vmatprep.subr.bf16.mxu1 %v5530_v1  ;;  %v5531_v18 = vld [vmem:[%s8090_s3 + $0x210] ss:$8 sps:$4 sm:$0xff]  }
 0x1e9   : > { %v7375_v17 = vadd.f32 %v4985_v44, %v4984_v24  ;;  %v1813_v27 = vpop.f32.mrf.mxu0  ;;  %v5540_v44 = vld [vmem:[%s8090_s3 + $0x300] ss:$8 sps:$4 sm:$0xff]  }
 0x1ea   : > { %2413 = vst [vmem:[%s7074_s20 + $0x1e8] sm:$0xff] %v1812_v61  ;;  %v1814_v12 = vadd.f32 %v1813_v27, %v6866_v51  ;;  %v4987_v4 = vpop.f32.mrf.mxu1  ;;  %4189 = vmatpush1.bf16.msra.mxu0 %v5525_v59  ;;  %v8141_v51 = vld [vmem:[#allocation18_spill] sm:$0xff]  ;;  %v8142_v59 = vld [vmem:[#allocation19_spill] sm:$0xff] }
 0x1eb   : > { %4230 = vmatpush1.bf16.msra.mxu1 %v5528_v42  ;;  %v1815_v53 = vpop.f32.mrf.mxu0  ;;  %4190 = vmatprep.subr.bf16.mxu0 %v5533_v47  ;;  %v5537_v47 = vld [vmem:[%s8090_s3 + $0x200] ss:$8 sps:$4 sm:$0xff]  }
 0x1ec   : > { %2415 = vst [vmem:[%s7074_s20 + $0x1f8] sm:$0xff] %v1814_v12  ;;  %v1816_v1 = vadd.f32 %v1815_v53, %v8141_v51  ;;  %v4988_v5 = vpop.f32.mrf.mxu1  ;;  %4231 = vmatprep.subr.bf16.mxu1 %v5536_v28  ;;  %v5545_v28 = vld [vmem:[%s8090_s3 + $0x2f4] ss:$8 sps:$4 sm:$0xff]  }
 0x1ed   : > { %v7393_v10 = vadd.f32 %v4988_v5, %v4987_v4  ;;  %v1819_v24 = vpop.f32.mrf.mxu0  ;;  %v5548_v4 = vld [vmem:[%s8090_s3 + $0x3f4] ss:$8 sps:$4 sm:$0xff]   ;;  %v5551_v5 = vld [vmem:[%s8090_s3 + $0x2e4] ss:$8 sps:$4 sm:$0xff]  }
 0x1ee   : > { %2416 = vst [vmem:[%s7074_s20 + $0x200] sm:$0xff] %v1816_v1  ;;  %v1820_v43 = vadd.f32 %v1819_v24, %v8142_v59  ;;  %v4990_v42 = vpop.f32.mrf.mxu1  ;;  %4191 = vmatpush1.bf16.msra.mxu0 %v5531_v18  ;;  %v5546_v1 = vld [vmem:[%s8090_s3 + $0x3f0] ss:$8 sps:$4 sm:$0xff]   ;;  %v5554_v59 = vld [vmem:[%s8090_s3 + $0x3e4] ss:$8 sps:$4 sm:$0xff]  }
 0x1ef   : > { %4232 = vmatpush1.bf16.msra.mxu1 %v5534_v9  ;;  %v1821_v61 = vpop.f32.mrf.mxu0  ;;  %4192 = vmatprep.subr.bf16.mxu0 %v5539_v19 }
 0x1f0   : > { %2418 = vst [vmem:[%s7074_s20 + $0x210] sm:$0xff] %v1820_v43  ;;  %v1822_v27 = vadd.f32 %v1821_v61, %v6901_v46  ;;  %v4991_v12 = vpop.f32.mrf.mxu1  ;;  %4233 = vmatprep.subr.bf16.mxu1 %v5542_v20  ;;  %v5543_v46 = vld [vmem:[%s8090_s3 + $0x2f0] ss:$8 sps:$4 sm:$0xff]  }
 0x1f1   : > { %v7411_v18 = vadd.f32 %v4991_v12, %v4990_v42  ;;  %v1823_v53 = vpop.f32.mrf.mxu0  ;;  %v5552_v12 = vld [vmem:[%s8090_s3 + $0x3e0] ss:$8 sps:$4 sm:$0xff]  }
 0x1f2   : > { %2419 = vst [vmem:[%s7074_s20 + $0x218] sm:$0xff] %v1822_v27  ;;  %v1824_v9 = vadd.f32 %v1823_v53, %v6906_v33  ;;  %v4993_v19 = vpop.f32.mrf.mxu1  ;;  %4193 = vmatpush1.bf16.msra.mxu0 %v5537_v47  ;;  %v8143_v33 = vld [vmem:[#allocation20_spill] sm:$0xff]  ;;  %v8144_v47 = vld [vmem:[#allocation21_spill] sm:$0xff] }
 0x1f3   : > { %4234 = vmatpush1.bf16.msra.mxu1 %v5540_v44  ;;  %v1825_v51 = vpop.f32.mrf.mxu0  ;;  %4194 = vmatprep.subr.bf16.mxu0 %v5545_v28  ;;  %v5549_v28 = vld [vmem:[%s8090_s3 + $0x2e0] ss:$8 sps:$4 sm:$0xff]  }
 0x1f4   : > { %2421 = vst [vmem:[%s7074_s20 + $0x228] sm:$0xff] %v1824_v9  ;;  %v1826_v20 = vadd.f32 %v1825_v51, %v8143_v33  ;;  %v4994_v24 = vpop.f32.mrf.mxu1  ;;  %4235 = vmatprep.subr.bf16.mxu1 %v5548_v4  ;;  %v5557_v4 = vld [vmem:[%s8090_s3 + $0x2d4] ss:$8 sps:$4 sm:$0xff]  }
 0x1f5   : > { %v7429_v43 = vadd.f32 %v4994_v24, %v4993_v19  ;;  %v1829_v42 = vpop.f32.mrf.mxu0  ;;  %v5560_v19 = vld [vmem:[%s8090_s3 + $0x3d4] ss:$8 sps:$4 sm:$0xff]   ;;  %v5563_v24 = vld [vmem:[%s8090_s3 + $0x2c4] ss:$8 sps:$4 sm:$0xff]  }
 0x1f6   : > { %2422 = vst [vmem:[%s7074_s20 + $0x230] sm:$0xff] %v1826_v20  ;;  %v1830_v61 = vadd.f32 %v1829_v42, %v8144_v47  ;;  %v4996_v44 = vpop.f32.mrf.mxu1  ;;  %4195 = vmatpush2.bf16.msra.mxu0 %v5543_v46  ;;  %v5558_v20 = vld [vmem:[%s8090_s3 + $0x3d0] ss:$8 sps:$4 sm:$0xff]   ;;  %v5566_v47 = vld [vmem:[%s8090_s3 + $0x3c4] ss:$8 sps:$4 sm:$0xff]  }
 0x1f7   : > { %4236 = vmatpush2.bf16.msra.mxu1 %v5546_v1  ;;  %v1831_v27 = vpop.f32.mrf.mxu0  ;;  %4196 = vmatprep.subr.bf16.mxu0 %v5551_v5 }
 0x1f8   : > { %2424 = vst [vmem:[%s7074_s20 + $0x240] sm:$0xff] %v1830_v61  ;;  %v1832_v53 = vadd.f32 %v1831_v27, %v6941_v8  ;;  %v4997_v9 = vpop.f32.mrf.mxu1  ;;  %4237 = vmatprep.subr.bf16.mxu1 %v5554_v59  ;;  %v5555_v8 = vld [vmem:[%s8090_s3 + $0x2d0] ss:$8 sps:$4 sm:$0xff]  }
 0x1f9   : > { %v7447_v46 = vadd.f32 %v4997_v9, %v4996_v44  ;;  %v1833_v51 = vpop.f32.mrf.mxu0  ;;  %v5564_v9 = vld [vmem:[%s8090_s3 + $0x3c0] ss:$8 sps:$4 sm:$0xff]  }
 0x1fa   : > { %2425 = vst [vmem:[%s7074_s20 + $0x248] sm:$0xff] %v1832_v53  ;;  %v1834_v1 = vadd.f32 %v1833_v51, %v6946_v35  ;;  %v4999_v5 = vpop.f32.mrf.mxu1  ;;  %4197 = vmatpush2.bf16.msra.mxu0 %v5549_v28  ;;  %v8145_v35 = vld [vmem:[#allocation22_spill] sm:$0xff]  ;;  %v8146_v28 = vld [vmem:[#allocation23_spill] sm:$0xff] }
 0x1fb   : > { %4238 = vmatpush2.bf16.msra.mxu1 %v5552_v12  ;;  %v1835_v33 = vpop.f32.mrf.mxu0  ;;  %4198 = vmatprep.subr.bf16.mxu0 %v5557_v4  ;;  %v5561_v4 = vld [vmem:[%s8090_s3 + $0x2c0] ss:$8 sps:$4 sm:$0xff]  }
 0x1fc   : > { %2427 = vst [vmem:[%s7074_s20 + $0x258] sm:$0xff] %v1834_v1  ;;  %v1836_v59 = vadd.f32 %v1835_v33, %v8145_v35  ;;  %v5000_v42 = vpop.f32.mrf.mxu1  ;;  %4239 = vmatprep.subr.bf16.mxu1 %v5560_v19  ;;  %v5569_v19 = vld [vmem:[%s8090_s3 + $0x2b4] ss:$8 sps:$4 sm:$0xff]  }
 0x1fd   : > { %v7465_v61 = vadd.f32 %v5000_v42, %v4999_v5  ;;  %v1839_v44 = vpop.f32.mrf.mxu0  ;;  %v5572_v5 = vld [vmem:[%s8090_s3 + $0x3b4] ss:$8 sps:$4 sm:$0xff]   ;;  %v5575_v42 = vld [vmem:[%s8090_s3 + $0x2a4] ss:$8 sps:$4 sm:$0xff]  }
 0x1fe   : > { %2428 = vst [vmem:[%s7074_s20 + $0x260] sm:$0xff] %v1836_v59  ;;  %v1840_v27 = vadd.f32 %v1839_v44, %v8146_v28  ;;  %v5002_v12 = vpop.f32.mrf.mxu1  ;;  %4199 = vmatpush2.bf16.msra.mxu0 %v5555_v8  ;;  %v5570_v59 = vld [vmem:[%s8090_s3 + $0x3b0] ss:$8 sps:$4 sm:$0xff]   ;;  %v5578_v28 = vld [vmem:[%s8090_s3 + $0x3a4] ss:$8 sps:$4 sm:$0xff]  }
 0x1ff   : > { %4240 = vmatpush2.bf16.msra.mxu1 %v5558_v20  ;;  %v1841_v53 = vpop.f32.mrf.mxu0  ;;  %4200 = vmatprep.subr.bf16.mxu0 %v5563_v24 }
 0x200   : > { %2430 = vst [vmem:[%s7074_s20 + $0x270] sm:$0xff] %v1840_v27  ;;  %v1842_v51 = vadd.f32 %v1841_v53, %v6981_v14  ;;  %v5003_v1 = vpop.f32.mrf.mxu1  ;;  %4241 = vmatprep.subr.bf16.mxu1 %v5566_v47  ;;  %v5567_v14 = vld [vmem:[%s8090_s3 + $0x2b0] ss:$8 sps:$4 sm:$0xff]  }
 0x201   : > { %v7483_v8 = vadd.f32 %v5003_v1, %v5002_v12  ;;  %v1843_v33 = vpop.f32.mrf.mxu0  ;;  %v5576_v1 = vld [vmem:[%s8090_s3 + $0x3a0] ss:$8 sps:$4 sm:$0xff]  }
 0x202   : > { %2431 = vst [vmem:[%s7074_s20 + $0x278] sm:$0xff] %v1842_v51  ;;  %v1844_v20 = vadd.f32 %v1843_v33, %v6986_v58  ;;  %v5005_v24 = vpop.f32.mrf.mxu1  ;;  %4201 = vmatpush2.bf16.msra.mxu0 %v5561_v4  ;;  %v8147_v58 = vld [vmem:[#allocation24_spill] sm:$0xff]  ;;  %v8148_v4 = vld [vmem:[#allocation25_spill] sm:$0xff] }
 0x203   : > { %4242 = vmatpush2.bf16.msra.mxu1 %v5564_v9  ;;  %v1845_v35 = vpop.f32.mrf.mxu0  ;;  %4202 = vmatprep.subr.bf16.mxu0 %v5569_v19  ;;  %v5573_v19 = vld [vmem:[%s8090_s3 + $0x2a0] ss:$8 sps:$4 sm:$0xff]  }
 0x204   : > { %2433 = vst [vmem:[%s7074_s20 + $0x288] sm:$0xff] %v1844_v20  ;;  %v1846_v47 = vadd.f32 %v1845_v35, %v8147_v58  ;;  %v5006_v44 = vpop.f32.mrf.mxu1  ;;  %4243 = vmatprep.subr.bf16.mxu1 %v5572_v5  ;;  %v5581_v5 = vld [vmem:[%s8090_s3 + $0x294] ss:$8 sps:$4 sm:$0xff]  }
 0x205   : > { %v7501_v27 = vadd.f32 %v5006_v44, %v5005_v24  ;;  %v1849_v12 = vpop.f32.mrf.mxu0  ;;  %v5584_v24 = vld [vmem:[%s8090_s3 + $0x394] ss:$8 sps:$4 sm:$0xff]  }
 0x206   : > { %2434 = vst [vmem:[%s7074_s20 + $0x290] sm:$0xff] %v1846_v47  ;;  %v1850_v53 = vadd.f32 %v1849_v12, %v8148_v4  ;;  %v5008_v9 = vpop.f32.mrf.mxu1  ;;  %4203 = vmatpush2.bf16.msra.mxu0 %v5567_v14  ;;  %v2478_v47 = vsub.s32 6, %v7186_v11  ;;  %v8149_v12 = vld [vmem:[#allocation26_spill] sm:$0xff] }
 0x207   : > { %4244 = vmatpush2.bf16.msra.mxu1 %v5570_v59  ;;  %v1851_v51 = vpop.f32.mrf.mxu0  ;;  %4204 = vmatprep.subr.bf16.mxu0 %v5575_v42  ;;  %v2470_v59 = vsub.s32 4, %v7186_v11 }
 0x208   : > { %2436 = vst [vmem:[%s7074_s20 + $0x2a0] sm:$0xff] %v1850_v53  ;;  %v1852_v33 = vadd.f32 %v1851_v51, %v7021_v16  ;;  %v5009_v20 = vpop.f32.mrf.mxu1  ;;  %4245 = vmatprep.subr.bf16.mxu1 %v5578_v28  ;;  %v5579_v16 = vld [vmem:[%s8090_s3 + $0x290] ss:$8 sps:$4 sm:$0xff]  }
 0x209   : > { %v7519_v14 = vadd.f32 %v5009_v20, %v5008_v9  ;;  %v1853_v35 = vpop.f32.mrf.mxu0  ;;  %v5582_v28 = vld [vmem:[%s8090_s3 + $0x390] ss:$8 sps:$4 sm:$0xff]   ;;  %v5590_v9 = vld [vmem:[%s8090_s3 + $0x384] ss:$8 sps:$4 sm:$0xff]  }
 0x20a   : > { %2437 = vst [vmem:[%s7074_s20 + $0x2a8] sm:$0xff] %v1852_v33  ;;  %v1854_v42 = vadd.f32 %v1853_v35, %v7026_v31  ;;  %v5011_v58 = vpop.f32.mrf.mxu1  ;;  %4205 = vmatpush2.bf16.msra.mxu0 %v5573_v19  ;;  %v5587_v31 = vld [vmem:[%s8090_s3 + $0x284] ss:$8 sps:$4 sm:$0xff]  }
 0x20b   : > { %4246 = vmatpush2.bf16.msra.mxu1 %v5576_v1  ;;  %v1855_v44 = vpop.f32.mrf.mxu0  ;;  %4206 = vmatprep.subr.bf16.mxu0 %v5581_v5  ;;  %v2471_v1 = vrot.slane %v7206_v29, %v2470_v59  ;;  %v7545_v5 = vld [vmem:[%s7194_s29 + $0x8] sm:$0xff] }
 0x20c   : > { %2439 = vst [vmem:[%s7074_s20 + $0x2b8] sm:$0xff] %v1854_v42  ;;  %v1856_v4 = vadd.f32 %v1855_v44, %v8149_v12  ;;  %v5012_v53 = vpop.f32.mrf.mxu1  ;;  %4247 = vmatprep.subr.bf16.mxu1 %v5584_v24  ;;  %v8150_v33 = vld [vmem:[#allocation27_spill] sm:$0xff]  ;;  %v2479_v42 = vrot.slane %v7206_v29, %v2478_v47  ;;  %v5596_v29 = vld [vmem:[%s8090_s3 + $0x574] ss:$8 sps:$4 sm:$0xff]  }
 0x20d   : > { %v7539_v19 = vadd.f32 %v5012_v53, %v5011_v58  ;;  %v1859_v51 = vpop.f32.mrf.mxu0  ;;  %v5585_v24 = vld [vmem:[%s8090_s3 + $0x280] ss:$8 sps:$4 sm:$0xff]  }
 0x20e   : > { %2440 = vst [vmem:[%s7074_s20 + $0x2c0] sm:$0xff] %v1856_v4  ;;  %v1860_v20 = vadd.f32 %v1859_v51, %v8150_v33  ;;  %v5014_v35 = vpop.f32.mrf.mxu1  ;;  %4207 = vmatpush2.bf16.msra.mxu0 %v5579_v16  ;;  %v5588_v44 = vld [vmem:[%s8090_s3 + $0x380] ss:$8 sps:$4 sm:$0xff]   ;;  %v5593_v16 = vld [vmem:[%s8090_s3 + $0x474] ss:$8 sps:$4 sm:$0xff]   ;;  %v2536_v51 = vpack.c.bf16 %v2471_v1, %v2471_v1  ;;  %v2499_v33 = vrot.slane %v7545_v5, %v2466_v49 }
 0x20f   : > { %4248 = vmatpush2.bf16.msra.mxu1 %v5582_v28  ;;  %v1861_v58 = vpop.f32.mrf.mxu0  ;;  %4208 = vmatprep.subr.bf16.mxu0 %v5587_v31  ;;  %v2491_v28 = vrot.slane %v7545_v5, %v7203_v34  ;;  %v5594_v1 = vld [vmem:[%s8090_s3 + $0x570] ss:$8 sps:$4 sm:$0xff]   ;;  %v5599_v49 = vld [vmem:[%s8090_s3 + $0x464] ss:$8 sps:$4 sm:$0xff]  }
 0x210   : > { %2442 = vst [vmem:[%s7074_s20 + $0x2d0] sm:$0xff] %v1860_v20  ;;  %v1862_v12 = vadd.f32 %v1861_v58, %v7061_v22  ;;  %v5015_v4 = vpop.f32.mrf.mxu1  ;;  %4249 = vmatprep.subr.bf16.mxu1 %v5590_v9  ;;  %v2538_v20 = vpack.c.bf16 %v2479_v42, %v2479_v42  ;;  %v5591_v58 = vld [vmem:[%s8090_s3 + $0x470] ss:$8 sps:$4 sm:$0xff]   ;;  %v5602_v42 = vld [vmem:[%s8090_s3 + $0x564] ss:$8 sps:$4 sm:$0xff]  }
 0x211   : > { %v7568_v31 = vadd.f32 %v5015_v4, %v5014_v35  ;;  %v1863_v53 = vpop.f32.mrf.mxu0  ;;  %v2543_v4 = vpack.c.bf16 %v2499_v33, %v2499_v33 }
 0x212   : > { %2443 = vst [vmem:[%s7074_s20 + $0x2d8] sm:$0xff] %v1862_v12  ;;  %v1864_v22 = vadd.f32 %v1863_v53, %v7067_v36  ;;  %v5017_v9 = vpop.f32.mrf.mxu1  ;;  %4209 = vmatpush2.bf16.msra.mxu0 %v5585_v24 }
 0x213   : > { %4250 = vmatpush2.bf16.msra.mxu1 %v5588_v44  ;;  %v1865_v35 = vpop.f32.mrf.mxu0  ;;  %4260 = vmatprep.subr.bf16.mxu0 %v5593_v16  ;;  %v2541_v44 = vpack.c.bf16 %v2491_v28, %v2491_v28  ;;  %v5600_v28 = vld [vmem:[%s8090_s3 + $0x560] ss:$8 sps:$4 sm:$0xff]  }
 0x214   : > { %2445 = vst [vmem:[%s7074_s20 + $0x2e8] sm:$0xff] %v1864_v22  ;;  %v1866_v36 = vadd.f32 %v1865_v35, %v7069_v30  ;;  %v5018_v24 = vpop.f32.mrf.mxu1  ;;  %4301 = vmatprep.subr.bf16.mxu1 %v5596_v29  ;;  %v5597_v30 = vld [vmem:[%s8090_s3 + $0x460] ss:$8 sps:$4 sm:$0xff]  }
 0x215   : > { %v7589_v12 = vadd.f32 %v5018_v24, %v5017_v9  ;;  %4211 = vmatmul.mubr.bf16.vlgmr.msra.gmra.mxu0 %v2536_v51  ;;  %v5036_v16 = vpop.f32.mrf.mxu0  ;;  %v5605_v51 = vld [vmem:[%s8090_s3 + $0x454] ss:$8 sps:$4 sm:$0xff]   ;;  %v5606_v24 = vld [vmem:[%s8090_s3 + $0x550] ss:$8 sps:$4 sm:$0xff]  }
 0x216   : > { %2446 = vst [vmem:[%s7074_s20 + $0x2f0] sm:$0xff] %v1866_v36  ;;  %4252 = vmatmul.mubr.bf16.vlgmr.msra.gmra.mxu1 %v2538_v20  ;;  %v5148_v53 = vpop.f32.mrf.mxu1  ;;  %4261 = vmatpush1.bf16.msra.mxu0 %v5591_v58  ;;  %v5608_v9 = vld [vmem:[%s8090_s3 + $0x554] ss:$8 sps:$4 sm:$0xff]  }
 0x217   : > { %4302 = vmatpush1.bf16.msra.mxu1 %v5594_v1  ;;  %v5037_v29 = vpop.f32.mrf.mxu0  ;;  %4262 = vmatprep.subr.bf16.mxu0 %v5599_v49  ;;  %v5603_v49 = vld [vmem:[%s8090_s3 + $0x450] ss:$8 sps:$4 sm:$0xff]  }
 0x218   : > { %v5038_v33 = vadd.f32 %v5037_v29, %v5036_v16  ;;  %v5149_v22 = vpop.f32.mrf.mxu1  ;;  %4303 = vmatprep.subr.bf16.mxu1 %v5602_v42  ;;  %4292 = vmatprep.mubr.bf16.mxu0 %v2541_v44 }
 0x219   : > { %v5039_v20 = vpop.f32.mrf.mxu0  ;;  %4333 = vmatprep.mubr.bf16.mxu1 %v2543_v4  ;;  %v5150_v35 = vadd.f32 %v5149_v22, %v5148_v53  ;;  %v5614_v4 = vld [vmem:[%s8090_s3 + $0x544] ss:$8 sps:$4 sm:$0xff]   ;;  %v5612_v22 = vld [vmem:[%s8090_s3 + $0x540] ss:$8 sps:$4 sm:$0xff]  }
 0x21a   : > { %v2064_v58 = vadd.f32 %v5038_v33, %v7087_v45  ;;  %v5151_v1 = vpop.f32.mrf.mxu1  ;;  %4263 = vmatpush1.bf16.msra.mxu0 %v5597_v30  ;;  %v5611_v45 = vld [vmem:[%s8090_s3 + $0x444] ss:$8 sps:$4 sm:$0xff]  }
 0x21b   : > { %4304 = vmatpush1.bf16.msra.mxu1 %v5600_v28  ;;  %v5040_v36 = vpop.f32.mrf.mxu0  ;;  %4264 = vmatprep.subr.bf16.mxu0 %v5605_v51  ;;  %v5609_v51 = vld [vmem:[%s8090_s3 + $0x440] ss:$8 sps:$4 sm:$0xff]  }
 0x21c   : > { %v2225_v42 = vadd.f32 %v5150_v35, %v2064_v58  ;;  %v5041_v44 = vadd.f32 %v5040_v36, %v5039_v20  ;;  %v5152_v16 = vpop.f32.mrf.mxu1  ;;  %4305 = vmatprep.subr.bf16.mxu1 %v5608_v9  ;;  %v5617_v9 = vld [vmem:[%s8090_s3 + $0x434] ss:$8 sps:$4 sm:$0xff]  }
 0x21d   : > { %v5042_v53 = vpop.f32.mrf.mxu0  ;;  %v5153_v29 = vadd.f32 %v5152_v16, %v5151_v1  ;;  %v5620_v35 = vld [vmem:[%s8090_s3 + $0x534] ss:$8 sps:$4 sm:$0xff]   ;;  %v5623_v16 = vld [vmem:[%s8090_s3 + $0x424] ss:$8 sps:$4 sm:$0xff]  }
 0x21e   : > { %2354 = vst.msk [vmem:[%s7074_s20 + $0x10] sm:$0xff] %vm2353_vm0, %v2225_v42  ;;  %v2067_v30 = vadd.f32 %v5041_v44, %v7093_v50  ;;  %v5154_v28 = vpop.f32.mrf.mxu1  ;;  %4265 = vmatpush1.bf16.msra.mxu0 %v5603_v49  ;;  %v5618_v44 = vld [vmem:[%s8090_s3 + $0x530] ss:$8 sps:$4 sm:$0xff]  }
 0x21f   : > { %4306 = vmatpush1.bf16.msra.mxu1 %v5606_v24  ;;  %v5043_v33 = vpop.f32.mrf.mxu0  ;;  %4266 = vmatprep.subr.bf16.mxu0 %v5611_v45  ;;  %v5615_v45 = vld [vmem:[%s8090_s3 + $0x430] ss:$8 sps:$4 sm:$0xff]  }
 0x220   : > { %v2228_v50 = vadd.f32 %v5153_v29, %v2067_v30  ;;  %v5044_v20 = vadd.f32 %v5043_v33, %v5042_v53  ;;  %v5155_v58 = vpop.f32.mrf.mxu1  ;;  %4307 = vmatprep.subr.bf16.mxu1 %v5614_v4  ;;  %v5626_v30 = vld [vmem:[%s8090_s3 + $0x524] ss:$8 sps:$4 sm:$0xff]  }
 0x221   : > { %v5045_v1 = vpop.f32.mrf.mxu0  ;;  %v5156_v36 = vadd.f32 %v5155_v58, %v5154_v28 }
 0x222   : > { %2357 = vst.msk [vmem:[%s7074_s20 + $0x28] sm:$0xff] %vm2353_vm0, %v2228_v50  ;;  %v2072_v49 = vadd.f32 %v5044_v20, %v7107_v62  ;;  %v5157_v24 = vpop.f32.mrf.mxu1  ;;  %4267 = vmatpush1.bf16.msra.mxu0 %v5609_v51  ;;  %v5624_v50 = vld [vmem:[%s8090_s3 + $0x520] ss:$8 sps:$4 sm:$0xff]   ;;  %v5629_v20 = vld [vmem:[%s8090_s3 + $0x414] ss:$8 sps:$4 sm:$0xff]  }
 0x223   : > { %4308 = vmatpush1.bf16.msra.mxu1 %v5612_v22  ;;  %v5046_v42 = vpop.f32.mrf.mxu0  ;;  %4268 = vmatprep.subr.bf16.mxu0 %v5617_v9  ;;  %v5621_v22 = vld [vmem:[%s8090_s3 + $0x420] ss:$8 sps:$4 sm:$0xff]  }
 0x224   : > { %v2233_v62 = vadd.f32 %v5156_v36, %v2072_v49  ;;  %v5047_v4 = vadd.f32 %v5046_v42, %v5045_v1  ;;  %v5158_v53 = vpop.f32.mrf.mxu1  ;;  %4309 = vmatprep.subr.bf16.mxu1 %v5620_v35  ;;  %v5632_v1 = vld [vmem:[%s8090_s3 + $0x514] ss:$8 sps:$4 sm:$0xff]   ;;  %v5627_v42 = vld [vmem:[%s8090_s3 + $0x410] ss:$8 sps:$4 sm:$0xff]  }
 0x225   : > { %v5048_v29 = vpop.f32.mrf.mxu0  ;;  %v5159_v51 = vadd.f32 %v5158_v53, %v5157_v24 }
 0x226   : > { %2360 = vst.msk [vmem:[%s7074_s20 + $0x40] sm:$0xff] %vm2353_vm0, %v2233_v62  ;;  %v2075_v28 = vadd.f32 %v5047_v4, %v7113_v40  ;;  %v5160_v33 = vpop.f32.mrf.mxu1  ;;  %4269 = vmatpush1.bf16.msra.mxu0 %v5615_v45  ;;  %v5635_v62 = vld [vmem:[%s8090_s3 + $0x404] ss:$8 sps:$4 sm:$0xff]  }
 0x227   : > { %4310 = vmatpush1.bf16.msra.mxu1 %v5618_v44  ;;  %v5049_v9 = vpop.f32.mrf.mxu0  ;;  %4270 = vmatprep.subr.bf16.mxu0 %v5623_v16  ;;  %v5630_v16 = vld [vmem:[%s8090_s3 + $0x510] ss:$8 sps:$4 sm:$0xff]  }
 0x228   : > { %v2236_v40 = vadd.f32 %v5159_v51, %v2075_v28  ;;  %v5050_v58 = vadd.f32 %v5049_v9, %v5048_v29  ;;  %v5161_v35 = vpop.f32.mrf.mxu1  ;;  %4311 = vmatprep.subr.bf16.mxu1 %v5626_v30  ;;  %v5638_v30 = vld [vmem:[%s8090_s3 + $0x504] ss:$8 sps:$4 sm:$0xff]  }
 0x229   : > { %v5051_v49 = vpop.f32.mrf.mxu0  ;;  %v5162_v24 = vadd.f32 %v5161_v35, %v5160_v33  ;;  %v5644_v35 = vld [vmem:[%s8090_s3 + $0x5f4] ss:$8 sps:$4 sm:$0xff]  }
 0x22a   : > { %2363 = vst.msk [vmem:[%s7074_s20 + $0x58] sm:$0xff] %vm2353_vm0, %v2236_v40  ;;  %v2080_v36 = vadd.f32 %v5050_v58, %v7127_v2  ;;  %v5163_v45 = vpop.f32.mrf.mxu1  ;;  %4271 = vmatpush1.bf16.msra.mxu0 %v5621_v22  ;;  %v5633_v22 = vld [vmem:[%s8090_s3 + $0x400] ss:$8 sps:$4 sm:$0xff]  }
 0x22b   : > { %4312 = vmatpush1.bf16.msra.mxu1 %v5624_v50  ;;  %v5052_v44 = vpop.f32.mrf.mxu0  ;;  %4272 = vmatprep.subr.bf16.mxu0 %v5629_v20  ;;  %v5636_v50 = vld [vmem:[%s8090_s3 + $0x500] ss:$8 sps:$4 sm:$0xff]   ;;  %v5641_v20 = vld [vmem:[%s8090_s3 + $0x4f4] ss:$8 sps:$4 sm:$0xff]  }
 0x22c   : > { %v2241_v2 = vadd.f32 %v5162_v24, %v2080_v36  ;;  %v5053_v4 = vadd.f32 %v5052_v44, %v5051_v49  ;;  %v5164_v53 = vpop.f32.mrf.mxu1  ;;  %4313 = vmatprep.subr.bf16.mxu1 %v5632_v1  ;;  %v5642_v44 = vld [vmem:[%s8090_s3 + $0x5f0] ss:$8 sps:$4 sm:$0xff]  }
 0x22d   : > { %v5054_v29 = vpop.f32.mrf.mxu0  ;;  %v5165_v51 = vadd.f32 %v5164_v53, %v5163_v45  ;;  %v5639_v45 = vld [vmem:[%s8090_s3 + $0x4f0] ss:$8 sps:$4 sm:$0xff]  }
 0x22e   : > { %2366 = vst.msk [vmem:[%s7074_s20 + $0x70] sm:$0xff] %vm2353_vm0, %v2241_v2  ;;  %v2083_v28 = vadd.f32 %v5053_v4, %v7133_v15  ;;  %v5166_v33 = vpop.f32.mrf.mxu1  ;;  %4273 = vmatpush1.bf16.msra.mxu0 %v5627_v42  ;;  %v5650_v4 = vld [vmem:[%s8090_s3 + $0x5e4] ss:$8 sps:$4 sm:$0xff]  }
 0x22f   : > { %4314 = vmatpush1.bf16.msra.mxu1 %v5630_v16  ;;  %v5055_v9 = vpop.f32.mrf.mxu0  ;;  %4274 = vmatprep.subr.bf16.mxu0 %v5635_v62  ;;  %v5647_v16 = vld [vmem:[%s8090_s3 + $0x4e4] ss:$8 sps:$4 sm:$0xff]  }
 0x230   : > { %v2244_v15 = vadd.f32 %v5165_v51, %v2083_v28  ;;  %v5056_v40 = vadd.f32 %v5055_v9, %v5054_v29  ;;  %v5167_v58 = vpop.f32.mrf.mxu1  ;;  %4315 = vmatprep.subr.bf16.mxu1 %v5638_v30  ;;  %v5645_v51 = vld [vmem:[%s8090_s3 + $0x4e0] ss:$8 sps:$4 sm:$0xff]   ;;  %v5653_v9 = vld [vmem:[%s8090_s3 + $0x4d4] ss:$8 sps:$4 sm:$0xff]  }
 0x231   : > { %v5057_v1 = vpop.f32.mrf.mxu0  ;;  %v5168_v36 = vadd.f32 %v5167_v58, %v5166_v33 }
 0x232   : > { %2369 = vst.msk [vmem:[%s7074_s20 + $0x88] sm:$0xff] %vm2353_vm0, %v2244_v15  ;;  %v2088_v49 = vadd.f32 %v5056_v40, %v7147_v55  ;;  %v5169_v24 = vpop.f32.mrf.mxu1  ;;  %4275 = vmatpush1.bf16.msra.mxu0 %v5633_v22  ;;  %v5648_v22 = vld [vmem:[%s8090_s3 + $0x5e0] ss:$8 sps:$4 sm:$0xff]   ;;  %v5656_v15 = vld [vmem:[%s8090_s3 + $0x5d4] ss:$8 sps:$4 sm:$0xff]  }
 0x233   : > { %4316 = vmatpush1.bf16.msra.mxu1 %v5636_v50  ;;  %v5058_v42 = vpop.f32.mrf.mxu0  ;;  %4276 = vmatprep.subr.bf16.mxu0 %v5641_v20 }
 0x234   : > { %v2249_v55 = vadd.f32 %v5168_v36, %v2088_v49  ;;  %v5059_v62 = vadd.f32 %v5058_v42, %v5057_v1  ;;  %v5170_v2 = vpop.f32.mrf.mxu1  ;;  %4317 = vmatprep.subr.bf16.mxu1 %v5644_v35  ;;  %v5651_v49 = vld [vmem:[%s8090_s3 + $0x4d0] ss:$8 sps:$4 sm:$0xff]  }
 0x235   : > { %v5060_v53 = vpop.f32.mrf.mxu0  ;;  %v5171_v29 = vadd.f32 %v5170_v2, %v5169_v24  ;;  %v5654_v24 = vld [vmem:[%s8090_s3 + $0x5d0] ss:$8 sps:$4 sm:$0xff]  }
 0x236   : > { %2372 = vst.msk [vmem:[%s7074_s20 + $0xa0] sm:$0xff] %vm2353_vm0, %v2249_v55  ;;  %v2091_v30 = vadd.f32 %v5059_v62, %v7153_v39  ;;  %v5172_v28 = vpop.f32.mrf.mxu1  ;;  %4277 = vmatpush2.bf16.msra.mxu0 %v5639_v45  ;;  %v5659_v45 = vld [vmem:[%s8090_s3 + $0x4c4] ss:$8 sps:$4 sm:$0xff]  }
 0x237   : > { %4318 = vmatpush2.bf16.msra.mxu1 %v5642_v44  ;;  %v5061_v33 = vpop.f32.mrf.mxu0  ;;  %4278 = vmatprep.subr.bf16.mxu0 %v5647_v16  ;;  %v5662_v16 = vld [vmem:[%s8090_s3 + $0x5c4] ss:$8 sps:$4 sm:$0xff]  }
 0x238   : > { %v2252_v39 = vadd.f32 %v5171_v29, %v2091_v30  ;;  %v5062_v50 = vadd.f32 %v5061_v33, %v5060_v53  ;;  %v5173_v20 = vpop.f32.mrf.mxu1  ;;  %4319 = vmatprep.subr.bf16.mxu1 %v5650_v4  ;;  %v5657_v53 = vld [vmem:[%s8090_s3 + $0x4c0] ss:$8 sps:$4 sm:$0xff]  }
 0x239   : > { %v5063_v40 = vpop.f32.mrf.mxu0  ;;  %v5174_v35 = vadd.f32 %v5173_v20, %v5172_v28  ;;  %v5660_v29 = vld [vmem:[%s8090_s3 + $0x5c0] ss:$8 sps:$4 sm:$0xff]   ;;  %v5665_v28 = vld [vmem:[%s8090_s3 + $0x4b4] ss:$8 sps:$4 sm:$0xff]  }
 0x23a   : > { %2375 = vst.msk [vmem:[%s7074_s20 + $0xb8] sm:$0xff] %vm2353_vm0, %v2252_v39  ;;  %v2096_v58 = vadd.f32 %v5062_v50, %v7167_v7  ;;  %v5175_v1 = vpop.f32.mrf.mxu1  ;;  %4279 = vmatpush2.bf16.msra.mxu0 %v5645_v51 }
 0x23b   : > { %4320 = vmatpush2.bf16.msra.mxu1 %v5648_v22  ;;  %v5064_v36 = vpop.f32.mrf.mxu0  ;;  %4280 = vmatprep.subr.bf16.mxu0 %v5653_v9  ;;  %v5668_v22 = vld [vmem:[%s8090_s3 + $0x5b4] ss:$8 sps:$4 sm:$0xff]  }
 0x23c   : > { %v2257_v7 = vadd.f32 %v5174_v35, %v2096_v58  ;;  %v5065_v42 = vadd.f32 %v5064_v36, %v5063_v40  ;;  %v5176_v44 = vpop.f32.mrf.mxu1  ;;  %4321 = vmatprep.subr.bf16.mxu1 %v5656_v15  ;;  %v5663_v15 = vld [vmem:[%s8090_s3 + $0x4b0] ss:$8 sps:$4 sm:$0xff]   ;;  %v5671_v35 = vld [vmem:[%s8090_s3 + $0x4a4] ss:$8 sps:$4 sm:$0xff]  }
 0x23d   : > { %v5066_v55 = vpop.f32.mrf.mxu0  ;;  %v5177_v2 = vadd.f32 %v5176_v44, %v5175_v1  ;;  %v5666_v58 = vld [vmem:[%s8090_s3 + $0x5b0] ss:$8 sps:$4 sm:$0xff]  }
 0x23e   : > { %2378 = vst.msk [vmem:[%s7074_s20 + $0xd0] sm:$0xff] %vm2353_vm0, %v2257_v7  ;;  %v2099_v62 = vadd.f32 %v5065_v42, %v7173_v32  ;;  %v5178_v4 = vpop.f32.mrf.mxu1  ;;  %4281 = vmatpush2.bf16.msra.mxu0 %v5651_v49 }
 0x23f   : > { %4322 = vmatpush2.bf16.msra.mxu1 %v5654_v24  ;;  %v5067_v30 = vpop.f32.mrf.mxu0  ;;  %4282 = vmatprep.subr.bf16.mxu0 %v5659_v45  ;;  %v5674_v24 = vld [vmem:[%s8090_s3 + $0x5a4] ss:$8 sps:$4 sm:$0xff]  }
 0x240   : > { %v2260_v32 = vadd.f32 %v5177_v2, %v2099_v62  ;;  %v5068_v51 = vadd.f32 %v5067_v30, %v5066_v55  ;;  %v5179_v33 = vpop.f32.mrf.mxu1  ;;  %4323 = vmatprep.subr.bf16.mxu1 %v5662_v16  ;;  %v5672_v16 = vld [vmem:[%s8090_s3 + $0x5a0] ss:$8 sps:$4 sm:$0xff]   ;;  %v5677_v55 = vld [vmem:[%s8090_s3 + $0x494] ss:$8 sps:$4 sm:$0xff]  }
 0x241   : > { %v5069_v9 = vpop.f32.mrf.mxu0  ;;  %v5180_v50 = vadd.f32 %v5179_v33, %v5178_v4 }
 0x242   : > { %2381 = vst.msk [vmem:[%s7074_s20 + $0xe8] sm:$0xff] %vm2353_vm0, %v2260_v32  ;;  %v2104_v39 = vadd.f32 %v5068_v51, %v7196_v52  ;;  %v5181_v20 = vpop.f32.mrf.mxu1  ;;  %4283 = vmatpush2.bf16.msra.mxu0 %v5657_v53  ;;  %v4959_v52 = vadd.f32 %v7211_v60, %v7200_v25  ;;  %v5669_v25 = vld [vmem:[%s8090_s3 + $0x4a0] ss:$8 sps:$4 sm:$0xff]   ;;  %v5680_v53 = vld [vmem:[%s8090_s3 + $0x594] ss:$8 sps:$4 sm:$0xff]  }
 0x243   : > { %4324 = vmatpush2.bf16.msra.mxu1 %v5660_v29  ;;  %v5070_v40 = vpop.f32.mrf.mxu0  ;;  %4284 = vmatprep.subr.bf16.mxu0 %v5665_v28  ;;  %v5675_v51 = vld [vmem:[%s8090_s3 + $0x490] ss:$8 sps:$4 sm:$0xff]  }
 0x244   : > { %v2265_v1 = vadd.f32 %v5180_v50, %v2104_v39  ;;  %v5071_v49 = vadd.f32 %v5070_v40, %v5069_v9  ;;  %v5182_v36 = vpop.f32.mrf.mxu1  ;;  %4325 = vmatprep.subr.bf16.mxu1 %v5668_v22  ;;  %v5678_v22 = vld [vmem:[%s8090_s3 + $0x590] ss:$8 sps:$4 sm:$0xff]   ;;  %v5683_v9 = vld [vmem:[%s8090_s3 + $0x484] ss:$8 sps:$4 sm:$0xff]  }
 0x245   : > { %v5072_v45 = vpop.f32.mrf.mxu0  ;;  %v5183_v42 = vadd.f32 %v5182_v36, %v5181_v20  ;;  %v5684_v36 = vld [vmem:[%s8090_s3 + $0x580] ss:$8 sps:$4 sm:$0xff]  }
 0x246   : > { %2384 = vst.msk [vmem:[%s7074_s20 + $0x100] sm:$0xff] %vm2353_vm0, %v2265_v1  ;;  %v2107_v7 = vadd.f32 %v5071_v49, %v4959_v52  ;;  %v5184_v44 = vpop.f32.mrf.mxu1  ;;  %4285 = vmatpush2.bf16.msra.mxu0 %v5663_v15  ;;  %v5686_v15 = vld [vmem:[%s8090_s3 + $0x584] ss:$8 sps:$4 sm:$0xff]  }
 0x247   : > { %4326 = vmatpush2.bf16.msra.mxu1 %v5666_v58  ;;  %v5073_v60 = vpop.f32.mrf.mxu0  ;;  %4286 = vmatprep.subr.bf16.mxu0 %v5671_v35  ;;  %v2487_v58 = vrot.slane %v7545_v5, %v7233_v3 }
 0x248   : > { %v2268_v62 = vadd.f32 %v5183_v42, %v2107_v7  ;;  %v5074_v2 = vadd.f32 %v5073_v60, %v5072_v45  ;;  %v5185_v4 = vpop.f32.mrf.mxu1  ;;  %4327 = vmatprep.subr.bf16.mxu1 %v5674_v24  ;;  %v5689_v24 = vld [vmem:[%s8090_s3 + $0x674] ss:$8 sps:$4 sm:$0xff]  }
 0x249   : > { %v5075_v30 = vpop.f32.mrf.mxu0  ;;  %v5186_v28 = vadd.f32 %v5185_v4, %v5184_v44  ;;  %v5692_v44 = vld [vmem:[%s8090_s3 + $0x774] ss:$8 sps:$4 sm:$0xff]   ;;  %v2540_v60 = vpack.c.bf16 %v2487_v58, %v2487_v58 }
 0x24a   : > { %2387 = vst.msk [vmem:[%s7074_s20 + $0x118] sm:$0xff] %vm2353_vm0, %v2268_v62  ;;  %v2112_v29 = vadd.f32 %v5074_v2, %v7230_v26  ;;  %v5187_v32 = vpop.f32.mrf.mxu1  ;;  %4287 = vmatpush2.bf16.msra.mxu0 %v5669_v25  ;;  %v4965_v26 = vadd.f32 %v7242_v23, %v7237_v63  ;;  %v5681_v63 = vld [vmem:[%s8090_s3 + $0x480] ss:$8 sps:$4 sm:$0xff]   ;;  %v2495_v23 = vrot.slane %v7545_v5, %v2462_v48 }
 0x24b   : > { %4328 = vmatpush2.bf16.msra.mxu1 %v5672_v16  ;;  %v5076_v33 = vpop.f32.mrf.mxu0  ;;  %4288 = vmatprep.subr.bf16.mxu0 %v5677_v55  ;;  %v2507_v48 = vrot.slane %v7545_v5, %v2474_v0  ;;  %v2515_v16 = vrot.slane %v7545_v5, %v2482_v41  ;;  %v5690_v41 = vld [vmem:[%s8090_s3 + $0x770] ss:$8 sps:$4 sm:$0xff]   ;;  %v4971_v5 = vadd.f32 %v7282_v38, %v7269_v13  ;;  %v5693_v13 = vld [vmem:[%s8090_s3 + $0x660] ss:$8 sps:$4 sm:$0xff]  }
 0x24c   : > { %v2273_v39 = vadd.f32 %v5186_v28, %v2112_v29  ;;  %v5077_v50 = vadd.f32 %v5076_v33, %v5075_v30  ;;  %v5188_v20 = vpop.f32.mrf.mxu1  ;;  %4329 = vmatprep.subr.bf16.mxu1 %v5680_v53  ;;  %v2542_v4 = vpack.c.bf16 %v2495_v23, %v2495_v23  ;;  %v5687_v53 = vld [vmem:[%s8090_s3 + $0x670] ss:$8 sps:$4 sm:$0xff]  }
 0x24d   : > { %v5078_v40 = vpop.f32.mrf.mxu0  ;;  %v5189_v52 = vadd.f32 %v5188_v20, %v5187_v32  ;;  %v5698_v32 = vld [vmem:[%s8090_s3 + $0x764] ss:$8 sps:$4 sm:$0xff]   ;;  %v5701_v20 = vld [vmem:[%s8090_s3 + $0x654] ss:$8 sps:$4 sm:$0xff]  }
 0x24e   : > { %2390 = vst.msk [vmem:[%s7074_s20 + $0x130] sm:$0xff] %vm2353_vm0, %v2273_v39  ;;  %v2115_v35 = vadd.f32 %v5077_v50, %v4965_v26  ;;  %v5190_v1 = vpop.f32.mrf.mxu1  ;;  %4289 = vmatpush2.bf16.msra.mxu0 %v5675_v51  ;;  %v2545_v51 = vpack.c.bf16 %v2507_v48, %v2507_v48  ;;  %v5696_v50 = vld [vmem:[%s8090_s3 + $0x760] ss:$8 sps:$4 sm:$0xff]  }
 0x24f   : > { %4330 = vmatpush2.bf16.msra.mxu1 %v5678_v22  ;;  %v5079_v49 = vpop.f32.mrf.mxu0  ;;  %4290 = vmatprep.subr.bf16.mxu0 %v5683_v9  ;;  %v2547_v22 = vpack.c.bf16 %v2515_v16, %v2515_v16 }
 0x250   : > { %v2276_v45 = vadd.f32 %v5189_v52, %v2115_v35  ;;  %v5080_v7 = vadd.f32 %v5079_v49, %v5078_v40  ;;  %v5191_v42 = vpop.f32.mrf.mxu1  ;;  %4331 = vmatprep.subr.bf16.mxu1 %v5686_v15  ;;  %v5704_v35 = vld [vmem:[%s8090_s3 + $0x754] ss:$8 sps:$4 sm:$0xff]   ;;  %v5699_v49 = vld [vmem:[%s8090_s3 + $0x650] ss:$8 sps:$4 sm:$0xff]  }
 0x251   : > { %v5081_v25 = vpop.f32.mrf.mxu0  ;;  %v5192_v62 = vadd.f32 %v5191_v42, %v5190_v1 }
 0x252   : > { %2393 = vst.msk [vmem:[%s7074_s20 + $0x148] sm:$0xff] %vm2353_vm0, %v2276_v45  ;;  %v2120_v55 = vadd.f32 %v5080_v7, %v7262_v56  ;;  %v5193_v2 = vpop.f32.mrf.mxu1  ;;  %4291 = vmatpush2.bf16.msra.mxu0 %v5681_v63  ;;  %v5695_v56 = vld [vmem:[%s8090_s3 + $0x664] ss:$8 sps:$4 sm:$0xff]  }
 0x253   : > { %4332 = vmatpush2.bf16.msra.mxu1 %v5684_v36  ;;  %v5082_v0 = vpop.f32.mrf.mxu0  ;;  %4342 = vmatprep.subr.bf16.mxu0 %v5689_v24  ;;  %v5702_v24 = vld [vmem:[%s8090_s3 + $0x750] ss:$8 sps:$4 sm:$0xff]   ;;  %v5707_v45 = vld [vmem:[%s8090_s3 + $0x644] ss:$8 sps:$4 sm:$0xff]  }
 0x254   : > { %v2281_v30 = vadd.f32 %v5192_v62, %v2120_v55  ;;  %v5083_v29 = vadd.f32 %v5082_v0, %v5081_v25  ;;  %v5194_v28 = vpop.f32.mrf.mxu1  ;;  %4383 = vmatprep.subr.bf16.mxu1 %v5692_v44  ;;  %v5710_v44 = vld [vmem:[%s8090_s3 + $0x744] ss:$8 sps:$4 sm:$0xff]   ;;  %v5705_v55 = vld [vmem:[%s8090_s3 + $0x640] ss:$8 sps:$4 sm:$0xff]  }
 0x255   : > { %4293 = vmatmul.mubr.bf16.vlgmr.msra.gmra.mxu0 %v2540_v60  ;;  %v5084_v33 = vpop.f32.mrf.mxu0  ;;  %v5195_v26 = vadd.f32 %v5194_v28, %v5193_v2  ;;  %v5708_v2 = vld [vmem:[%s8090_s3 + $0x740] ss:$8 sps:$4 sm:$0xff]   ;;  %v5711_v28 = vld [vmem:[%s8090_s3 + $0x630] ss:$8 sps:$4 sm:$0xff]  }
 0x256   : > { %2396 = vst.msk [vmem:[%s7074_s20 + $0x160] sm:$0xff] %vm2353_vm0, %v2281_v30  ;;  %v2123_v9 = vadd.f32 %v5083_v29, %v4971_v5  ;;  %4334 = vmatmul.mubr.bf16.vlgmr.msra.gmra.mxu1 %v2542_v4  ;;  %v5196_v39 = vpop.f32.mrf.mxu1  ;;  %4343 = vmatpush1.bf16.msra.mxu0 %v5687_v53  ;;  %v5713_v4 = vld [vmem:[%s8090_s3 + $0x634] ss:$8 sps:$4 sm:$0xff]  }
 0x257   : > { %4384 = vmatpush1.bf16.msra.mxu1 %v5690_v41  ;;  %v5085_v38 = vpop.f32.mrf.mxu0  ;;  %4344 = vmatprep.subr.bf16.mxu0 %v5695_v56  ;;  %v5716_v41 = vld [vmem:[%s8090_s3 + $0x734] ss:$8 sps:$4 sm:$0xff]  }
 0x258   : > { %v2284_v15 = vadd.f32 %v5195_v26, %v2123_v9  ;;  %v5086_v40 = vadd.f32 %v5085_v38, %v5084_v33  ;;  %v5197_v58 = vpop.f32.mrf.mxu1  ;;  %4385 = vmatprep.subr.bf16.mxu1 %v5698_v32  ;;  %4374 = vmatprep.mubr.bf16.mxu0 %v2545_v51  ;;  %v5714_v51 = vld [vmem:[%s8090_s3 + $0x730] ss:$8 sps:$4 sm:$0xff]   ;;  %v5719_v33 = vld [vmem:[%s8090_s3 + $0x624] ss:$8 sps:$4 sm:$0xff]  }
 0x259   : > { %v5087_v52 = vpop.f32.mrf.mxu0  ;;  %4415 = vmatprep.mubr.bf16.mxu1 %v2547_v22  ;;  %v5198_v63 = vadd.f32 %v5197_v58, %v5196_v39  ;;  %v5722_v26 = vld [vmem:[%s8090_s3 + $0x724] ss:$8 sps:$4 sm:$0xff]   ;;  %v5725_v58 = vld [vmem:[%s8090_s3 + $0x614] ss:$8 sps:$4 sm:$0xff]  }
 0x25a   : > { %2399 = vst.msk [vmem:[%s7074_s20 + $0x178] sm:$0xff] %vm2353_vm0, %v2284_v15  ;;  %v2128_v1 = vadd.f32 %v5086_v40, %v7303_v6  ;;  %v5199_v23 = vpop.f32.mrf.mxu1  ;;  %4345 = vmatpush1.bf16.msra.mxu0 %v5693_v13  ;;  %v5720_v40 = vld [vmem:[%s8090_s3 + $0x720] ss:$8 sps:$4 sm:$0xff]  }
 0x25b   : > { %4386 = vmatpush1.bf16.msra.mxu1 %v5696_v50  ;;  %v5088_v36 = vpop.f32.mrf.mxu0  ;;  %4346 = vmatprep.subr.bf16.mxu0 %v5701_v20  ;;  %v5717_v20 = vld [vmem:[%s8090_s3 + $0x620] ss:$8 sps:$4 sm:$0xff]  }
 0x25c   : > { %v2289_v6 = vadd.f32 %v5198_v63, %v2128_v1  ;;  %v5089_v7 = vadd.f32 %v5088_v36, %v5087_v52  ;;  %v5200_v42 = vpop.f32.mrf.mxu1  ;;  %4387 = vmatprep.subr.bf16.mxu1 %v5704_v35  ;;  %v5728_v1 = vld [vmem:[%s8090_s3 + $0x714] ss:$8 sps:$4 sm:$0xff]  }
 0x25d   : > { %v5090_v48 = vpop.f32.mrf.mxu0  ;;  %v5201_v60 = vadd.f32 %v5200_v42, %v5199_v23 }
 0x25e   : > { %2402 = vst.msk [vmem:[%s7074_s20 + $0x190] sm:$0xff] %vm2353_vm0, %v2289_v6  ;;  %v2131_v25 = vadd.f32 %v5089_v7, %v7321_v54  ;;  %v5202_v16 = vpop.f32.mrf.mxu1  ;;  %4347 = vmatpush1.bf16.msra.mxu0 %v5699_v49  ;;  %v5726_v6 = vld [vmem:[%s8090_s3 + $0x710] ss:$8 sps:$4 sm:$0xff]   ;;  %v5731_v7 = vld [vmem:[%s8090_s3 + $0x604] ss:$8 sps:$4 sm:$0xff]  }
 0x25f   : > { %4388 = vmatpush1.bf16.msra.mxu1 %v5702_v24  ;;  %v5091_v62 = vpop.f32.mrf.mxu0  ;;  %4348 = vmatprep.subr.bf16.mxu0 %v5707_v45  ;;  %v5723_v24 = vld [vmem:[%s8090_s3 + $0x610] ss:$8 sps:$4 sm:$0xff]  }
 0x260   : > { %v2292_v54 = vadd.f32 %v5201_v60, %v2131_v25  ;;  %v5092_v53 = vadd.f32 %v5091_v62, %v5090_v48  ;;  %v5203_v0 = vpop.f32.mrf.mxu1  ;;  %4389 = vmatprep.subr.bf16.mxu1 %v5710_v44  ;;  %v5734_v48 = vld [vmem:[%s8090_s3 + $0x704] ss:$8 sps:$4 sm:$0xff]   ;;  %v5729_v62 = vld [vmem:[%s8090_s3 + $0x600] ss:$8 sps:$4 sm:$0xff]  }
 0x261   : > { %v5093_v56 = vpop.f32.mrf.mxu0  ;;  %v5204_v30 = vadd.f32 %v5203_v0, %v5202_v16 }
 0x262   : > { %2405 = vst.msk [vmem:[%s7074_s20 + $0x1a8] sm:$0xff] %vm2353_vm0, %v2292_v54  ;;  %v2136_v5 = vadd.f32 %v5092_v53, %v7339_v57  ;;  %v5205_v29 = vpop.f32.mrf.mxu1  ;;  %4349 = vmatpush1.bf16.msra.mxu0 %v5705_v55  ;;  %v5737_v54 = vld [vmem:[%s8090_s3 + $0x6f4] ss:$8 sps:$4 sm:$0xff]  }
 0x263   : > { %4390 = vmatpush1.bf16.msra.mxu1 %v5708_v2  ;;  %v5094_v32 = vpop.f32.mrf.mxu0  ;;  %4350 = vmatprep.subr.bf16.mxu0 %v5713_v4  ;;  %v5732_v4 = vld [vmem:[%s8090_s3 + $0x700] ss:$8 sps:$4 sm:$0xff]  }
 0x264   : > { %v2297_v57 = vadd.f32 %v5204_v30, %v2136_v5  ;;  %v5095_v22 = vadd.f32 %v5094_v32, %v5093_v56  ;;  %v5206_v9 = vpop.f32.mrf.mxu1  ;;  %4391 = vmatprep.subr.bf16.mxu1 %v5716_v41  ;;  %v5740_v41 = vld [vmem:[%s8090_s3 + $0x7f4] ss:$8 sps:$4 sm:$0xff]  }
 0x265   : > { %v5096_v39 = vpop.f32.mrf.mxu0  ;;  %v5207_v38 = vadd.f32 %v5206_v9, %v5205_v29  ;;  %v5746_v9 = vld [vmem:[%s8090_s3 + $0x7e4] ss:$8 sps:$4 sm:$0xff]  }
 0x266   : > { %2408 = vst.msk [vmem:[%s7074_s20 + $0x1c0] sm:$0xff] %vm2353_vm0, %v2297_v57  ;;  %v2139_v13 = vadd.f32 %v5095_v22, %v7357_v21  ;;  %v5208_v50 = vpop.f32.mrf.mxu1  ;;  %4351 = vmatpush1.bf16.msra.mxu0 %v5711_v28  ;;  %v5735_v28 = vld [vmem:[%s8090_s3 + $0x6f0] ss:$8 sps:$4 sm:$0xff]  }
 0x267   : > { %4392 = vmatpush1.bf16.msra.mxu1 %v5714_v51  ;;  %v5097_v15 = vpop.f32.mrf.mxu0  ;;  %4352 = vmatprep.subr.bf16.mxu0 %v5719_v33  ;;  %v5738_v51 = vld [vmem:[%s8090_s3 + $0x7f0] ss:$8 sps:$4 sm:$0xff]   ;;  %v5743_v33 = vld [vmem:[%s8090_s3 + $0x6e4] ss:$8 sps:$4 sm:$0xff]  }
 0x268   : > { %v2300_v21 = vadd.f32 %v5207_v38, %v2139_v13  ;;  %v5098_v35 = vadd.f32 %v5097_v15, %v5096_v39  ;;  %v5209_v52 = vpop.f32.mrf.mxu1  ;;  %4393 = vmatprep.subr.bf16.mxu1 %v5722_v26  ;;  %v5744_v15 = vld [vmem:[%s8090_s3 + $0x7e0] ss:$8 sps:$4 sm:$0xff]  }
 0x269   : > { %v5099_v63 = vpop.f32.mrf.mxu0  ;;  %v5210_v49 = vadd.f32 %v5209_v52, %v5208_v50  ;;  %v5741_v50 = vld [vmem:[%s8090_s3 + $0x6e0] ss:$8 sps:$4 sm:$0xff]  }
 0x26a   : > { %2411 = vst.msk [vmem:[%s7074_s20 + $0x1d8] sm:$0xff] %vm2353_vm0, %v2300_v21  ;;  %v2144_v23 = vadd.f32 %v5098_v35, %v7375_v17  ;;  %v5211_v36 = vpop.f32.mrf.mxu1  ;;  %4353 = vmatpush1.bf16.msra.mxu0 %v5717_v20  ;;  %v5752_v35 = vld [vmem:[%s8090_s3 + $0x7d4] ss:$8 sps:$4 sm:$0xff]  }
 0x26b   : > { %4394 = vmatpush1.bf16.msra.mxu1 %v5720_v40  ;;  %v5100_v45 = vpop.f32.mrf.mxu0  ;;  %4354 = vmatprep.subr.bf16.mxu0 %v5725_v58  ;;  %v5749_v40 = vld [vmem:[%s8090_s3 + $0x6d4] ss:$8 sps:$4 sm:$0xff]  }
 0x26c   : > { %v2305_v17 = vadd.f32 %v5210_v49, %v2144_v23  ;;  %v5101_v42 = vadd.f32 %v5100_v45, %v5099_v63  ;;  %v5212_v44 = vpop.f32.mrf.mxu1  ;;  %4395 = vmatprep.subr.bf16.mxu1 %v5728_v1  ;;  %v5747_v49 = vld [vmem:[%s8090_s3 + $0x6d0] ss:$8 sps:$4 sm:$0xff]   ;;  %v5755_v45 = vld [vmem:[%s8090_s3 + $0x6c4] ss:$8 sps:$4 sm:$0xff]  }
 0x26d   : > { %v5102_v25 = vpop.f32.mrf.mxu0  ;;  %v5213_v16 = vadd.f32 %v5212_v44, %v5211_v36 }
 0x26e   : > { %2414 = vst.msk [vmem:[%s7074_s20 + $0x1f0] sm:$0xff] %vm2353_vm0, %v2305_v17  ;;  %v2147_v60 = vadd.f32 %v5101_v42, %v7393_v10  ;;  %v5214_v55 = vpop.f32.mrf.mxu1  ;;  %4355 = vmatpush1.bf16.msra.mxu0 %v5723_v24  ;;  %v5750_v24 = vld [vmem:[%s8090_s3 + $0x7d0] ss:$8 sps:$4 sm:$0xff]   ;;  %v5758_v17 = vld [vmem:[%s8090_s3 + $0x7c4] ss:$8 sps:$4 sm:$0xff]  }
 0x26f   : > { %4396 = vmatpush1.bf16.msra.mxu1 %v5726_v6  ;;  %v5103_v2 = vpop.f32.mrf.mxu0  ;;  %4356 = vmatprep.subr.bf16.mxu0 %v5731_v7 }
 0x270   : > { %v2308_v10 = vadd.f32 %v5213_v16, %v2147_v60  ;;  %v5104_v53 = vadd.f32 %v5103_v2, %v5102_v25  ;;  %v5215_v0 = vpop.f32.mrf.mxu1  ;;  %4397 = vmatprep.subr.bf16.mxu1 %v5734_v48  ;;  %v5753_v60 = vld [vmem:[%s8090_s3 + $0x6c0] ss:$8 sps:$4 sm:$0xff]  }
 0x271   : > { %v5105_v56 = vpop.f32.mrf.mxu0  ;;  %v5216_v30 = vadd.f32 %v5215_v0, %v5214_v55  ;;  %v5756_v55 = vld [vmem:[%s8090_s3 + $0x7c0] ss:$8 sps:$4 sm:$0xff]  }
 0x272   : > { %2417 = vst.msk [vmem:[%s7074_s20 + $0x208] sm:$0xff] %vm2353_vm0, %v2308_v10  ;;  %v2152_v5 = vadd.f32 %v5104_v53, %v7411_v18  ;;  %v5217_v29 = vpop.f32.mrf.mxu1  ;;  %4357 = vmatpush1.bf16.msra.mxu0 %v5729_v62  ;;  %v5761_v62 = vld [vmem:[%s8090_s3 + $0x6b4] ss:$8 sps:$4 sm:$0xff]  }
 0x273   : > { %4398 = vmatpush1.bf16.msra.mxu1 %v5732_v4  ;;  %v5106_v32 = vpop.f32.mrf.mxu0  ;;  %4358 = vmatprep.subr.bf16.mxu0 %v5737_v54  ;;  %v5764_v54 = vld [vmem:[%s8090_s3 + $0x7b4] ss:$8 sps:$4 sm:$0xff]  }
 0x274   : > { %v2313_v18 = vadd.f32 %v5216_v30, %v2152_v5  ;;  %v5107_v57 = vadd.f32 %v5106_v32, %v5105_v56  ;;  %v5218_v22 = vpop.f32.mrf.mxu1  ;;  %4399 = vmatprep.subr.bf16.mxu1 %v5740_v41  ;;  %v5759_v56 = vld [vmem:[%s8090_s3 + $0x6b0] ss:$8 sps:$4 sm:$0xff]  }
 0x275   : > { %v5108_v26 = vpop.f32.mrf.mxu0  ;;  %v5219_v13 = vadd.f32 %v5218_v22, %v5217_v29  ;;  %v5762_v30 = vld [vmem:[%s8090_s3 + $0x7b0] ss:$8 sps:$4 sm:$0xff]   ;;  %v5767_v29 = vld [vmem:[%s8090_s3 + $0x6a4] ss:$8 sps:$4 sm:$0xff]  }
 0x276   : > { %2420 = vst.msk [vmem:[%s7074_s20 + $0x220] sm:$0xff] %vm2353_vm0, %v2313_v18  ;;  %v2155_v39 = vadd.f32 %v5107_v57, %v7429_v43  ;;  %v5220_v38 = vpop.f32.mrf.mxu1  ;;  %4359 = vmatpush2.bf16.msra.mxu0 %v5735_v28 }
 0x277   : > { %4400 = vmatpush2.bf16.msra.mxu1 %v5738_v51  ;;  %v5109_v20 = vpop.f32.mrf.mxu0  ;;  %4360 = vmatprep.subr.bf16.mxu0 %v5743_v33  ;;  %v5770_v51 = vld [vmem:[%s8090_s3 + $0x7a4] ss:$8 sps:$4 sm:$0xff]  }
 0x278   : > { %v2316_v43 = vadd.f32 %v5219_v13, %v2155_v39  ;;  %v5110_v58 = vadd.f32 %v5109_v20, %v5108_v26  ;;  %v5221_v21 = vpop.f32.mrf.mxu1  ;;  %4401 = vmatprep.subr.bf16.mxu1 %v5746_v9  ;;  %v5765_v9 = vld [vmem:[%s8090_s3 + $0x6a0] ss:$8 sps:$4 sm:$0xff]   ;;  %v5773_v13 = vld [vmem:[%s8090_s3 + $0x694] ss:$8 sps:$4 sm:$0xff]  }
 0x279   : > { %v5111_v52 = vpop.f32.mrf.mxu0  ;;  %v5222_v63 = vadd.f32 %v5221_v21, %v5220_v38  ;;  %v5768_v39 = vld [vmem:[%s8090_s3 + $0x7a0] ss:$8 sps:$4 sm:$0xff]   ;;  %v5776_v20 = vld [vmem:[%s8090_s3 + $0x794] ss:$8 sps:$4 sm:$0xff]   ;;  %v5771_v21 = vld [vmem:[%s8090_s3 + $0x690] ss:$8 sps:$4 sm:$0xff]  }
 0x27a   : > { %2423 = vst.msk [vmem:[%s7074_s20 + $0x238] sm:$0xff] %vm2353_vm0, %v2316_v43  ;;  %v2160_v1 = vadd.f32 %v5110_v58, %v7447_v46  ;;  %v5223_v23 = vpop.f32.mrf.mxu1  ;;  %4361 = vmatpush2.bf16.msra.mxu0 %v5741_v50 }
 0x27b   : > { %4402 = vmatpush2.bf16.msra.mxu1 %v5744_v15  ;;  %v5112_v36 = vpop.f32.mrf.mxu0  ;;  %4362 = vmatprep.subr.bf16.mxu0 %v5749_v40 }
 0x27c   : > { %v2321_v46 = vadd.f32 %v5222_v63, %v2160_v1  ;;  %v5113_v6 = vadd.f32 %v5112_v36, %v5111_v52  ;;  %v5224_v7 = vpop.f32.mrf.mxu1  ;;  %4403 = vmatprep.subr.bf16.mxu1 %v5752_v35  ;;  %v5774_v52 = vld [vmem:[%s8090_s3 + $0x790] ss:$8 sps:$4 sm:$0xff]  }
 0x27d   : > { %v5114_v42 = vpop.f32.mrf.mxu0  ;;  %v5225_v48 = vadd.f32 %v5224_v7, %v5223_v23 }
 0x27e   : > { %2426 = vst.msk [vmem:[%s7074_s20 + $0x250] sm:$0xff] %vm2353_vm0, %v2321_v46  ;;  %v2163_v44 = vadd.f32 %v5113_v6, %v7465_v61  ;;  %v5226_v25 = vpop.f32.mrf.mxu1  ;;  %4363 = vmatpush2.bf16.msra.mxu0 %v5747_v49  ;;  %v5782_v49 = vld [vmem:[%s8090_s3 + $0x784] ss:$8 sps:$4 sm:$0xff]  }
 0x27f   : > { %4404 = vmatpush2.bf16.msra.mxu1 %v5750_v24  ;;  %v5115_v16 = vpop.f32.mrf.mxu0  ;;  %4364 = vmatprep.subr.bf16.mxu0 %v5755_v45  ;;  %v5838_v24 = vld [vmem:[%s7194_s29 + $0x8] sm:$0xff] }
 0x280   : > { %v2324_v61 = vadd.f32 %v5225_v48, %v2163_v44  ;;  %v5116_v2 = vadd.f32 %v5115_v16, %v5114_v42  ;;  %v5227_v4 = vpop.f32.mrf.mxu1  ;;  %4405 = vmatprep.subr.bf16.mxu1 %v5758_v17  ;;  %v2503_v45 = vrot.slane %v5838_v24, %v2470_v59  ;;  %v5777_v17 = vld [vmem:[%s8090_s3 + $0x680] ss:$8 sps:$4 sm:$0xff]   ;;  %v2511_v42 = vrot.slane %v5838_v24, %v2478_v47 }
 0x281   : > { %v5117_v10 = vpop.f32.mrf.mxu0  ;;  %v5228_v0 = vadd.f32 %v5227_v4, %v5226_v25  ;;  %v5780_v59 = vld [vmem:[%s8090_s3 + $0x780] ss:$8 sps:$4 sm:$0xff]   ;;  %v5847_v24 = vmov 1966171168  }
 0x282   : > { %2429 = vst.msk [vmem:[%s7074_s20 + $0x268] sm:$0xff] %vm2353_vm0, %v2324_v61  ;;  %v2168_v53 = vadd.f32 %v5116_v2, %v7483_v8  ;;  %v5229_v41 = vpop.f32.mrf.mxu1  ;;  %4365 = vmatpush2.bf16.msra.mxu0 %v5753_v60  ;;  %v2546_v2 = vpack.c.bf16 %v2511_v42, %v2511_v42 }
 0x283   : > { %4406 = vmatpush2.bf16.msra.mxu1 %v5756_v55  ;;  %v5118_v5 = vpop.f32.mrf.mxu0  ;;  %4366 = vmatprep.subr.bf16.mxu0 %v5761_v62  ;;  %v2544_v55 = vpack.c.bf16 %v2503_v45, %v2503_v45  ;;  %v4428_v45 = vunpack.c.l.s4 %v5847_v24 }
 0x284   : > { %v2329_v8 = vadd.f32 %v5228_v0, %v2168_v53  ;;  %v5119_v28 = vadd.f32 %v5118_v5, %v5117_v10  ;;  %v5230_v32 = vpop.f32.mrf.mxu1  ;;  %4407 = vmatprep.subr.bf16.mxu1 %v5764_v54 }
 0x285   : > { %v5120_v33 = vpop.f32.mrf.mxu0  ;;  %v5231_v57 = vadd.f32 %v5230_v32, %v5229_v41 }
 0x286   : > { %2432 = vst.msk [vmem:[%s7074_s20 + $0x280] sm:$0xff] %vm2353_vm0, %v2329_v8  ;;  %v2171_v18 = vadd.f32 %v5119_v28, %v7501_v27  ;;  %v5232_v22 = vpop.f32.mrf.mxu1  ;;  %4367 = vmatpush2.bf16.msra.mxu0 %v5759_v56 }
 0x287   : > { %4408 = vmatpush2.bf16.msra.mxu1 %v5762_v30  ;;  %v5121_v26 = vpop.f32.mrf.mxu0  ;;  %4368 = vmatprep.subr.bf16.mxu0 %v5767_v29 }
 0x288   : > { %v2332_v27 = vadd.f32 %v5231_v57, %v2171_v18  ;;  %v5122_v38 = vadd.f32 %v5121_v26, %v5120_v33  ;;  %v5233_v50 = vpop.f32.mrf.mxu1  ;;  %4409 = vmatprep.subr.bf16.mxu1 %v5770_v51 }
 0x289   : > { %v5123_v15 = vpop.f32.mrf.mxu0  ;;  %v5234_v43 = vadd.f32 %v5233_v50, %v5232_v22 }
 0x28a   : > { %2435 = vst.msk [vmem:[%s7074_s20 + $0x298] sm:$0xff] %vm2353_vm0, %v2332_v27  ;;  %v2176_v40 = vadd.f32 %v5122_v38, %v7519_v14  ;;  %v5235_v58 = vpop.f32.mrf.mxu1  ;;  %4369 = vmatpush2.bf16.msra.mxu0 %v5765_v9  ;;  %v5779_v14 = vld [vmem:[%s8090_s3 + $0x684] ss:$8 sps:$4 sm:$0xff]  }
 0x28b   : > { %4410 = vmatpush2.bf16.msra.mxu1 %v5768_v39  ;;  %v5124_v35 = vpop.f32.mrf.mxu0  ;;  %4370 = vmatprep.subr.bf16.mxu0 %v5773_v13 }
 0x28c   : > { %v2337_v1 = vadd.f32 %v5234_v43, %v2176_v40  ;;  %v5125_v63 = vadd.f32 %v5124_v35, %v5123_v15  ;;  %v5236_v23 = vpop.f32.mrf.mxu1  ;;  %4411 = vmatprep.subr.bf16.mxu1 %v5776_v20 }
 0x28d   : > { %v5126_v36 = vpop.f32.mrf.mxu0  ;;  %v5237_v6 = vadd.f32 %v5236_v23, %v5235_v58 }
 0x28e   : > { %2438 = vst.msk [vmem:[%s7074_s20 + $0x2b0] sm:$0xff] %vm2353_vm0, %v2337_v1  ;;  %v2179_v46 = vadd.f32 %v5125_v63, %v7539_v19  ;;  %v5238_v7 = vpop.f32.mrf.mxu1  ;;  %4371 = vmatpush2.bf16.msra.mxu0 %v5771_v21  ;;  %v2804_v19 = vld [vmem:[%s8091_s4] sm:$0x3] }
 0x28f   : > { %4412 = vmatpush2.bf16.msra.mxu1 %v5774_v52  ;;  %v5127_v44 = vpop.f32.mrf.mxu0  ;;  %4372 = vmatprep.subr.bf16.mxu0 %v5779_v14  ;;  %v4089_v4 = vrot.slane %v2804_v19, %v7233_v3  ;;  %v4093_v41 = vrot.slane %v2804_v19, %v7203_v34 }
 0x290   : > { %v2340_v48 = vadd.f32 %v5237_v6, %v2179_v46  ;;  %v5128_v25 = vadd.f32 %v5127_v44, %v5126_v36  ;;  %v5239_v60 = vpop.f32.mrf.mxu1  ;;  %4413 = vmatprep.subr.bf16.mxu1 %v5782_v49  ;;  %v4429_v44 = vunpack.c.0.s8 %v4428_v45 }
 0x291   : > { %v5129_v16 = vpop.f32.mrf.mxu0  ;;  %v5240_v62 = vadd.f32 %v5239_v60, %v5238_v7 }
 0x292   : > { %2441 = vst.msk [vmem:[%s7074_s20 + $0x2c8] sm:$0xff] %vm2353_vm0, %v2340_v48  ;;  %v2184_v47 = vadd.f32 %v5128_v25, %v7568_v31  ;;  %v5241_v61 = vpop.f32.mrf.mxu1  ;;  %4373 = vmatpush2.bf16.msra.mxu0 %v5777_v17 }
 0x293   : > { %4414 = vmatpush2.bf16.msra.mxu1 %v5780_v59  ;;  %v5130_v54 = vpop.f32.mrf.mxu0 }
 0x294   : > { %v2345_v10 = vadd.f32 %v5240_v62, %v2184_v47  ;;  %v5131_v53 = vadd.f32 %v5130_v54, %v5129_v16  ;;  %v5242_v0 = vpop.f32.mrf.mxu1 }
 0x295   : > { %4375 = vmatmul.mubr.bf16.vlgmr.msra.gmra.mxu0 %v2544_v55  ;;  %v4130_v56 = vpop.f32.mrf.mxu0  ;;  %v5243_v5 = vadd.f32 %v5242_v0, %v5241_v61  ;;  %v4432_v55 = vsub.s32 %v4429_v44, %v7186_v11 }
 0x296   : > { %2444 = vst.msk [vmem:[%s7074_s20 + $0x2e0] sm:$0xff] %vm2353_vm0, %v2345_v10  ;;  %v2187_v31 = vadd.f32 %v5131_v53, %v7589_v12  ;;  %4416 = vmatmul.mubr.bf16.vlgmr.msra.gmra.mxu1 %v2546_v2  ;;  %v4131_v30 = vadd.f32 %v4130_v56, %v4089_v4  ;;  %v4171_v29 = vpop.f32.mrf.mxu1 }
 0x297   : > { %v4132_v8 = vpop.f32.mrf.mxu0 }
 0x298   : > { %v2348_v3 = vadd.f32 %v5243_v5, %v2187_v31  ;;  %v4172_v28 = vadd.f32 %v4171_v29, %v4131_v30  ;;  %v4133_v32 = vadd.f32 %v4132_v8, %v4093_v41  ;;  %v4173_v51 = vpop.f32.mrf.mxu1 }
 0x299   : > { %v4134_v33 = vpop.f32.mrf.mxu0 }
 0x29a   : > { %2447 = vst.msk [vmem:[%s7074_s20 + $0x2f8] sm:$0xff] %vm2353_vm0, %v2348_v3  ;;  %v4174_v18 = vadd.f32 %v4173_v51, %v4133_v32  ;;  %v4175_v34 = vpop.f32.mrf.mxu1  ;;  %s4553_s20 = sshll.u32 %s8152_s22, 1 }
 0x29b   : > { %v4135_v57 = vpop.f32.mrf.mxu0  ;;  %s279_s16 = scalar_lea.vmem %s8093_s6, %s4553_s20 }
 0x29c   : > { %v4176_v22 = vpop.f32.mrf.mxu1 }
 0x2d5   : > { %v4212_v9 = vpop.f32.mrf.mxu0 }
 0x2d6   : > { %v4213_v26 = vadd.f32 %v4212_v9, %v4172_v28  ;;  %v4253_v39 = vpop.f32.mrf.mxu1 }
 0x2d7   : > { %v4214_v12 = vpop.f32.mrf.mxu0 }
 0x2d8   : > { %v4254_v13 = vadd.f32 %v4253_v39, %v4213_v26  ;;  %v4215_v27 = vadd.f32 %v4214_v12, %v4174_v18  ;;  %v4255_v38 = vpop.f32.mrf.mxu1 }
 0x2d9   : > { %v4216_v50 = vpop.f32.mrf.mxu0 }
 0x2da   : > { %v4256_v20 = vadd.f32 %v4255_v38, %v4215_v27  ;;  %v4257_v15 = vpop.f32.mrf.mxu1 }
 0x2db   : > { %v4217_v40 = vpop.f32.mrf.mxu0 }
 0x2dc   : > { %v4258_v43 = vpop.f32.mrf.mxu1 }
 0x315   : > { %v4294_v58 = vpop.f32.mrf.mxu0 }
 0x316   : > { %v4335_v21 = vpop.f32.mrf.mxu1  ;;  %v4295_v49 = vadd.f32 %v4294_v58, %v4254_v13 }
 0x317   : > { %v4296_v35 = vpop.f32.mrf.mxu0 }
 0x318   : > { %v4337_v52 = vpop.f32.mrf.mxu1  ;;  %v4297_v36 = vadd.f32 %v4296_v35, %v4256_v20  ;;  %v4336_v46 = vadd.f32 %v4335_v21, %v4295_v49 }
 0x319   : > { %v4298_v14 = vpop.f32.mrf.mxu0 }
 0x31a   : > { %v4339_v1 = vpop.f32.mrf.mxu1  ;;  %v4338_v7 = vadd.f32 %v4337_v52, %v4297_v36 }
 0x31b   : > { %v4299_v63 = vpop.f32.mrf.mxu0 }
 0x31c   : > { %v4340_v23 = vpop.f32.mrf.mxu1 }
 0x355   : > { %v4376_v6 = vpop.f32.mrf.mxu0 }
 0x356   : > { %v4377_v17 = vadd.f32 %v4376_v6, %v4336_v46  ;;  %v4417_v42 = vpop.f32.mrf.mxu1 }
 0x357   : > { %v4378_v59 = vpop.f32.mrf.mxu0 }
 0x358   : > { %v4379_v19 = vadd.f32 %v4378_v59, %v4338_v7  ;;  %v4419_v48 = vpop.f32.mrf.mxu1  ;;  %v4418_v60 = vadd.f32 %v4417_v42, %v4377_v17 }
 0x359   : > { %v4380_v25 = vpop.f32.mrf.mxu0 }
 0x35a   : > { %v4420_v16 = vadd.f32 %v4419_v48, %v4379_v19  ;;  %v4421_v47 = vpop.f32.mrf.mxu1 }
 0x35b   : > { %v4381_v62 = vpop.f32.mrf.mxu0 }
 0x35c   : > { %v4426_v61 = vcombine.low %v4418_v60, %v4420_v16  ;;  %v4422_v2 = vpop.f32.mrf.mxu1 }
 0x35e   : > { %v4433_v4 = vrot.slane %v4426_v61, %v4432_v55 }
 0x360   : > { %v4440_v54 = vrot.slane %v4433_v4, %v4432_v55 }
 0x362   : > { %4446 = vst.msk [vmem:[%s279_s16] sm:$0x3] %vm4444_vm1, %v4440_v54 }
 0x363 PF: > { %s17_s21 = sadd.s32 1, %s5845_s21  }
 0x364   : > { %p14_p4 = scmp.ge.s32.totalorder %s17_s21, 4  }
 0x366   :  { %16 = sbr.rel (!%p14_p4) target bundleno = 1 (0x1), region = 85 }

</bundles_post_ra>
